<compile_context>
chip_gen: v7x
topology: tpu7x:2x2x1
jax: 0.10.0
libtpu: 0.0.40
codegen_flags: <defaults>
</compile_context>

<pallas_src>
import jax
import jax.numpy as jnp
from jax.experimental import pallas as pl
from jax.experimental.pallas import tpu as pltpu

LN_EPS = 1e-5  # PyTorch nn.LayerNorm default


def _layer_norm(h, gamma, beta):
    mu = jnp.mean(h, axis=-1, keepdims=True)
    var = jnp.mean((h - mu) ** 2, axis=-1, keepdims=True)
    return (h - mu) * jax.lax.rsqrt(var + LN_EPS) * gamma + beta


def _round_up(x, m):
    return ((x + m - 1) // m) * m


def bond_ffn_kernel(
    bond_ref, node_ref, time_ref,   # per-row inputs (bond/node in matmul dtype, time f32)
    wbx_ref, wnx_ref,               # fused [bond_linear | gate_bond], [node_linear | gate_node]
    w1_ref, w2_ref, wg2_ref,        # inter-MLP weights / gate-MLP 2nd layer (out padded to 128 lanes)
    vi_ref,                         # (3, inter_dim): rows = b1, gamma1, beta1
    vg_ref,                         # (4, gate_hidden): rows = bg1, gamma_g, beta_g, wgt
    vo_ref,                         # (2, out_pad): rows = b2, bg2
    out_ref,
):
    inter_dim = w1_ref.shape[0]
    mm_dtype = w1_ref.dtype

    bond_in = bond_ref[...]
    node_in = node_ref[...]
    t = time_ref[...]                                   # (tn, 1) f32

    # Fused projections: cols [:inter_dim] = bond_linear / node_linear outputs,
    # cols [inter_dim:] = the bond / node halves of the gate MLP's first layer.
    bproj = jnp.dot(bond_in, wbx_ref[...], preferred_element_type=jnp.float32)
    nproj = jnp.dot(node_in, wnx_ref[...], preferred_element_type=jnp.float32)

    inter = bproj[:, :inter_dim] * nproj[:, :inter_dim]

    # inter_module: Linear -> LayerNorm -> ReLU -> Linear (f32 math, bf16 MXU operands).
    vi = vi_ref[...]
    h = jnp.dot(inter.astype(mm_dtype), w1_ref[...],
                preferred_element_type=jnp.float32) + vi[0:1, :]
    h = _layer_norm(h, vi[1:2, :], vi[2:3, :])
    h = jnp.maximum(h, 0.0)

    vo = vo_ref[...]
    inter_out = jnp.dot(h.astype(mm_dtype), w2_ref[...],
                        preferred_element_type=jnp.float32) + vo[0:1, :]

    # gate = MLP(cat([bond, node, time], -1)); concat folded into the fused matmuls
    # above plus an exact f32 outer product for the time column.
    vg = vg_ref[...]
    gh = bproj[:, inter_dim:] + nproj[:, inter_dim:] + t * vg[3:4, :] + vg[0:1, :]
    gh = _layer_norm(gh, vg[1:2, :], vg[2:3, :])
    gh = jnp.maximum(gh, 0.0)
    gate = jnp.dot(gh.astype(mm_dtype), wg2_ref[...],
                   preferred_element_type=jnp.float32) + vo[1:2, :]

    out_ref[...] = (inter_out * jax.nn.sigmoid(gate)).astype(out_ref.dtype)


def _pick_tn(n_rows, max_tn=1024):
    """Largest power-of-two tile <= max_tn that keeps >= 2 grid steps (v7x megacore)."""
    tn = max_tn
    while tn > 128 and pl.cdiv(n_rows, tn) < 2:
        tn //= 2
    return tn


def _prepare_params(params, out_dim, matmul_dtype):
    out_pad = _round_up(out_dim, 128)

    def pad_cols(w):
        return jnp.pad(w, ((0, 0), (0, out_pad - w.shape[1])))

    # Fused bond/node projection weights (bond_linear || gate-bond half), bf16 for the MXU.
    wbx = jnp.concatenate([params["wb"], params["wgb"]], axis=1).astype(matmul_dtype)
    wnx = jnp.concatenate([params["wn"], params["wgn"]], axis=1).astype(matmul_dtype)
    w1 = params["w1"].astype(matmul_dtype)
    w2 = pad_cols(params["w2"]).astype(matmul_dtype)       # lane-dense output
    wg2 = pad_cols(params["wg2"]).astype(matmul_dtype)

    # Small vectors packed into three stacked f32 arrays (fewer DMA descriptors / buffers).
    vi = jnp.concatenate([params["b1"], params["g1"], params["be1"]], axis=0)
    vg = jnp.concatenate([params["bg1"], params["gg"], params["beg"], params["wgt"]], axis=0)
    vo = jnp.concatenate([pad_cols(params["b2"]), pad_cols(params["bg2"])], axis=0)

    return (wbx, wnx, w1, w2, wg2, vi, vg, vo), out_pad


def bond_ffn_pallas(bond, node, time, params, *, out_dim, tn=None,
                    matmul_dtype=jnp.bfloat16):
    N, bond_dim = bond.shape
    node_dim = node.shape[1]
    inter_dim = params["w1"].shape[0]
    gate_hidden = params["wgb"].shape[1]

    weights, out_pad = _prepare_params(params, out_dim, matmul_dtype)

    tn = _pick_tn(N) if tn is None else tn
    n_pad = pl.cdiv(N, tn) * tn

    # Row-scaling inputs: matmul operands in bf16 (halves HBM traffic), time stays f32
    # (used only in an exact elementwise outer product).
    bond_x = bond.astype(matmul_dtype)
    node_x = node.astype(matmul_dtype)
    time_x = time.astype(jnp.float32)
    if n_pad != N:
        pad = ((0, n_pad - N), (0, 0))
        bond_x = jnp.pad(bond_x, pad)
        node_x = jnp.pad(node_x, pad)
        time_x = jnp.pad(time_x, pad)

    row_spec = lambda d: pl.BlockSpec((tn, d), lambda i: (i, 0))
    full_spec = lambda a: pl.BlockSpec(a.shape, lambda i: (0, 0))

    in_specs = [row_spec(bond_dim), row_spec(node_dim), row_spec(1)]
    in_specs += [full_spec(a) for a in weights]

    # Advisory cost estimate so XLA schedules this call sensibly.
    flops = 2 * n_pad * (
        bond_dim * (inter_dim + gate_hidden)
        + node_dim * (inter_dim + gate_hidden)
        + inter_dim * inter_dim
        + inter_dim * out_pad
        + gate_hidden * out_pad
    )
    transcendentals = n_pad * (out_pad + 4)  # sigmoid per lane + 2 rsqrt (+ slack)
    itemsize_mm = jnp.dtype(matmul_dtype).itemsize
    weight_bytes = sum(int(a.size) * a.dtype.itemsize for a in weights)
    bytes_accessed = int(
        n_pad * (bond_dim + node_dim) * itemsize_mm   # row inputs
        + n_pad * 4                                   # time
        + n_pad * out_pad * 4                         # output
        + weight_bytes
    )

    out = pl.pallas_call(
        bond_ffn_kernel,
        out_shape=jax.ShapeDtypeStruct((n_pad, out_pad), jnp.float32),
        grid_spec=pltpu.PrefetchScalarGridSpec(
            num_scalar_prefetch=0,
            grid=(n_pad // tn,),
            in_specs=in_specs,
            out_specs=row_spec(out_pad),
        ),
        compiler_params=pltpu.CompilerParams(
            dimension_semantics=("parallel",),
        ),
        cost_estimate=pl.CostEstimate(
            flops=int(flops),
            transcendentals=int(transcendentals),
            bytes_accessed=bytes_accessed,
        ),
    )(bond_x, node_x, time_x, *weights)

    return out[:N, :out_dim]


def bond_ffn_reference(bond, node, time, params, *, matmul_dtype=jnp.float32):
    """Pure-JAX reference mirroring the PyTorch BondFFN forward (use_gate=True)."""
    def dot(a, b):
        return jnp.dot(a.astype(matmul_dtype), b.astype(matmul_dtype),
                       preferred_element_type=jnp.float32)

    bond_feat = dot(bond, params["wb"])
    node_feat = dot(node, params["wn"])
    inter = bond_feat * node_feat
    h = dot(inter, params["w1"]) + params["b1"]
    h = _layer_norm(h, params["g1"], params["be1"])
    h = jnp.maximum(h, 0.0)
    inter_out = dot(h, params["w2"]) + params["b2"]

    gate_in = jnp.concatenate([bond, node, time], axis=-1)
    wg1 = jnp.concatenate([params["wgb"], params["wgn"], params["wgt"]], axis=0)
    gh = dot(gate_in, wg1) + params["bg1"]
    gh = _layer_norm(gh, params["gg"], params["beg"])
    gh = jnp.maximum(gh, 0.0)
    gate = dot(gh, params["wg2"]) + params["bg2"]
    return inter_out * jax.nn.sigmoid(gate)


def init_params(key, bond_dim, node_dim, inter_dim, out_dim, gate_hidden=32):
    ks = jax.random.split(key, 12)
    s = 0.1
    # All weights stored already transposed to [in, out] so the kernel does x @ W.
    return {
        "wb": s * jax.random.normal(ks[0], (bond_dim, inter_dim), jnp.float32),
        "wn": s * jax.random.normal(ks[1], (node_dim, inter_dim), jnp.float32),
        # inter_module MLP(inter_dim, out_dim, inter_dim)
        "w1": s * jax.random.normal(ks[2], (inter_dim, inter_dim), jnp.float32),
        "b1": s * jax.random.normal(ks[3], (1, inter_dim), jnp.float32),
        "g1": jnp.ones((1, inter_dim), jnp.float32),
        "be1": jnp.zeros((1, inter_dim), jnp.float32),
        "w2": s * jax.random.normal(ks[4], (inter_dim, out_dim), jnp.float32),
        "b2": s * jax.random.normal(ks[5], (1, out_dim), jnp.float32),
        # gate MLP(bond_dim + node_dim + 1, out_dim, 32), first weight split
        "wgb": s * jax.random.normal(ks[6], (bond_dim, gate_hidden), jnp.float32),
        "wgn": s * jax.random.normal(ks[7], (node_dim, gate_hidden), jnp.float32),
        "wgt": s * jax.random.normal(ks[8], (1, gate_hidden), jnp.float32),
        "bg1": s * jax.random.normal(ks[9], (1, gate_hidden), jnp.float32),
        "gg": jnp.ones((1, gate_hidden), jnp.float32),
        "beg": jnp.zeros((1, gate_hidden), jnp.float32),
        "wg2": s * jax.random.normal(ks[10], (gate_hidden, out_dim), jnp.float32),
        "bg2": s * jax.random.normal(ks[11], (1, out_dim), jnp.float32),
    }


if __name__ == "__main__":
    N = 300          # deliberately not tile-aligned: exercises wrapper-side padding
    bond_dim = 32
    node_dim = 32
    inter_dim = 128
    out_dim = 32     # defaults to bond_dim in the module

    key = jax.random.PRNGKey(0)
    k_b, k_n, k_t, k_p = jax.random.split(key, 4)

    bond = jax.random.normal(k_b, (N, bond_dim), jnp.float32)
    node = jax.random.normal(k_n, (N, node_dim), jnp.float32)
    time = jax.random.uniform(k_t, (N, 1), jnp.float32)
    params = init_params(k_p, bond_dim, node_dim, inter_dim, out_dim)

    out = bond_ffn_pallas(bond, node, time, params, out_dim=out_dim)
    out = jax.block_until_ready(out)
    assert out.shape == (N, out_dim)

    # Tight check vs a reference that applies the same bf16-operand / f32-accumulate numerics.
    ref_bf16 = bond_ffn_reference(bond, node, time, params, matmul_dtype=jnp.bfloat16)
    assert jnp.allclose(out, ref_bf16, atol=2e-3, rtol=2e-3), "mismatch vs bf16-matched reference"

    # Looser sanity check vs the full-f32 PyTorch-faithful forward.
    ref_f32 = bond_ffn_reference(bond, node, time, params, matmul_dtype=jnp.float32)
    assert jnp.allclose(out, ref_f32, atol=3e-2, rtol=3e-2), "mismatch vs f32 reference"

    print("KERNEL_OK")
</pallas_src>

<mosaic_0001>
module attributes {stable_mosaic.version = 11 : i64} {
  func.func @bond_ffn_kernel(%arg0: i32, %arg1: memref<256x32xbf16, #tpu.memory_space<vmem>>, %arg2: memref<256x32xbf16, #tpu.memory_space<vmem>>, %arg3: memref<256x1xf32, #tpu.memory_space<vmem>>, %arg4: memref<32x160xbf16, #tpu.memory_space<vmem>>, %arg5: memref<32x160xbf16, #tpu.memory_space<vmem>>, %arg6: memref<128x128xbf16, #tpu.memory_space<vmem>>, %arg7: memref<128x128xbf16, #tpu.memory_space<vmem>>, %arg8: memref<32x128xbf16, #tpu.memory_space<vmem>>, %arg9: memref<3x128xf32, #tpu.memory_space<vmem>>, %arg10: memref<4x32xf32, #tpu.memory_space<vmem>>, %arg11: memref<2x128xf32, #tpu.memory_space<vmem>>, %arg12: memref<256x128xf32, #tpu.memory_space<vmem>>) attributes {dimension_semantics = [#tpu.dimension_semantics<parallel>], iteration_bounds = array<i64: 2>, scalar_prefetch = 0 : i64, scratch_operands = 0 : i64, tpu.core_type = #tpu.core_type<tc>, window_params = [{transform_indices = @transform_0, window_bounds = array<i64: 256, 32>}, {transform_indices = @transform_1, window_bounds = array<i64: 256, 32>}, {transform_indices = @transform_2, window_bounds = array<i64: 256, 1>}, {pipeline_mode = #tpu.pipeline_mode<synchronous>, transform_indices = @transform_3, window_bounds = array<i64: 32, 160>}, {pipeline_mode = #tpu.pipeline_mode<synchronous>, transform_indices = @transform_4, window_bounds = array<i64: 32, 160>}, {pipeline_mode = #tpu.pipeline_mode<synchronous>, transform_indices = @transform_5, window_bounds = array<i64: 128, 128>}, {pipeline_mode = #tpu.pipeline_mode<synchronous>, transform_indices = @transform_6, window_bounds = array<i64: 128, 128>}, {pipeline_mode = #tpu.pipeline_mode<synchronous>, transform_indices = @transform_7, window_bounds = array<i64: 32, 128>}, {pipeline_mode = #tpu.pipeline_mode<synchronous>, transform_indices = @transform_8, window_bounds = array<i64: 3, 128>}, {pipeline_mode = #tpu.pipeline_mode<synchronous>, transform_indices = @transform_9, window_bounds = array<i64: 4, 32>}, {pipeline_mode = #tpu.pipeline_mode<synchronous>, transform_indices = @transform_10, window_bounds = array<i64: 2, 128>}, {transform_indices = @transform_11, window_bounds = array<i64: 256, 128>}]} {
    %c0 = arith.constant 0 : index
    %c0_0 = arith.constant 0 : index
    %0 = vector.load %arg1[%c0, %c0_0] : memref<256x32xbf16, #tpu.memory_space<vmem>>, vector<256x32xbf16>
    %c0_1 = arith.constant 0 : index
    %c0_2 = arith.constant 0 : index
    %1 = vector.load %arg2[%c0_1, %c0_2] : memref<256x32xbf16, #tpu.memory_space<vmem>>, vector<256x32xbf16>
    %c0_3 = arith.constant 0 : index
    %c0_4 = arith.constant 0 : index
    %2 = vector.load %arg3[%c0_3, %c0_4] : memref<256x1xf32, #tpu.memory_space<vmem>>, vector<256x1xf32>
    %c0_5 = arith.constant 0 : index
    %c0_6 = arith.constant 0 : index
    %3 = vector.load %arg4[%c0_5, %c0_6] : memref<32x160xbf16, #tpu.memory_space<vmem>>, vector<32x160xbf16>
    %cst = arith.constant dense<0.000000e+00> : vector<256x160xf32>
    %4 = tpu.matmul %0, %3, %cst {dimension_numbers = #tpu.dot_dimension_numbers<[1], [0], [0], [1], [0, 0, 1, 1], [], []>} : vector<256x32xbf16>, vector<32x160xbf16>, vector<256x160xf32> -> vector<256x160xf32>
    %c0_7 = arith.constant 0 : index
    %c0_8 = arith.constant 0 : index
    %5 = vector.load %arg5[%c0_7, %c0_8] : memref<32x160xbf16, #tpu.memory_space<vmem>>, vector<32x160xbf16>
    %cst_9 = arith.constant dense<0.000000e+00> : vector<256x160xf32>
    %6 = tpu.matmul %1, %5, %cst_9 {dimension_numbers = #tpu.dot_dimension_numbers<[1], [0], [0], [1], [0, 0, 1, 1], [], []>} : vector<256x32xbf16>, vector<32x160xbf16>, vector<256x160xf32> -> vector<256x160xf32>
    %7 = vector.extract_strided_slice %4 {offsets = [0, 0], sizes = [256, 128], strides = [1, 1]} : vector<256x160xf32> to vector<256x128xf32>
    %8 = vector.extract_strided_slice %6 {offsets = [0, 0], sizes = [256, 128], strides = [1, 1]} : vector<256x160xf32> to vector<256x128xf32>
    %9 = arith.mulf %7, %8 : vector<256x128xf32>
    %c0_10 = arith.constant 0 : index
    %c0_11 = arith.constant 0 : index
    %10 = vector.load %arg9[%c0_10, %c0_11] : memref<3x128xf32, #tpu.memory_space<vmem>>, vector<3x128xf32>
    %11 = arith.truncf %9 : vector<256x128xf32> to vector<256x128xbf16>
    %c0_12 = arith.constant 0 : index
    %c0_13 = arith.constant 0 : index
    %12 = vector.load %arg6[%c0_12, %c0_13] : memref<128x128xbf16, #tpu.memory_space<vmem>>, vector<128x128xbf16>
    %cst_14 = arith.constant dense<0.000000e+00> : vector<256x128xf32>
    %13 = tpu.matmul %11, %12, %cst_14 {dimension_numbers = #tpu.dot_dimension_numbers<[1], [0], [0], [1], [0, 0, 1, 1], [], []>} : vector<256x128xbf16>, vector<128x128xbf16>, vector<256x128xf32> -> vector<256x128xf32>
    %14 = vector.extract_strided_slice %10 {offsets = [0, 0], sizes = [1, 128], strides = [1, 1]} : vector<3x128xf32> to vector<1x128xf32>
    %15 = vector.broadcast %14 : vector<1x128xf32> to vector<256x128xf32>
    %16 = arith.addf %13, %15 : vector<256x128xf32>
    %17 = vector.extract_strided_slice %10 {offsets = [1, 0], sizes = [1, 128], strides = [1, 1]} : vector<3x128xf32> to vector<1x128xf32>
    %18 = vector.extract_strided_slice %10 {offsets = [2, 0], sizes = [1, 128], strides = [1, 1]} : vector<3x128xf32> to vector<1x128xf32>
    %cst_15 = arith.constant dense<0.000000e+00> : vector<256xf32>
    %19 = vector.multi_reduction <add>, %16, %cst_15 [1] : vector<256x128xf32> to vector<256xf32>
    %20 = vector.shape_cast %19 : vector<256xf32> to vector<256x1xf32>
    %cst_16 = arith.constant 1.280000e+02 : f32
    %21 = vector.broadcast %cst_16 : f32 to vector<256x1xf32>
    %22 = arith.divf %20, %21 : vector<256x1xf32>
    %23 = vector.broadcast %22 : vector<256x1xf32> to vector<256x128xf32>
    %24 = arith.subf %16, %23 : vector<256x128xf32>
    %25 = arith.mulf %24, %24 : vector<256x128xf32>
    %cst_17 = arith.constant dense<0.000000e+00> : vector<256xf32>
    %26 = vector.multi_reduction <add>, %25, %cst_17 [1] : vector<256x128xf32> to vector<256xf32>
    %27 = vector.shape_cast %26 : vector<256xf32> to vector<256x1xf32>
    %cst_18 = arith.constant 1.280000e+02 : f32
    %28 = vector.broadcast %cst_18 : f32 to vector<256x1xf32>
    %29 = arith.divf %27, %28 : vector<256x1xf32>
    %30 = vector.broadcast %22 : vector<256x1xf32> to vector<256x128xf32>
    %31 = arith.subf %16, %30 : vector<256x128xf32>
    %cst_19 = arith.constant 9.99999974E-6 : f32
    %32 = vector.broadcast %cst_19 : f32 to vector<256x1xf32>
    %33 = arith.addf %29, %32 : vector<256x1xf32>
    %34 = math.rsqrt %33 : vector<256x1xf32>
    %35 = vector.broadcast %34 : vector<256x1xf32> to vector<256x128xf32>
    %36 = arith.mulf %31, %35 : vector<256x128xf32>
    %37 = vector.broadcast %17 : vector<1x128xf32> to vector<256x128xf32>
    %38 = arith.mulf %36, %37 : vector<256x128xf32>
    %39 = vector.broadcast %18 : vector<1x128xf32> to vector<256x128xf32>
    %40 = arith.addf %38, %39 : vector<256x128xf32>
    %cst_20 = arith.constant 0.000000e+00 : f32
    %41 = vector.broadcast %cst_20 : f32 to vector<256x128xf32>
    %42 = arith.maximumf %40, %41 : vector<256x128xf32>
    %c0_21 = arith.constant 0 : index
    %c0_22 = arith.constant 0 : index
    %43 = vector.load %arg11[%c0_21, %c0_22] : memref<2x128xf32, #tpu.memory_space<vmem>>, vector<2x128xf32>
    %44 = arith.truncf %42 : vector<256x128xf32> to vector<256x128xbf16>
    %c0_23 = arith.constant 0 : index
    %c0_24 = arith.constant 0 : index
    %45 = vector.load %arg7[%c0_23, %c0_24] : memref<128x128xbf16, #tpu.memory_space<vmem>>, vector<128x128xbf16>
    %cst_25 = arith.constant dense<0.000000e+00> : vector<256x128xf32>
    %46 = tpu.matmul %44, %45, %cst_25 {dimension_numbers = #tpu.dot_dimension_numbers<[1], [0], [0], [1], [0, 0, 1, 1], [], []>} : vector<256x128xbf16>, vector<128x128xbf16>, vector<256x128xf32> -> vector<256x128xf32>
    %47 = vector.extract_strided_slice %43 {offsets = [0, 0], sizes = [1, 128], strides = [1, 1]} : vector<2x128xf32> to vector<1x128xf32>
    %48 = vector.broadcast %47 : vector<1x128xf32> to vector<256x128xf32>
    %49 = arith.addf %46, %48 : vector<256x128xf32>
    %c0_26 = arith.constant 0 : index
    %c0_27 = arith.constant 0 : index
    %50 = vector.load %arg10[%c0_26, %c0_27] : memref<4x32xf32, #tpu.memory_space<vmem>>, vector<4x32xf32>
    %51 = vector.extract_strided_slice %4 {offsets = [0, 128], sizes = [256, 32], strides = [1, 1]} : vector<256x160xf32> to vector<256x32xf32>
    %52 = vector.extract_strided_slice %6 {offsets = [0, 128], sizes = [256, 32], strides = [1, 1]} : vector<256x160xf32> to vector<256x32xf32>
    %53 = arith.addf %51, %52 : vector<256x32xf32>
    %54 = vector.extract_strided_slice %50 {offsets = [3, 0], sizes = [1, 32], strides = [1, 1]} : vector<4x32xf32> to vector<1x32xf32>
    %55 = vector.broadcast %2 : vector<256x1xf32> to vector<256x32xf32>
    %56 = vector.broadcast %54 : vector<1x32xf32> to vector<256x32xf32>
    %57 = arith.mulf %55, %56 : vector<256x32xf32>
    %58 = arith.addf %53, %57 : vector<256x32xf32>
    %59 = vector.extract_strided_slice %50 {offsets = [0, 0], sizes = [1, 32], strides = [1, 1]} : vector<4x32xf32> to vector<1x32xf32>
    %60 = vector.broadcast %59 : vector<1x32xf32> to vector<256x32xf32>
    %61 = arith.addf %58, %60 : vector<256x32xf32>
    %62 = vector.extract_strided_slice %50 {offsets = [1, 0], sizes = [1, 32], strides = [1, 1]} : vector<4x32xf32> to vector<1x32xf32>
    %63 = vector.extract_strided_slice %50 {offsets = [2, 0], sizes = [1, 32], strides = [1, 1]} : vector<4x32xf32> to vector<1x32xf32>
    %cst_28 = arith.constant dense<0.000000e+00> : vector<256xf32>
    %64 = vector.multi_reduction <add>, %61, %cst_28 [1] : vector<256x32xf32> to vector<256xf32>
    %65 = vector.shape_cast %64 : vector<256xf32> to vector<256x1xf32>
    %cst_29 = arith.constant 3.200000e+01 : f32
    %66 = vector.broadcast %cst_29 : f32 to vector<256x1xf32>
    %67 = arith.divf %65, %66 : vector<256x1xf32>
    %68 = vector.broadcast %67 : vector<256x1xf32> to vector<256x32xf32>
    %69 = arith.subf %61, %68 : vector<256x32xf32>
    %70 = arith.mulf %69, %69 : vector<256x32xf32>
    %cst_30 = arith.constant dense<0.000000e+00> : vector<256xf32>
    %71 = vector.multi_reduction <add>, %70, %cst_30 [1] : vector<256x32xf32> to vector<256xf32>
    %72 = vector.shape_cast %71 : vector<256xf32> to vector<256x1xf32>
    %cst_31 = arith.constant 3.200000e+01 : f32
    %73 = vector.broadcast %cst_31 : f32 to vector<256x1xf32>
    %74 = arith.divf %72, %73 : vector<256x1xf32>
    %75 = vector.broadcast %67 : vector<256x1xf32> to vector<256x32xf32>
    %76 = arith.subf %61, %75 : vector<256x32xf32>
    %cst_32 = arith.constant 9.99999974E-6 : f32
    %77 = vector.broadcast %cst_32 : f32 to vector<256x1xf32>
    %78 = arith.addf %74, %77 : vector<256x1xf32>
    %79 = math.rsqrt %78 : vector<256x1xf32>
    %80 = vector.broadcast %79 : vector<256x1xf32> to vector<256x32xf32>
    %81 = arith.mulf %76, %80 : vector<256x32xf32>
    %82 = vector.broadcast %62 : vector<1x32xf32> to vector<256x32xf32>
    %83 = arith.mulf %81, %82 : vector<256x32xf32>
    %84 = vector.broadcast %63 : vector<1x32xf32> to vector<256x32xf32>
    %85 = arith.addf %83, %84 : vector<256x32xf32>
    %cst_33 = arith.constant 0.000000e+00 : f32
    %86 = vector.broadcast %cst_33 : f32 to vector<256x32xf32>
    %87 = arith.maximumf %85, %86 : vector<256x32xf32>
    %88 = arith.truncf %87 : vector<256x32xf32> to vector<256x32xbf16>
    %c0_34 = arith.constant 0 : index
    %c0_35 = arith.constant 0 : index
    %89 = vector.load %arg8[%c0_34, %c0_35] : memref<32x128xbf16, #tpu.memory_space<vmem>>, vector<32x128xbf16>
    %cst_36 = arith.constant dense<0.000000e+00> : vector<256x128xf32>
    %90 = tpu.matmul %88, %89, %cst_36 {dimension_numbers = #tpu.dot_dimension_numbers<[1], [0], [0], [1], [0, 0, 1, 1], [], []>} : vector<256x32xbf16>, vector<32x128xbf16>, vector<256x128xf32> -> vector<256x128xf32>
    %91 = vector.extract_strided_slice %43 {offsets = [1, 0], sizes = [1, 128], strides = [1, 1]} : vector<2x128xf32> to vector<1x128xf32>
    %92 = vector.broadcast %91 : vector<1x128xf32> to vector<256x128xf32>
    %93 = arith.addf %90, %92 : vector<256x128xf32>
    %94 = arith.negf %93 : vector<256x128xf32>
    %95 = math.exp %94 : vector<256x128xf32>
    %cst_37 = arith.constant 1.000000e+00 : f32
    %96 = vector.broadcast %cst_37 : f32 to vector<256x128xf32>
    %97 = arith.addf %96, %95 : vector<256x128xf32>
    %98 = arith.divf %96, %97 : vector<256x128xf32>
    %99 = arith.mulf %49, %98 : vector<256x128xf32>
    %c0_38 = arith.constant 0 : index
    %c0_39 = arith.constant 0 : index
    %100 = vector.load %arg12[%c0_38, %c0_39] : memref<256x128xf32, #tpu.memory_space<vmem>>, vector<256x128xf32>
    tpu.vector_store %arg12[%c0_38, %c0_39], %99 {strides = array<i32>} : memref<256x128xf32, #tpu.memory_space<vmem>>, vector<256x128xf32>,
    return
  }
  func.func @transform_0(%arg0: i32) -> (i32, i32) {
    %c0_i32 = arith.constant 0 : i32
    %c0_i32_0 = arith.constant 0 : i32
    return %arg0, %c0_i32 : i32, i32
  }
  func.func @transform_1(%arg0: i32) -> (i32, i32) {
    %c0_i32 = arith.constant 0 : i32
    %c0_i32_0 = arith.constant 0 : i32
    return %arg0, %c0_i32 : i32, i32
  }
  func.func @transform_2(%arg0: i32) -> (i32, i32) {
    %c0_i32 = arith.constant 0 : i32
    %c0_i32_0 = arith.constant 0 : i32
    return %arg0, %c0_i32 : i32, i32
  }
  func.func @transform_3(%arg0: i32) -> (i32, i32) {
    %c0_i32 = arith.constant 0 : i32
    %c0_i32_0 = arith.constant 0 : i32
    %c0_i32_1 = arith.constant 0 : i32
    return %c0_i32, %c0_i32_0 : i32, i32
  }
  func.func @transform_4(%arg0: i32) -> (i32, i32) {
    %c0_i32 = arith.constant 0 : i32
    %c0_i32_0 = arith.constant 0 : i32
    %c0_i32_1 = arith.constant 0 : i32
    return %c0_i32, %c0_i32_0 : i32, i32
  }
  func.func @transform_5(%arg0: i32) -> (i32, i32) {
    %c0_i32 = arith.constant 0 : i32
    %c0_i32_0 = arith.constant 0 : i32
    %c0_i32_1 = arith.constant 0 : i32
    return %c0_i32, %c0_i32_0 : i32, i32
  }
  func.func @transform_6(%arg0: i32) -> (i32, i32) {
    %c0_i32 = arith.constant 0 : i32
    %c0_i32_0 = arith.constant 0 : i32
    %c0_i32_1 = arith.constant 0 : i32
    return %c0_i32, %c0_i32_0 : i32, i32
  }
  func.func @transform_7(%arg0: i32) -> (i32, i32) {
    %c0_i32 = arith.constant 0 : i32
    %c0_i32_0 = arith.constant 0 : i32
    %c0_i32_1 = arith.constant 0 : i32
    return %c0_i32, %c0_i32_0 : i32, i32
  }
  func.func @transform_8(%arg0: i32) -> (i32, i32) {
    %c0_i32 = arith.constant 0 : i32
    %c0_i32_0 = arith.constant 0 : i32
    %c0_i32_1 = arith.constant 0 : i32
    return %c0_i32, %c0_i32_0 : i32, i32
  }
  func.func @transform_9(%arg0: i32) -> (i32, i32) {
    %c0_i32 = arith.constant 0 : i32
    %c0_i32_0 = arith.constant 0 : i32
    %c0_i32_1 = arith.constant 0 : i32
    return %c0_i32, %c0_i32_0 : i32, i32
  }
  func.func @transform_10(%arg0: i32) -> (i32, i32) {
    %c0_i32 = arith.constant 0 : i32
    %c0_i32_0 = arith.constant 0 : i32
    %c0_i32_1 = arith.constant 0 : i32
    return %c0_i32, %c0_i32_0 : i32, i32
  }
  func.func @transform_11(%arg0: i32) -> (i32, i32) {
    %c0_i32 = arith.constant 0 : i32
    %c0_i32_0 = arith.constant 0 : i32
    return %arg0, %c0_i32 : i32, i32
  }
}

</mosaic_0001>

<bundles_post_ra>
// kernel: tpu_custom_call.1
= control target key start
LH: loop header
LB: loop body
LE: loop exit
PB: predicated region body
PF: predicated region fallthrough
CT: control target
= control target key end

     0   :  { %16 = vsyncpa [#allocation3], 0  ;;  %s6122_s0 = inlined_call_operand.vmem [shape: bf16[512,32], index: 0, kind: input, shape index: {}]   ;;  %s6123_s1 = inlined_call_operand.vmem [shape: bf16[512,32], index: 1, kind: input, shape index: {}]   ;;  %s6124_s2 = inlined_call_operand.vmem [shape: f32[512,1], index: 2, kind: input, shape index: {}]   ;;  %s6125_s3 = inlined_call_operand.vmem [shape: bf16[32,160], index: 3, kind: input, shape index: {}]   ;;  %s6126_s4 = inlined_call_operand.vmem [shape: bf16[32,160], index: 4, kind: input, shape index: {}]   ;;  %s6127_s5 = inlined_call_operand.vmem [shape: bf16[128,128], index: 5, kind: input, shape index: {}]   ;;  %s6128_s6 = inlined_call_operand.vmem [shape: bf16[128,128], index: 6, kind: input, shape index: {}]   ;;  %s6129_s7 = inlined_call_operand.vmem [shape: bf16[32,128], index: 7, kind: input, shape index: {}]   ;;  %s6130_s8 = inlined_call_operand.vmem [shape: f32[3,128], index: 8, kind: input, shape index: {}]   ;;  %s6131_s9 = inlined_call_operand.vmem [shape: f32[4,32], index: 9, kind: input, shape index: {}]   ;;  %s6132_s10 = inlined_call_operand.vmem [shape: f32[2,128], index: 10, kind: input, shape index: {}]   ;;  %s6133_s11 = inlined_call_operand.hbm [shape: f32[512,128], index: 11, kind: output, shape index: {}]  }
   0x1   :  { %18 = vsyncpa [#allocation3 + $0x1], 0  ;;  %s4469_s17 = smov 0   ;;  %s4471_s18 = smov 0  }
   0x2   :  { %s4473_s19 = smov 0   ;;  %s4475_s20 = smov 0  }
   0x3 LB: > { %s4490_s21 = sadd.s32 4294967295, %s4403_s20   ;;  %s3620_s22 = sadd.s32 4294967294, %s4403_s20   ;;  %s4403_s20 = sphi %s4475_s20, %s6220_s20   ;;  %s4399_s19 = sphi %s4473_s19, %s6219_s19   ;;  %s4395_s18 = sphi %s4471_s18, %s6218_s18   ;;  %s4391_s17 = sphi %s4469_s17, %s6217_s17  }
   0x4   : > { %s4494_s23 = sadd.s32 1, %s4403_s20   ;;  %s277_s24 = sadd.s32 1, %s4399_s19 }
   0x5   : > { %s274_s25 = ssub.s32 %s4403_s20, %s4494_s23  ;;  %p287_p0 = scmp.ne.s32.totalorder %s4399_s19, %s4395_s18 }
   0x6   : > { %p275_p1 = scmp.eq.s32.totalorder %s274_s25, 0  ;;  %p288_p2 = scmp.eq.s32.totalorder %s4490_s21, 1 }
   0x7   : > { %p293_p3 = scmp.ne.s32.totalorder %s4395_s18, %s4391_s17  ;;  %p294_p4 = scmp.eq.s32.totalorder %s3620_s22, 1 }
   0x8   : > { %s4505_s26 = scalar_select %p275_p1, %s4399_s19, %s277_s24  }
   0x9   : > { %p4507_p5 = por %p288_p2, %p287_p0  ;;  %p4511_p6 = por %p294_p4, %p293_p3 }
   0xa   : > { %p3623_p7 = scmp.ge.s32.totalorder %s4403_s20, 1  ;;  %p363_p8 = scmp.lt.s32.totalorder %s4403_s20, 3 }
   0xc   : > { %p364_p9 = pnand %p3623_p7, %p363_p8 }
   0xe   : > { %367 = sbr.rel (%p364_p9) target bundleno = 1174 (0x496), region = 64 }
  0x15   : > { %v4021_v0 = vld [vmem:[%s6125_s3 + $0x4] ss:$8 sps:$4 sm:$0xff]   ;;  %s3625_s12 = sshll.u32 %s4490_s21, 5  ;;  %v4023_v1 = vld [vmem:[%s6125_s3] ss:$8 sps:$4 sm:$0xff]   ;;  %v4405_v2 = vmov 0  }
  0x16   : > { %834 = vmatprep.mubr.bf16.mxu1 %v4405_v2  ;;  %p414_p10 = scmp.lt.s32.totalorder %s3625_s12, 63  ;;  %714 = vmatprep.mubr.bf16.mxu0 %v4405_v2  ;;  %v4024_v3 = vld [vmem:[%s6125_s3 + $0x14] ss:$8 sps:$4 sm:$0xff]   ;;  %v4026_v4 = vld [vmem:[%s6125_s3 + $0x10] ss:$8 sps:$4 sm:$0xff]   ;;  %vm633_vm0 = vcmask 261120  }
  0x17   : > { %3973 = vmatprep.subr.bf16.mxu1 %v4021_v0  ;;  %682 = vmatprep.subr.bf16.mxu0 %v4021_v0  ;;  %v4030_v5 = vld [vmem:[%s6126_s4 + $0x4] ss:$8 sps:$4 sm:$0xff]   ;;  %v4028_v6 = vld [vmem:[%s6126_s4] ss:$8 sps:$4 sm:$0xff]   ;;  %v4035_v8 = vld [vmem:[%s6126_s4 + $0x14] ss:$8 sps:$4 sm:$0xff]  }
  0x18   : > { %3975 = vmatpush1.bf16.msra.mxu1 %v4023_v1  ;;  %s6222_s12 = smov (!%p414_p10, %s3625_s12), 63  ;;  %683 = vmatpush1.bf16.msra.mxu0 %v4023_v1  ;;  %v4033_v9 = vld [vmem:[%s6126_s4 + $0x10] ss:$8 sps:$4 sm:$0xff]   ;;  %v4065_v32 = vld [vmem:[%s6127_s5] sm:$0xff]   ;;  %v4066_v1 = vld [vmem:[%s6127_s5 + $0x8] sm:$0xff]  }
  0x19   : > { %3974 = vmatprep.subr.bf16.mxu1 %v4024_v3  ;;  %684 = vmatprep.subr.bf16.mxu0 %v4024_v3  ;;  %s3626_s30 = sshll.u32 %s6222_s12, 2 }
  0x1a   : > { %4019 = vset.pattern.permute.xlu0 %v4405_v2  ;;  %4020 = vset.pattern.permute.xlu1 %v4405_v2  ;;  %s4546_s22 = scalar_lea.vmem %s6122_s0, %s3626_s30  ;;  %s4559_s16 = scalar_lea.vmem %s6123_s1, %s3626_s30 }
  0x1b   : > { %v4027_v7 = vld [vmem:[%s4546_s22 + $0x60] sm:$0xff]   ;;  %v4031_v11 = vld [vmem:[%s4546_s22 + $0x68] sm:$0xff]   ;;  %v4032_v13 = vld [vmem:[%s4546_s22 + $0x70] sm:$0xff]   ;;  %s3630_s30 = sshll.u32 %s6222_s12, 3  ;;  %s3774_s12 = sshll.u32 %s4490_s21, 12 }
  0x1c   : > { %3976 = vmatpush1.bf16.msra.mxu1 %v4026_v4  ;;  %685 = vmatpush1.bf16.msra.mxu0 %v4026_v4  ;;  %v4037_v10 = vld [vmem:[%s4546_s22] sm:$0xff]   ;;  %v4039_v12 = vld [vmem:[%s4546_s22 + $0x8] sm:$0xff]   ;;  %v4041_v14 = vld [vmem:[%s4546_s22 + $0x10] sm:$0xff]   ;;  %s4582_s29 = scalar_lea.vmem %s6124_s2, %s3630_s30  ;;  %s6072_s21 = scalar_lea.hbm %s6133_s11, %s3774_s12 }
  0x1d   : > { %1027 = vmatprep.subr.bf16.mxu1 %v4030_v5  ;;  %v4036_v15 = vld [vmem:[%s4546_s22 + $0x78] sm:$0xff]   ;;  %v497_v17 = vld [vmem:[%s4582_s29] sm:$0xff]  ;;  %v498_v18 = vld [vmem:[%s4582_s29 + $0x8] sm:$0xff]  ;;  %3841 = vmatprep.subr.bf16.mxu0 %v4065_v32 }
  0x1e   : > { %v4043_v16 = vld [vmem:[%s4546_s22 + $0x18] sm:$0xff]   ;;  %2236 = vperm.xlu0 %4019, %v497_v17   ;;  %v499_v19 = vld [vmem:[%s4582_s29 + $0x10] sm:$0xff]  ;;  %v4038_v21 = vld [vmem:[%s4559_s16] sm:$0xff]  }
  0x1f   : > { %3663 = vmatmul.mubr.msk.bf16.vlgmr.msra.gmra.mrb[0].mxu1 %vm633_vm0, %v4027_v7  ;;  %3651 = vmatmul.mubr.msk.bf16.vlgmr.msra.gmra.mrb[0].mxu0 %vm633_vm0, %v4037_v10  ;;  %v500_v20 = vld [vmem:[%s4582_s29 + $0x18] sm:$0xff]  ;;  %v501_v22 = vld [vmem:[%s4582_s29 + $0x20] sm:$0xff]  ;;  %v502_v24 = vld [vmem:[%s4582_s29 + $0x28] sm:$0xff] }
  0x20   : > { %1028 = vmatpush1.bf16.msra.mxu1 %v4028_v6  ;;  %844 = vmatprep.mubr.bf16.mxu1 %v4405_v2  ;;  %v4045_v23 = vld [vmem:[%s4546_s22 + $0x20] sm:$0xff]   ;;  %v503_v25 = vld [vmem:[%s4582_s29 + $0x30] sm:$0xff]  ;;  %v504_v26 = vld [vmem:[%s4582_s29 + $0x38] sm:$0xff] }
  0x21   : > { %1029 = vmatprep.subr.bf16.mxu1 %v4035_v8  ;;  %724 = vmatprep.mubr.bf16.mxu0 %v4405_v2  ;;  %v4040_v27 = vld [vmem:[%s4559_s16 + $0x8] sm:$0xff]   ;;  %v505_v28 = vld [vmem:[%s4582_s29 + $0x40] sm:$0xff]  ;;  %v507_v31 = vld [vmem:[%s4582_s29 + $0x50] sm:$0xff] }
  0x22   : > { %2246 = vperm.xlu1 %4020, %v499_v19   ;;  %2241 = vperm.xlu0 %4019, %v498_v18   ;;  %v4047_v29 = vld [vmem:[%s4546_s22 + $0x28] sm:$0xff]   ;;  %v508_v33 = vld [vmem:[%s4582_s29 + $0x58] sm:$0xff]  ;;  %v4042_v34 = vld [vmem:[%s4559_s16 + $0x10] sm:$0xff]  }
  0x23   : > { %v506_v30 = vld [vmem:[%s4582_s29 + $0x48] sm:$0xff]  ;;  %3842 = vmatpush3.bf16.msra.mxu0 %v4065_v32  ;;  %v509_v35 = vld [vmem:[%s4582_s29 + $0x60] sm:$0xff]  ;;  %v4049_v36 = vld [vmem:[%s4546_s22 + $0x30] sm:$0xff]  }
  0x24   : > { %1030 = vmatpush1.bf16.msra.mxu1 %v4033_v9  ;;  %v510_v37 = vld [vmem:[%s4582_s29 + $0x68] sm:$0xff]  ;;  %v511_v38 = vld [vmem:[%s4582_s29 + $0x70] sm:$0xff]  ;;  %v512_v39 = vld [vmem:[%s4582_s29 + $0x78] sm:$0xff]  ;;  %3843 = vmatprep.subr.bf16.mxu0 %v4066_v1 }
  0x25   : > { %v4044_v40 = vld [vmem:[%s4559_s16 + $0x18] sm:$0xff]   ;;  %v513_v41 = vld [vmem:[%s4582_s29 + $0x80] sm:$0xff]  ;;  %v514_v43 = vld [vmem:[%s4582_s29 + $0x88] sm:$0xff] }
  0x26   : > { %2251 = vperm.xlu1 %4020, %v500_v20   ;;  %2256 = vperm.xlu0 %4019, %v501_v22   ;;  %v4051_v42 = vld [vmem:[%s4546_s22 + $0x38] sm:$0xff]   ;;  %v515_v44 = vld [vmem:[%s4582_s29 + $0x90] sm:$0xff]  ;;  %v4046_v46 = vld [vmem:[%s4559_s16 + $0x20] sm:$0xff]  }
  0x27   : > { %3664 = vmatmul.mubr.msk.bf16.gmra.mrb[4].mxu1 %vm633_vm0, %v4031_v11  ;;  %3652 = vmatmul.mubr.msk.bf16.gmra.mrb[4].mxu0 %vm633_vm0, %v4039_v12  ;;  %v516_v45 = vld [vmem:[%s4582_s29 + $0x98] sm:$0xff]  ;;  %v517_v47 = vld [vmem:[%s4582_s29 + $0xa0] sm:$0xff]  ;;  %v518_v49 = vld [vmem:[%s4582_s29 + $0xa8] sm:$0xff] }
  0x28   : > { %854 = vmatprep.mubr.bf16.mxu1 %v4405_v2  ;;  %734 = vmatprep.mubr.bf16.mxu0 %v4405_v2  ;;  %v4053_v48 = vld [vmem:[%s4546_s22 + $0x40] sm:$0xff]   ;;  %v519_v50 = vld [vmem:[%s4582_s29 + $0xb0] sm:$0xff]  ;;  %v520_v51 = vld [vmem:[%s4582_s29 + $0xb8] sm:$0xff] }
  0x29   : > { %v4048_v52 = vld [vmem:[%s4559_s16 + $0x28] sm:$0xff]   ;;  %v521_v53 = vld [vmem:[%s4582_s29 + $0xc0] sm:$0xff]  ;;  %v523_v56 = vld [vmem:[%s4582_s29 + $0xd0] sm:$0xff]  ;;  %3844 = vmatpush3.bf16.msra.mxu0 %v4066_v1 }
  0x2a   : > { %2261 = vperm.xlu1 %4020, %v502_v24   ;;  %2266 = vperm.xlu0 %4019, %v503_v25   ;;  %v4055_v54 = vld [vmem:[%s4546_s22 + $0x48] sm:$0xff]   ;;  %v524_v57 = vld [vmem:[%s4582_s29 + $0xd8] sm:$0xff]  ;;  %v4050_v58 = vld [vmem:[%s4559_s16 + $0x30] sm:$0xff]  }
  0x2b   : > { %v522_v55 = vld [vmem:[%s4582_s29 + $0xc8] sm:$0xff]  ;;  %v525_v59 = vld [vmem:[%s4582_s29 + $0xe0] sm:$0xff]  ;;  %v4057_v60 = vld [vmem:[%s4546_s22 + $0x50] sm:$0xff]  }
  0x2c   : > { %v526_v61 = vld [vmem:[%s4582_s29 + $0xe8] sm:$0xff]  ;;  %v527_v62 = vld [vmem:[%s4582_s29 + $0xf0] sm:$0xff]  ;;  %v528_v63 = vld [vmem:[%s4582_s29 + $0xf8] sm:$0xff] }
  0x2d   : > { %v4052_v0 = vld [vmem:[%s4559_s16 + $0x38] sm:$0xff]   ;;  %v4054_v4 = vld [vmem:[%s4559_s16 + $0x40] sm:$0xff]   ;;  %v4056_v5 = vld [vmem:[%s4559_s16 + $0x48] sm:$0xff]  }
  0x2e   : > { %2271 = vperm.xlu1 %4020, %v504_v26   ;;  %2276 = vperm.xlu0 %4019, %v505_v28   ;;  %v4059_v3 = vld [vmem:[%s4546_s22 + $0x58] sm:$0xff]   ;;  %v4067_v6 = vld [vmem:[%s6127_s5 + $0x10] sm:$0xff]   ;;  %v4069_v9 = vld [vmem:[%s6127_s5 + $0x20] sm:$0xff]   ;;  %s4406_s22 = smov [#allocation2]  }
  0x2f   : > { %3665 = vmatmul.mubr.msk.bf16.gmra.mrb[8].mxu1 %vm633_vm0, %v4032_v13  ;;  %3653 = vmatmul.mubr.msk.bf16.gmra.mrb[8].mxu0 %vm633_vm0, %v4041_v14  ;;  %v4058_v7 = vld [vmem:[%s4559_s16 + $0x50] sm:$0xff]   ;;  %v4068_v8 = vld [vmem:[%s6127_s5 + $0x18] sm:$0xff]   ;;  %v4070_v11 = vld [vmem:[%s6127_s5 + $0x28] sm:$0xff]  }
  0x30   : > { %864 = vmatprep.mubr.bf16.mxu1 %v4405_v2  ;;  %744 = vmatprep.mubr.bf16.mxu0 %v4405_v2  ;;  %v4060_v10 = vld [vmem:[%s4559_s16 + $0x58] sm:$0xff]   ;;  %v4071_v12 = vld [vmem:[%s6127_s5 + $0x30] sm:$0xff]   ;;  %v4061_v13 = vld [vmem:[%s4559_s16 + $0x60] sm:$0xff]  }
  0x31   : > { %3845 = vmatprep.subr.bf16.mxu0 %v4067_v6  ;;  %v4072_v14 = vld [vmem:[%s6127_s5 + $0x38] sm:$0xff]  }
  0x32   : > { %2281 = vperm.xlu1 %4020, %v506_v30   ;;  %2286 = vperm.xlu0 %4019, %v507_v31   ;;  %v4064_v17 = vld [vmem:[%s4559_s16 + $0x78] sm:$0xff]  }
  0x33   : > { %3846 = vmatpush3.bf16.msra.mxu0 %v4067_v6 }
  0x34   : > { %3847 = vmatprep.subr.bf16.mxu0 %v4068_v8 }
  0x36   : > { %2291 = vperm.xlu1 %4020, %v508_v33   ;;  %2296 = vperm.xlu0 %4019, %v509_v35  }
  0x37   : > { %3666 = vmatmul.mubr.msk.bf16.gmra.mrb[12].mxu1 %vm633_vm0, %v4036_v15  ;;  %3654 = vmatmul.mubr.msk.bf16.gmra.mrb[12].mxu0 %vm633_vm0, %v4043_v16  ;;  %v4062_v15 = vld [vmem:[%s4559_s16 + $0x68] sm:$0xff]   ;;  %v4063_v16 = vld [vmem:[%s4559_s16 + $0x70] sm:$0xff]   ;;  %s410_s16 = sand.u32 1, %s4395_s18  }
  0x38   : > { %1059 = vmatprep.mubr.bf16.mxu1 %v4405_v2  ;;  %754 = vmatprep.mubr.bf16.mxu0 %v4405_v2  ;;  %s3624_s25 = sshll.u32 %s410_s16, 8  ;;  %s6081_s30 = scalar_lea.sflag [#allocation3], %s410_s16 }
  0x39   : > { %3848 = vmatpush3.bf16.msra.mxu0 %v4068_v8  ;;  %s5960_s29 = scalar_lea.vmem [#allocation2], %s3624_s25  ;;  %s4345_s25 = sshll.u32 %s4406_s22, 4  ;;  %s4346_s25 = int_to_ptr.vmem [resolvable:$false] %s4345_s25 }
  0x3a   : > { %2301 = vperm.xlu1 %4020, %v510_v37   ;;  %2306 = vperm.xlu0 %4019, %v511_v38   ;;  %s3534_s13 = sshll.u32 %s5960_s29, 4  ;;  %s4347_s12 = scalar_lea.vmem %s4346_s25, 8192  ;;  %s6074_s13 = int_to_ptr.vmem [resolvable:$true] %s3534_s13 }
  0x3b   : > { %3849 = vmatprep.subr.bf16.mxu0 %v4069_v9  ;;  %s4341_s24 = scalar_lea.vmem %s6074_s13, 4096  ;;  %p4348_p0 = scmp.lt.s32.totalorder %s6074_s13, %s4346_s25 }
  0x3c   : > { %p4342_p11 = scmp.ne.s32.totalorder %s6074_s13, %s4341_s24  ;;  %p4349_p1 = scmp.lt.s32.totalorder %s4347_s12, %s4341_s24 }
  0x3d   : > { %3850 = vmatpush3.bf16.msra.mxu0 %v4069_v9 }
  0x3e   : > { %2311 = vperm.xlu1 %4020, %v512_v39   ;;  %2316 = vperm.xlu0 %4019, %v513_v41   ;;  %p4343_p12 = pnand %p4342_p11, %p4507_p5  ;;  %p4350_p2 = por %p4349_p1, %p4348_p0 }
  0x3f   : > { %3687 = vmatmul.mubr.msk.bf16.vlgmr.msra.gmra.mrb[16].mxu1 %vm633_vm0, %v4038_v21  ;;  %3655 = vmatmul.mubr.msk.bf16.gmra.mrb[16].mxu0 %vm633_vm0, %v4045_v23 }
  0x40   : > { %1069 = vmatprep.mubr.bf16.mxu1 %v4405_v2  ;;  %764 = vmatprep.mubr.bf16.mxu0 %v4405_v2  ;;  %p4344_p13 = pneg %p4343_p12 }
  0x41   : > { %3851 = vmatprep.subr.bf16.mxu0 %v4070_v11 }
  0x42   : > { %2321 = vperm.xlu1 %4020, %v514_v43   ;;  %2326 = vperm.xlu0 %4019, %v515_v44   ;;  %p4351_p3 = pnand %p4350_p2, %p4344_p13 }
  0x43   : > { %3852 = vmatpush3.bf16.msra.mxu0 %v4070_v11 }
  0x44   : > { %3853 = vmatprep.subr.bf16.mxu0 %v4071_v12 }
  0x46   : > { %2331 = vperm.xlu1 %4020, %v516_v45   ;;  %2336 = vperm.xlu0 %4019, %v517_v47  }
  0x47   : > { %3688 = vmatmul.mubr.msk.bf16.gmra.mrb[20].mxu1 %vm633_vm0, %v4040_v27  ;;  %3656 = vmatmul.mubr.msk.bf16.gmra.mrb[20].mxu0 %vm633_vm0, %v4047_v29 }
  0x48   : > { %1079 = vmatprep.mubr.bf16.mxu1 %v4405_v2  ;;  %774 = vmatprep.mubr.bf16.mxu0 %v4405_v2 }
  0x49   : > { %3854 = vmatpush3.bf16.msra.mxu0 %v4071_v12 }
  0x4a   : > { %2341 = vperm.xlu1 %4020, %v518_v49   ;;  %2346 = vperm.xlu0 %4019, %v519_v50  }
  0x4b   : > { %3855 = vmatprep.subr.bf16.mxu0 %v4072_v14 }
  0x4d   : > { %3856 = vmatpush3.bf16.msra.mxu0 %v4072_v14 }
  0x4e   : > { %2351 = vperm.xlu1 %4020, %v520_v51   ;;  %2356 = vperm.xlu0 %4019, %v521_v53  }
  0x4f   : > { %3689 = vmatmul.mubr.msk.bf16.gmra.mrb[24].mxu1 %vm633_vm0, %v4042_v34  ;;  %3657 = vmatmul.mubr.msk.bf16.gmra.mrb[24].mxu0 %vm633_vm0, %v4049_v36  ;;  %v1285_v34 = vlaneseq }
  0x50   : > { %1089 = vmatprep.mubr.bf16.mxu1 %v4405_v2  ;;  %784 = vmatprep.mubr.bf16.mxu0 %v4405_v2 }
  0x51   : > { %v4743_v39 = vshrl.u32 %v1285_v34, 7 }
  0x52   : > { %2361 = vperm.xlu1 %4020, %v522_v55   ;;  %2366 = vperm.xlu0 %4019, %v523_v56  }
  0x53   : > { %6164 = vst [vmem:[#allocation5_spill] sm:$0xff] %v4743_v39  ;;  %v2396_v44 = vsub.s32 3, %v4743_v39 }
  0x56   : > { %2371 = vperm.xlu1 %4020, %v524_v57   ;;  %2376 = vperm.xlu0 %4019, %v525_v59  }
  0x57   : > { %3690 = vmatmul.mubr.msk.bf16.gmra.mrb[28].mxu1 %vm633_vm0, %v4044_v40  ;;  %3658 = vmatmul.mubr.msk.bf16.gmra.mrb[28].mxu0 %vm633_vm0, %v4051_v42 }
  0x58   : > { %1099 = vmatprep.mubr.bf16.mxu1 %v4405_v2  ;;  %794 = vmatprep.mubr.bf16.mxu0 %v4405_v2 }
  0x5a   : > { %2381 = vperm.xlu1 %4020, %v526_v61   ;;  %2386 = vperm.xlu0 %4019, %v527_v62  }
  0x5e   : > { %2391 = vperm.xlu1 %4020, %v528_v63  }
  0x5f   : > { %3691 = vmatmul.mubr.msk.bf16.gmra.mrb[32].mxu1 %vm633_vm0, %v4046_v46  ;;  %3659 = vmatmul.mubr.msk.bf16.gmra.mrb[32].mxu0 %vm633_vm0, %v4053_v48  ;;  %v2201_v46 = vld [vmem:[%s6131_s9] sm:$0xf] }
  0x60   : > { %1109 = vmatprep.mubr.bf16.mxu1 %v4405_v2  ;;  %804 = vmatprep.mubr.bf16.mxu0 %v4405_v2  ;;  %v4765_v51 = vrot.slane %v2201_v46, %v2396_v44 }
  0x67   : > { %3692 = vmatmul.mubr.msk.bf16.gmra.mrb[36].mxu1 %vm633_vm0, %v4048_v52  ;;  %3660 = vmatmul.mubr.msk.bf16.gmra.mrb[36].mxu0 %vm633_vm0, %v4055_v54  ;;  %v4772_v54 = vsub.s32 0, %v4743_v39 }
  0x68   : > { %1119 = vmatprep.mubr.bf16.mxu1 %v4405_v2  ;;  %814 = vmatprep.mubr.bf16.mxu0 %v4405_v2 }
  0x69   : > { %6165 = vst [vmem:[#allocation6_spill] sm:$0xff] %v4772_v54  ;;  %v4779_v1 = vrot.slane %v2201_v46, %v4772_v54 }
  0x6f   : > { %3693 = vmatmul.mubr.msk.bf16.gmra.mrb[40].mxu1 %vm633_vm0, %v4050_v58  ;;  %3661 = vmatmul.mubr.msk.bf16.gmra.mrb[40].mxu0 %vm633_vm0, %v4057_v60 }
  0x70   : > { %1129 = vmatprep.mubr.bf16.mxu1 %v4405_v2  ;;  %824 = vmatprep.mubr.bf16.mxu0 %v4405_v2 }
  0x77   : > { %3694 = vmatmul.mubr.msk.bf16.gmra.mrb[44].mxu1 %vm633_vm0, %v4052_v0  ;;  %3662 = vmatmul.mubr.msk.bf16.gmra.mrb[44].mxu0 %vm633_vm0, %v4059_v3 }
  0x78   : > { %1139 = vmatprep.mubr.bf16.mxu1 %v4405_v2 }
  0x7f   : > { %3695 = vmatmul.mubr.msk.bf16.gmra.mrb[48].mxu1 %vm633_vm0, %v4054_v4 }
  0x80   : > { %1149 = vmatprep.mubr.bf16.mxu1 %v4405_v2 }
  0x87   : > { %3696 = vmatmul.mubr.msk.bf16.gmra.mrb[52].mxu1 %vm633_vm0, %v4056_v5 }
  0x88   : > { %1159 = vmatprep.mubr.bf16.mxu1 %v4405_v2 }
  0x8f   : > { %3697 = vmatmul.mubr.msk.bf16.gmra.mrb[56].mxu1 %vm633_vm0, %v4058_v7 }
  0x90   : > { %1169 = vmatprep.mubr.bf16.mxu1 %v4405_v2 }
  0x97   : > { %3698 = vmatmul.mubr.msk.bf16.gmra.mrb[60].mxu1 %vm633_vm0, %v4060_v10 }
  0x98   : > { %1179 = vmatprep.mubr.bf16.mxu1 %v4405_v2 }
  0x9d   : > { %v2237_v47 = vpop.permute.xlu0 %2236 }
  0x9e   : > { %v2398_v57 = vmul.f32 %v4765_v51, %v2237_v47 }
  0x9f   : > { %3699 = vmatmul.mubr.msk.bf16.gmra.mrb[64].mxu1 %vm633_vm0, %v4061_v13 }
  0xa0   : > { %1189 = vmatprep.mubr.bf16.mxu1 %v4405_v2 }
  0xa1   : > { %v2242_v56 = vpop.permute.xlu0 %2241  ;;  %v2247_v61 = vpop.permute.xlu1 %2246 }
  0xa2   : > { %v2399_v0 = vmul.f32 %v4765_v51, %v2242_v56 }
  0xa5   : > { %v2252_v14 = vpop.permute.xlu1 %2251 }
  0xa6   : > { %v2401_v44 = vmul.f32 %v4765_v51, %v2252_v14 }
  0xa7   : > { %3700 = vmatmul.mubr.msk.bf16.gmra.mrb[68].mxu1 %vm633_vm0, %v4062_v15  ;;  %v2400_v15 = vmul.f32 %v4765_v51, %v2247_v61  ;;  %v2257_v61 = vpop.permute.xlu0 %2256 }
  0xa8   : > { %1199 = vmatprep.mubr.bf16.mxu1 %v4405_v2 }
  0xaf   : > { %3701 = vmatmul.mubr.msk.bf16.gmra.mrb[72].mxu1 %vm633_vm0, %v4063_v16 }
  0xb0   : > { %1209 = vmatprep.mubr.bf16.mxu1 %v4405_v2 }
  0xb7   : > { %3702 = vmatmul.mubr.msk.bf16.gmra.mrb[76].mxu1 %vm633_vm0, %v4064_v17 }
  0xf2   : > { %v4715_v18 = vpop.f32.mrb[0].mxu1  ;;  %v716_v22 = vpop.f32.mrb[0].mxu0 }
  0xf3   : > { %v4717_v19 = vpop.f32.mrb[1].mxu1  ;;  %v718_v23 = vpop.f32.mrb[1].mxu0 }
  0xf4   : > { %v4719_v20 = vpop.f32.mrb[2].mxu1  ;;  %v720_v24 = vpop.f32.mrb[2].mxu0 }
  0xf5   : > { %v4721_v21 = vpop.f32.mrb[3].mxu1  ;;  %v722_v25 = vpop.f32.mrb[3].mxu0 }
  0xfa   : > { %v4723_v26 = vpop.f32.mrb[4].mxu1  ;;  %v726_v29 = vpop.f32.mrb[4].mxu0 }
  0xfb   : > { %v4725_v27 = vpop.f32.mrb[5].mxu1  ;;  %v728_v30 = vpop.f32.mrb[5].mxu0 }
  0xfc   : > { %v4727_v2 = vpop.f32.mrb[6].mxu1  ;;  %v730_v31 = vpop.f32.mrb[6].mxu0 }
  0xfd   : > { %v4729_v28 = vpop.f32.mrb[7].mxu1  ;;  %v4731_v32 = vpop.f32.mrb[7].mxu0 }
 0x102   : > { %v4733_v33 = vpop.f32.mrb[8].mxu1  ;;  %v4741_v38 = vpop.f32.mrb[8].mxu0 }
 0x103   : > { %v4735_v35 = vpop.f32.mrb[9].mxu1  ;;  %v4745_v40 = vpop.f32.mrb[9].mxu0 }
 0x104   : > { %v4737_v36 = vpop.f32.mrb[10].mxu1  ;;  %v4747_v41 = vpop.f32.mrb[10].mxu0 }
 0x105   : > { %v4739_v37 = vpop.f32.mrb[11].mxu1  ;;  %v4749_v42 = vpop.f32.mrb[11].mxu0 }
 0x10a   : > { %v4751_v43 = vpop.f32.mrb[12].mxu1  ;;  %v4763_v50 = vpop.f32.mrb[12].mxu0 }
 0x10b   : > { %v4754_v45 = vpop.f32.mrb[13].mxu1  ;;  %v4767_v52 = vpop.f32.mrb[13].mxu0 }
 0x10c   : > { %v4759_v48 = vpop.f32.mrb[14].mxu1  ;;  %v4769_v53 = vpop.f32.mrb[14].mxu0 }
 0x10d   : > { %v4761_v49 = vpop.f32.mrb[15].mxu1  ;;  %v4774_v55 = vpop.f32.mrb[15].mxu0 }
 0x112   : > { %v1061_v58 = vpop.f32.mrb[16].mxu1  ;;  %v4781_v5 = vpop.f32.mrb[16].mxu0 }
 0x113   : > { %v1220_v59 = vmul.f32 %v1061_v58, %v716_v22  ;;  %v1063_v60 = vpop.f32.mrb[17].mxu1  ;;  %v4783_v8 = vpop.f32.mrb[17].mxu0 }
 0x114   : > { %v2202_v62 = vadd.f32 %v1063_v60, %v718_v23  ;;  %v1065_v63 = vpop.f32.mrb[18].mxu1  ;;  %v4785_v10 = vpop.f32.mrb[18].mxu0 }
 0x115   : > { %v1221_v3 = vmul.f32 %v1065_v63, %v720_v24  ;;  %v1067_v4 = vpop.f32.mrb[19].mxu1  ;;  %v4790_v13 = vpop.f32.mrb[19].mxu0 }
 0x116   : > { %v2430_v6 = vadd.f32 %v2398_v57, %v2202_v62  ;;  %v2203_v7 = vadd.f32 %v1067_v4, %v722_v25  ;;  %v2402_v4 = vmul.f32 %v4765_v51, %v2257_v61 }
 0x117   : > { %v1253_v9 = vpack.c.bf16 %v1221_v3, %v1220_v59 }
 0x118   : > { %v2431_v11 = vadd.f32 %v2399_v0, %v2203_v7  ;;  %v4788_v12 = vadd.f32 %v4779_v1, %v2430_v6 }
 0x119   : > { %3857 = vmatprep.mubr.bf16.mxu0 %v1253_v9 }
 0x11a   : > { %v1071_v16 = vpop.f32.mrb[20].mxu1  ;;  %v2498_v17 = vsel %vm633_vm0, %v4788_v12, 0.0  ;;  %v4796_v22 = vadd.f32 %v4779_v1, %v2431_v11  ;;  %v4801_v57 = vpop.f32.mrb[20].mxu0 }
 0x11b   : > { %v1222_v23 = vmul.f32 %v1071_v16, %v726_v29  ;;  %v1073_v24 = vpop.f32.mrb[21].mxu1  ;;  %2499 = vadd.xlane.f32.xlu0 %v2498_v17  ;;  %v4804_v60 = vpop.f32.mrb[21].mxu0 }
 0x11c   : > { %v2204_v25 = vadd.f32 %v1073_v24, %v728_v30  ;;  %v1075_v34 = vpop.f32.mrb[22].mxu1  ;;  %v2501_v46 = vsel %vm633_vm0, %v4796_v22, 0.0  ;;  %v4806_v62 = vpop.f32.mrb[22].mxu0 }
 0x11d   : > { %v1223_v47 = vmul.f32 %v1075_v34, %v730_v31  ;;  %v1077_v56 = vpop.f32.mrb[23].mxu1  ;;  %2502 = vadd.xlane.f32.xlu1 %v2501_v46  ;;  %v4811_v0 = vpop.f32.mrb[23].mxu0 }
 0x11e   : > { %v2432_v58 = vadd.f32 %v2400_v15, %v2204_v25  ;;  %v2205_v59 = vadd.f32 %v1077_v56, %v4731_v32  ;;  %v2262_v31 = vpop.permute.xlu1 %2261  ;;  %v2267_v46 = vpop.permute.xlu0 %2266 }
 0x11f   : > { %v1254_v29 = vpack.c.bf16 %v1223_v47, %v1222_v23  ;;  %v2403_v15 = vmul.f32 %v4765_v51, %v2262_v31 }
 0x120   : > { %v2433_v30 = vadd.f32 %v2401_v44, %v2205_v59  ;;  %v4809_v63 = vadd.f32 %v4779_v1, %v2432_v58 }
 0x121   : > { %3858 = vmatmul.mubr.bf16.vlgmr.msra.gmra.mrb[48].mxu0 %v1254_v29 }
 0x122   : > { %v1081_v3 = vpop.f32.mrb[24].mxu1  ;;  %v2504_v32 = vsel %vm633_vm0, %v4809_v63, 0.0  ;;  %v4817_v6 = vadd.f32 %v4779_v1, %v2433_v30  ;;  %v4823_v23 = vpop.f32.mrb[24].mxu0 }
 0x123   : > { %v1224_v7 = vmul.f32 %v1081_v3, %v4741_v38  ;;  %v1083_v9 = vpop.f32.mrb[25].mxu1  ;;  %2505 = vadd.xlane.f32.xlu0 %v2504_v32  ;;  %v4828_v44 = vpop.f32.mrb[25].mxu0 }
 0x124   : > { %v2206_v11 = vadd.f32 %v1083_v9, %v4745_v40  ;;  %v1085_v14 = vpop.f32.mrb[26].mxu1  ;;  %v2507_v34 = vsel %vm633_vm0, %v4817_v6, 0.0  ;;  %v4830_v40 = vpop.f32.mrb[26].mxu0 }
 0x125   : > { %v1225_v16 = vmul.f32 %v1085_v14, %v4747_v41  ;;  %v1087_v17 = vpop.f32.mrb[27].mxu1  ;;  %v4835_v41 = vpop.f32.mrb[27].mxu0 }
 0x126   : > { %v2434_v24 = vadd.f32 %v2402_v4, %v2206_v11  ;;  %v2207_v25 = vadd.f32 %v1087_v17, %v4749_v42  ;;  %v2272_v58 = vpop.permute.xlu1 %2271  ;;  %v2404_v42 = vmul.f32 %v4765_v51, %v2267_v46 }
 0x127   : > { %v1255_v38 = vpack.c.bf16 %v1225_v16, %v1224_v7  ;;  %2508 = vadd.xlane.f32.xlu0 %v2507_v34  ;;  %v2405_v32 = vmul.f32 %v4765_v51, %v2272_v58 }
 0x128   : > { %v2435_v47 = vadd.f32 %v2403_v15, %v2207_v25  ;;  %v4833_v56 = vadd.f32 %v4779_v1, %v2434_v24  ;;  %v2277_v24 = vpop.permute.xlu0 %2276 }
 0x129   : > { %3861 = vmatprep.mubr.bf16.mxu0 %v1255_v38 }
 0x12a   : > { %v1091_v59 = vpop.f32.mrb[28].mxu1  ;;  %v2510_v29 = vsel %vm633_vm0, %v4833_v56, 0.0  ;;  %v4841_v61 = vadd.f32 %v4779_v1, %v2435_v47  ;;  %v4849_v14 = vpop.f32.mrb[28].mxu0  ;;  %v2406_v47 = vmul.f32 %v4765_v51, %v2277_v24 }
 0x12b   : > { %v1226_v30 = vmul.f32 %v1091_v59, %v4763_v50  ;;  %v1093_v31 = vpop.f32.mrb[29].mxu1  ;;  %2511 = vadd.xlane.f32.xlu1 %v2510_v29  ;;  %v4852_v50 = vpop.f32.mrb[29].mxu0 }
 0x12c   : > { %v2208_v3 = vadd.f32 %v1093_v31, %v4767_v52  ;;  %v1095_v4 = vpop.f32.mrb[30].mxu1  ;;  %v2513_v7 = vsel %vm633_vm0, %v4841_v61, 0.0  ;;  %v4854_v52 = vpop.f32.mrb[30].mxu0 }
 0x12d   : > { %v1227_v9 = vmul.f32 %v1095_v4, %v4769_v53  ;;  %v1097_v11 = vpop.f32.mrb[31].mxu1  ;;  %2514 = vadd.xlane.f32.xlu0 %v2513_v7  ;;  %v4859_v38 = vpop.f32.mrb[31].mxu0 }
 0x12e   : > { %v2436_v15 = vadd.f32 %v2404_v42, %v2208_v3  ;;  %v2209_v16 = vadd.f32 %v1097_v11, %v4774_v55  ;;  %v2282_v53 = vpop.permute.xlu1 %2281 }
 0x12f   : > { %v1256_v17 = vpack.c.bf16 %v1227_v9, %v1226_v30  ;;  %v2407_v31 = vmul.f32 %v4765_v51, %v2282_v53 }
 0x130   : > { %v2437_v25 = vadd.f32 %v2405_v32, %v2209_v16  ;;  %v4857_v34 = vadd.f32 %v4779_v1, %v2436_v15 }
 0x131   : > { %3862 = vmatmul.mubr.bf16.gmra.mrb[52].mxu0 %v1256_v17 }
 0x132   : > { %v1101_v46 = vpop.f32.mrb[32].mxu1  ;;  %v2516_v55 = vsel %vm633_vm0, %v4857_v34, 0.0  ;;  %v4865_v58 = vadd.f32 %v4779_v1, %v2437_v25  ;;  %v4873_v7 = vpop.f32.mrb[32].mxu0 }
 0x133   : > { %v1228_v59 = vmul.f32 %v1101_v46, %v4781_v5  ;;  %v1103_v42 = vpop.f32.mrb[33].mxu1  ;;  %2517 = vadd.xlane.f32.xlu1 %v2516_v55  ;;  %v4876_v5 = vpop.f32.mrb[33].mxu0 }
 0x134   : > { %v2210_v29 = vadd.f32 %v1103_v42, %v4783_v8  ;;  %v1105_v30 = vpop.f32.mrb[34].mxu1  ;;  %v2519_v3 = vsel %vm633_vm0, %v4865_v58, 0.0  ;;  %v4878_v16 = vpop.f32.mrb[34].mxu0 }
 0x135   : > { %v1229_v4 = vmul.f32 %v1105_v30, %v4785_v10  ;;  %v1107_v32 = vpop.f32.mrb[35].mxu1  ;;  %2520 = vadd.xlane.f32.xlu0 %v2519_v3  ;;  %v4883_v24 = vpop.f32.mrb[35].mxu0 }
 0x136   : > { %v2438_v9 = vadd.f32 %v2406_v47, %v2210_v29  ;;  %v2211_v11 = vadd.f32 %v1107_v32, %v4790_v13  ;;  %v2287_v25 = vpop.permute.xlu0 %2286  ;;  %v2292_v10 = vpop.permute.xlu1 %2291 }
 0x137   : > { %v1257_v15 = vpack.c.bf16 %v1229_v4, %v1228_v59  ;;  %v2408_v53 = vmul.f32 %v4765_v51, %v2287_v25  ;;  %v2409_v30 = vmul.f32 %v4765_v51, %v2292_v10 }
 0x138   : > { %v2439_v8 = vadd.f32 %v2407_v31, %v2211_v11  ;;  %v4881_v17 = vadd.f32 %v4779_v1, %v2438_v9 }
 0x139   : > { %3865 = vmatprep.mubr.bf16.mxu0 %v1257_v15 }
 0x13a   : > { %v1111_v46 = vpop.f32.mrb[36].mxu1  ;;  %v2522_v13 = vsel %vm633_vm0, %v4881_v17, 0.0  ;;  %v4889_v47 = vadd.f32 %v4779_v1, %v2439_v8  ;;  %v4897_v32 = vpop.f32.mrb[36].mxu0 }
 0x13b   : > { %v1230_v55 = vmul.f32 %v1111_v46, %v4801_v57  ;;  %v1113_v59 = vpop.f32.mrb[37].mxu1  ;;  %2523 = vadd.xlane.f32.xlu1 %v2522_v13  ;;  %v4900_v57 = vpop.f32.mrb[37].mxu0 }
 0x13c   : > { %v2212_v42 = vadd.f32 %v1113_v59, %v4804_v60  ;;  %v1115_v29 = vpop.f32.mrb[38].mxu1  ;;  %v2525_v31 = vsel %vm633_vm0, %v4889_v47, 0.0  ;;  %v4902_v8 = vpop.f32.mrb[38].mxu0 }
 0x13d   : > { %v1231_v3 = vmul.f32 %v1115_v29, %v4806_v62  ;;  %v1117_v4 = vpop.f32.mrb[39].mxu1  ;;  %2526 = vadd.xlane.f32.xlu0 %v2525_v31  ;;  %v4907_v10 = vpop.f32.mrb[39].mxu0 }
 0x13e   : > { %v2440_v9 = vadd.f32 %v2408_v53, %v2212_v42  ;;  %v2213_v11 = vadd.f32 %v1117_v4, %v4811_v0  ;;  %v2297_v46 = vpop.permute.xlu0 %2296 }
 0x13f   : > { %v1258_v15 = vpack.c.bf16 %v1231_v3, %v1230_v55  ;;  %v2410_v62 = vmul.f32 %v4765_v51, %v2297_v46  ;;  %v2302_v55 = vpop.permute.xlu1 %2301 }
 0x140   : > { %v2441_v60 = vadd.f32 %v2409_v30, %v2213_v11  ;;  %v4905_v25 = vadd.f32 %v4779_v1, %v2440_v9  ;;  %v2411_v29 = vmul.f32 %v4765_v51, %v2302_v55 }
 0x141   : > { %3866 = vmatmul.mubr.bf16.gmra.mrb[56].mxu0 %v1258_v15 }
 0x142   : > { %v1121_v13 = vpop.f32.mrb[40].mxu1  ;;  %v2528_v53 = vsel %vm633_vm0, %v4905_v25, 0.0  ;;  %v4913_v0 = vadd.f32 %v4779_v1, %v2441_v60  ;;  %v4921_v11 = vpop.f32.mrb[40].mxu0 }
 0x143   : > { %v1232_v59 = vmul.f32 %v1121_v13, %v4823_v23  ;;  %v1123_v42 = vpop.f32.mrb[41].mxu1  ;;  %2529 = vadd.xlane.f32.xlu1 %v2528_v53  ;;  %v4924_v23 = vpop.f32.mrb[41].mxu0 }
 0x144   : > { %v2214_v30 = vadd.f32 %v1123_v42, %v4828_v44  ;;  %v1125_v31 = vpop.f32.mrb[42].mxu1  ;;  %v2531_v3 = vsel %vm633_vm0, %v4913_v0, 0.0  ;;  %v4926_v13 = vpop.f32.mrb[42].mxu0 }
 0x145   : > { %v1233_v4 = vmul.f32 %v1125_v31, %v4830_v40  ;;  %v1127_v9 = vpop.f32.mrb[43].mxu1  ;;  %2532 = vadd.xlane.f32.xlu0 %v2531_v3  ;;  %v4931_v55 = vpop.f32.mrb[43].mxu0 }
 0x146   : > { %v2442_v15 = vadd.f32 %v2410_v62, %v2214_v30  ;;  %v2215_v60 = vadd.f32 %v1127_v9, %v4835_v41  ;;  %v2307_v42 = vpop.permute.xlu0 %2306 }
 0x147   : > { %v1259_v46 = vpack.c.bf16 %v1233_v4, %v1232_v59  ;;  %v2412_v40 = vmul.f32 %v4765_v51, %v2307_v42  ;;  %v2312_v59 = vpop.permute.xlu1 %2311 }
 0x148   : > { %v2443_v53 = vadd.f32 %v2411_v29, %v2215_v60  ;;  %v4929_v44 = vadd.f32 %v4779_v1, %v2442_v15  ;;  %v2413_v3 = vmul.f32 %v4765_v51, %v2312_v59 }
 0x149   : > { %3869 = vmatprep.mubr.bf16.mxu0 %v1259_v46 }
 0x14a   : > { %v1131_v31 = vpop.f32.mrb[44].mxu1  ;;  %v2534_v62 = vsel %vm633_vm0, %v4929_v44, 0.0  ;;  %v4937_v41 = vadd.f32 %v4779_v1, %v2443_v53  ;;  %v4945_v42 = vpop.f32.mrb[44].mxu0 }
 0x14b   : > { %v1234_v30 = vmul.f32 %v1131_v31, %v4849_v14  ;;  %v1133_v29 = vpop.f32.mrb[45].mxu1  ;;  %2535 = vadd.xlane.f32.xlu1 %v2534_v62  ;;  %v4948_v14 = vpop.f32.mrb[45].mxu0 }
 0x14c   : > { %6166 = vst [vmem:[#allocation7_spill] sm:$0xff] %v4937_v41  ;;  %v2216_v4 = vadd.f32 %v1133_v29, %v4852_v50  ;;  %v1135_v9 = vpop.f32.mrb[46].mxu1  ;;  %v2537_v15 = vsel %vm633_vm0, %v4937_v41, 0.0  ;;  %v4950_v62 = vpop.f32.mrb[46].mxu0 }
 0x14d   : > { %v1235_v60 = vmul.f32 %v1135_v9, %v4854_v52  ;;  %v1137_v46 = vpop.f32.mrb[47].mxu1  ;;  %2538 = vadd.xlane.f32.xlu0 %v2537_v15  ;;  %v4955_v29 = vpop.f32.mrb[47].mxu0 }
 0x14e   : > { %v2444_v53 = vadd.f32 %v2412_v40, %v2216_v4  ;;  %v2217_v39 = vadd.f32 %v1137_v46, %v4859_v38  ;;  %v2317_v54 = vpop.permute.xlu0 %2316 }
 0x14f   : > { %v1260_v31 = vpack.c.bf16 %v1235_v60, %v1234_v30  ;;  %v2414_v52 = vmul.f32 %v4765_v51, %v2317_v54  ;;  %v2322_v30 = vpop.permute.xlu1 %2321 }
 0x150   : > { %v2445_v59 = vadd.f32 %v2413_v3, %v2217_v39  ;;  %v4953_v50 = vadd.f32 %v4779_v1, %v2444_v53  ;;  %v2415_v3 = vmul.f32 %v4765_v51, %v2322_v30 }
 0x151   : > { %3870 = vmatmul.mubr.bf16.gmra.mrb[60].mxu0 %v1260_v31 }
 0x152   : > { %6167 = vst [vmem:[#allocation8_spill] sm:$0xff] %v4953_v50  ;;  %v1141_v9 = vpop.f32.mrb[48].mxu1  ;;  %v2540_v40 = vsel %vm633_vm0, %v4953_v50, 0.0  ;;  %v4961_v38 = vadd.f32 %v4779_v1, %v2445_v59 }
 0x153   : > { %v1236_v4 = vmul.f32 %v1141_v9, %v4873_v7  ;;  %v1143_v39 = vpop.f32.mrb[49].mxu1  ;;  %2541 = vadd.xlane.f32.xlu1 %v2540_v40  ;;  %v2327_v9 = vpop.permute.xlu0 %2326 }
 0x154   : > { %v2218_v15 = vadd.f32 %v1143_v39, %v4876_v5  ;;  %v1145_v60 = vpop.f32.mrb[50].mxu1  ;;  %v2543_v54 = vsel %vm633_vm0, %v4961_v38, 0.0  ;;  %v2416_v5 = vmul.f32 %v4765_v51, %v2327_v9  ;;  %v2332_v39 = vpop.permute.xlu1 %2331 }
 0x155   : > { %v1237_v46 = vmul.f32 %v1145_v60, %v4878_v16  ;;  %v1147_v53 = vpop.f32.mrb[51].mxu1  ;;  %2544 = vadd.xlane.f32.xlu0 %v2543_v54 }
 0x156   : > { %v2446_v31 = vadd.f32 %v2414_v52, %v2218_v15  ;;  %v2219_v59 = vadd.f32 %v1147_v53, %v4883_v24 }
 0x157   : > { %v1261_v50 = vpack.c.bf16 %v1237_v46, %v1236_v4  ;;  %v2417_v4 = vmul.f32 %v4765_v51, %v2332_v39 }
 0x158   : > { %v2447_v41 = vadd.f32 %v2415_v3, %v2219_v59  ;;  %v4971_v7 = vadd.f32 %v4779_v1, %v2446_v31  ;;  %v2337_v59 = vpop.permute.xlu0 %2336 }
 0x159   : > { %3873 = vmatprep.mubr.bf16.mxu0 %v1261_v50 }
 0x15a   : > { %v1151_v40 = vpop.f32.mrb[52].mxu1  ;;  %v2546_v30 = vsel %vm633_vm0, %v4971_v7, 0.0  ;;  %v4977_v16 = vadd.f32 %v4779_v1, %v2447_v41 }
 0x15b   : > { %v1238_v52 = vmul.f32 %v1151_v40, %v4897_v32  ;;  %v1153_v24 = vpop.f32.mrb[53].mxu1  ;;  %2547 = vadd.xlane.f32.xlu1 %v2546_v30 }
 0x15c   : > { %v2220_v3 = vadd.f32 %v1153_v24, %v4900_v57  ;;  %v1155_v15 = vpop.f32.mrb[54].mxu1  ;;  %v2549_v50 = vsel %vm633_vm0, %v4977_v16, 0.0 }
 0x15d   : > { %v1239_v60 = vmul.f32 %v1155_v15, %v4902_v8  ;;  %v1157_v54 = vpop.f32.mrb[55].mxu1  ;;  %2550 = vadd.xlane.f32.xlu0 %v2549_v50  ;;  %v2342_v8 = vpop.permute.xlu1 %2341 }
 0x15e   : > { %v2448_v46 = vadd.f32 %v2416_v5, %v2220_v3  ;;  %v2221_v41 = vadd.f32 %v1157_v54, %v4907_v10  ;;  %v2418_v10 = vmul.f32 %v4765_v51, %v2337_v59  ;;  %v2419_v39 = vmul.f32 %v4765_v51, %v2342_v8 }
 0x15f   : > { %v1262_v53 = vpack.c.bf16 %v1239_v60, %v1238_v52 }
 0x160   : > { %v2449_v31 = vadd.f32 %v2417_v4, %v2221_v41  ;;  %v4987_v32 = vadd.f32 %v4779_v1, %v2448_v46 }
 0x161   : > { %3874 = vmatmul.mubr.bf16.gmra.mrb[64].mxu0 %v1262_v53 }
 0x162   : > { %v1161_v9 = vpop.f32.mrb[56].mxu1  ;;  %v2552_v57 = vsel %vm633_vm0, %v4987_v32, 0.0  ;;  %v4992_v40 = vadd.f32 %v4779_v1, %v2449_v31  ;;  %v2347_v31 = vpop.permute.xlu0 %2346 }
 0x163   : > { %v1240_v30 = vmul.f32 %v1161_v9, %v4921_v11  ;;  %v1163_v5 = vpop.f32.mrb[57].mxu1  ;;  %2553 = vadd.xlane.f32.xlu1 %v2552_v57 }
 0x164   : > { %v2222_v52 = vadd.f32 %v1163_v5, %v4924_v23  ;;  %v1165_v24 = vpop.f32.mrb[58].mxu1  ;;  %v2555_v4 = vsel %vm633_vm0, %v4992_v40, 0.0 }
 0x165   : > { %v1241_v3 = vmul.f32 %v1165_v24, %v4926_v13  ;;  %v1167_v15 = vpop.f32.mrb[59].mxu1  ;;  %2556 = vadd.xlane.f32.xlu0 %v2555_v4 }
 0x166   : > { %v2450_v50 = vadd.f32 %v2418_v10, %v2222_v52  ;;  %v2223_v60 = vadd.f32 %v1167_v15, %v4931_v55  ;;  %v2420_v55 = vmul.f32 %v4765_v51, %v2347_v31 }
 0x167   : > { %v1263_v11 = vpack.c.bf16 %v1241_v3, %v1240_v30  ;;  %v2352_v30 = vpop.permute.xlu1 %2351 }
 0x168   : > { %v2451_v54 = vadd.f32 %v2419_v39, %v2223_v60  ;;  %v5003_v46 = vadd.f32 %v4779_v1, %v2450_v50  ;;  %v2421_v39 = vmul.f32 %v4765_v51, %v2352_v30 }
 0x169   : > { %3877 = vmatprep.mubr.bf16.mxu0 %v1263_v11 }
 0x16a   : > { %v1171_v41 = vpop.f32.mrb[60].mxu1  ;;  %v2558_v23 = vsel %vm633_vm0, %v5003_v46, 0.0  ;;  %v5008_v53 = vadd.f32 %v4779_v1, %v2451_v54 }
 0x16b   : > { %v1242_v13 = vmul.f32 %v1171_v41, %v4945_v42  ;;  %v1173_v59 = vpop.f32.mrb[61].mxu1  ;;  %2559 = vadd.xlane.f32.xlu1 %v2558_v23  ;;  %v2362_v31 = vpop.permute.xlu1 %2361 }
 0x16c   : > { %v2224_v9 = vadd.f32 %v1173_v59, %v4948_v14  ;;  %v1175_v57 = vpop.f32.mrb[62].mxu1  ;;  %v2561_v8 = vsel %vm633_vm0, %v5008_v53, 0.0 }
 0x16d   : > { %v1243_v5 = vmul.f32 %v1175_v57, %v4950_v62  ;;  %v1177_v10 = vpop.f32.mrb[63].mxu1  ;;  %2562 = vadd.xlane.f32.xlu0 %v2561_v8  ;;  %v2357_v62 = vpop.permute.xlu0 %2356 }
 0x16e   : > { %v2452_v52 = vadd.f32 %v2420_v55, %v2224_v9  ;;  %v2225_v42 = vadd.f32 %v1177_v10, %v4955_v29  ;;  %v2422_v29 = vmul.f32 %v4765_v51, %v2357_v62  ;;  %v2423_v55 = vmul.f32 %v4765_v51, %v2362_v31 }
 0x16f   : > { %v1264_v24 = vpack.c.bf16 %v1243_v5, %v1242_v13 }
 0x170   : > { %v2453_v4 = vadd.f32 %v2421_v39, %v2225_v42  ;;  %v5019_v3 = vadd.f32 %v4779_v1, %v2452_v52 }
 0x171   : > { %3878 = vmatmul.mubr.bf16.gmra.mrb[68].mxu0 %v1264_v24 }
 0x172   : > { %v1181_v14 = vpop.f32.mrb[64].mxu1  ;;  %v2564_v15 = vsel %vm633_vm0, %v5019_v3, 0.0  ;;  %v5024_v50 = vadd.f32 %v4779_v1, %v2453_v4 }
 0x173   : > { %v1244_v60 = vmul.f32 %v1181_v14, %v4715_v18  ;;  %v1183_v11 = vpop.f32.mrb[65].mxu1  ;;  %2565 = vadd.xlane.f32.xlu1 %v2564_v15  ;;  %v2372_v14 = vpop.permute.xlu1 %2371 }
 0x174   : > { %v2226_v54 = vadd.f32 %v1183_v11, %v4717_v19  ;;  %v1185_v41 = vpop.f32.mrb[66].mxu1  ;;  %v2567_v23 = vsel %vm633_vm0, %v5024_v50, 0.0 }
 0x175   : > { %v1245_v13 = vmul.f32 %v1185_v41, %v4719_v20  ;;  %v1187_v59 = vpop.f32.mrb[67].mxu1  ;;  %2568 = vadd.xlane.f32.xlu0 %v2567_v23  ;;  %v2367_v20 = vpop.permute.xlu0 %2366 }
 0x176   : > { %v2454_v9 = vadd.f32 %v2422_v29, %v2226_v54  ;;  %v2227_v18 = vadd.f32 %v1187_v59, %v4721_v21  ;;  %v2424_v21 = vmul.f32 %v4765_v51, %v2367_v20 }
 0x177   : > { %v1265_v57 = vpack.c.bf16 %v1245_v13, %v1244_v60  ;;  %v2425_v60 = vmul.f32 %v4765_v51, %v2372_v14 }
 0x178   : > { %v2455_v8 = vadd.f32 %v2423_v55, %v2227_v18  ;;  %v5035_v30 = vadd.f32 %v4779_v1, %v2454_v9 }
 0x179   : > { %3881 = vmatprep.mubr.bf16.mxu0 %v1265_v57  ;;  %v2382_v57 = vpop.permute.xlu1 %2381 }
 0x17a   : > { %v1191_v19 = vpop.f32.mrb[68].mxu1  ;;  %v2570_v5 = vsel %vm633_vm0, %v5035_v30, 0.0  ;;  %v5040_v10 = vadd.f32 %v4779_v1, %v2455_v8 }
 0x17b   : > { %v1246_v39 = vmul.f32 %v1191_v19, %v4723_v26  ;;  %v1193_v52 = vpop.f32.mrb[69].mxu1  ;;  %2571 = vadd.xlane.f32.xlu1 %v2570_v5  ;;  %v2427_v5 = vmul.f32 %v4765_v51, %v2382_v57 }
 0x17c   : > { %v2228_v42 = vadd.f32 %v1193_v52, %v4725_v27  ;;  %v1195_v24 = vpop.f32.mrb[70].mxu1  ;;  %v2573_v4 = vsel %vm633_vm0, %v5040_v10, 0.0 }
 0x17d   : > { %v1247_v15 = vmul.f32 %v1195_v24, %v4727_v2  ;;  %v1197_v62 = vpop.f32.mrb[71].mxu1  ;;  %2574 = vadd.xlane.f32.xlu0 %v2573_v4  ;;  %v2377_v2 = vpop.permute.xlu0 %2376 }
 0x17e   : > { %v2456_v11 = vadd.f32 %v2424_v21, %v2228_v42  ;;  %v2229_v26 = vadd.f32 %v1197_v62, %v4729_v28  ;;  %v2426_v28 = vmul.f32 %v4765_v51, %v2377_v2  ;;  %v2392_v4 = vpop.permute.xlu1 %2391 }
 0x17f   : > { %v1266_v29 = vpack.c.bf16 %v1247_v15, %v1246_v39 }
 0x180   : > { %v2457_v54 = vadd.f32 %v2425_v60, %v2229_v26  ;;  %v5051_v41 = vadd.f32 %v4779_v1, %v2456_v11 }
 0x181   : > { %3882 = vmatmul.mubr.bf16.gmra.mrb[72].mxu0 %v1266_v29 }
 0x182   : > { %v1201_v27 = vpop.f32.mrb[72].mxu1  ;;  %v2576_v23 = vsel %vm633_vm0, %v5051_v41, 0.0  ;;  %v5056_v31 = vadd.f32 %v4779_v1, %v2457_v54  ;;  %v2429_v54 = vmul.f32 %v4765_v51, %v2392_v4 }
 0x183   : > { %v1248_v13 = vmul.f32 %v1201_v27, %v4733_v33  ;;  %v1203_v59 = vpop.f32.mrb[73].mxu1  ;;  %2577 = vadd.xlane.f32.xlu1 %v2576_v23 }
 0x184   : > { %v2230_v55 = vadd.f32 %v1203_v59, %v4735_v35  ;;  %v1205_v9 = vpop.f32.mrb[74].mxu1  ;;  %v2579_v18 = vsel %vm633_vm0, %v5056_v31, 0.0  ;;  %v2387_v35 = vpop.permute.xlu0 %2386 }
 0x185   : > { %v1249_v8 = vmul.f32 %v1205_v9, %v4737_v36  ;;  %v1207_v19 = vpop.f32.mrb[75].mxu1  ;;  %2580 = vadd.xlane.f32.xlu0 %v2579_v18 }
 0x186   : > { %v2458_v20 = vadd.f32 %v2426_v28, %v2230_v55  ;;  %v2231_v33 = vadd.f32 %v1207_v19, %v4739_v37  ;;  %v2428_v37 = vmul.f32 %v4765_v51, %v2387_v35 }
 0x187   : > { %v1267_v39 = vpack.c.bf16 %v1249_v8, %v1248_v13 }
 0x188   : > { %v2459_v52 = vadd.f32 %v2427_v5, %v2231_v33  ;;  %v5067_v21 = vadd.f32 %v4779_v1, %v2458_v20 }
 0x189   : > { %3885 = vmatprep.mubr.bf16.mxu0 %v1267_v39 }
 0x18a   : > { %v1211_v42 = vpop.f32.mrb[76].mxu1  ;;  %v2582_v24 = vsel %vm633_vm0, %v5067_v21, 0.0  ;;  %v5072_v36 = vadd.f32 %v4779_v1, %v2459_v52 }
 0x18b   : > { %v1250_v14 = vmul.f32 %v1211_v42, %v4751_v43  ;;  %v1213_v15 = vpop.f32.mrb[77].mxu1  ;;  %2583 = vadd.xlane.f32.xlu1 %v2582_v24 }
 0x18c   : > { %v2232_v62 = vadd.f32 %v1213_v15, %v4754_v45  ;;  %v1215_v60 = vpop.f32.mrb[78].mxu1  ;;  %v2585_v11 = vsel %vm633_vm0, %v5072_v36, 0.0 }
 0x18d   : > { %v1251_v26 = vmul.f32 %v1215_v60, %v4759_v48  ;;  %v1217_v29 = vpop.f32.mrb[79].mxu1  ;;  %2586 = vadd.xlane.f32.xlu0 %v2585_v11 }
 0x18e   : > { %v2460_v27 = vadd.f32 %v2428_v37, %v2232_v62  ;;  %v2233_v23 = vadd.f32 %v1217_v29, %v4761_v49 }
 0x18f   : > { %v1268_v43 = vpack.c.bf16 %v1251_v26, %v1250_v14 }
 0x190   : > { %v2461_v2 = vadd.f32 %v2429_v54, %v2233_v23  ;;  %v5083_v13 = vadd.f32 %v4779_v1, %v2460_v27 }
 0x191   : > { %3886 = vmatmul.mubr.bf16.gmra.mrb[76].mxu0 %v1268_v43 }
 0x192   : > { %6168 = vst [vmem:[#allocation9_spill] sm:$0xff] %v5083_v13  ;;  %v2588_v45 = vsel %vm633_vm0, %v5083_v13, 0.0  ;;  %v5088_v59 = vadd.f32 %v4779_v1, %v2461_v2 }
 0x193   : > { %2589 = vadd.xlane.f32.xlu1 %v2588_v45 }
 0x194   : > { %6169 = vst [vmem:[#allocation10_spill] sm:$0xff] %v5088_v59  ;;  %v2591_v48 = vsel %vm633_vm0, %v5088_v59, 0.0 }
 0x195   : > { %2592 = vadd.xlane.f32.xlu0 %v2591_v48 }
 0x1a8   : > { %v2500_v51 = vpop.xlane.xlu0 %2499 }
 0x1a9   : > { %v2595_v28 = vmul.f32 0.03125, %v2500_v51 }
 0x1aa   : > { %v2503_v49 = vpop.xlane.xlu1 %2502 }
 0x1ab   : > { %v5093_v55 = vsub.f32 %v4788_v12, %v2595_v28  ;;  %v2596_v9 = vmul.f32 0.03125, %v2503_v49 }
 0x1ad   : > { %v5096_v18 = vsub.f32 %v4796_v22, %v2596_v9  ;;  %v2659_v57 = vmul.f32 %v5093_v55, %v5093_v55 }
 0x1af   : > { %v2691_v1 = vsel %vm633_vm0, %v2659_v57, 0.0  ;;  %v2660_v8 = vmul.f32 %v5096_v18, %v5096_v18 }
 0x1b0   : > { %v2506_v19 = vpop.xlane.xlu0 %2505  ;;  %2692 = vadd.xlane.f32.xlu1 %v2691_v1 }
 0x1b1   : > { %v2597_v5 = vmul.f32 0.03125, %v2506_v19  ;;  %v2694_v20 = vsel %vm633_vm0, %v2660_v8, 0.0 }
 0x1b2   : > { %2695 = vadd.xlane.f32.xlu0 %v2694_v20 }
 0x1b3   : > { %v5105_v12 = vsub.f32 %v4809_v63, %v2597_v5 }
 0x1b4   : > { %v2509_v33 = vpop.xlane.xlu0 %2508 }
 0x1b5   : > { %v2598_v22 = vmul.f32 0.03125, %v2509_v33  ;;  %v2661_v39 = vmul.f32 %v5105_v12, %v5105_v12 }
 0x1b7   : > { %v5110_v52 = vsub.f32 %v4817_v6, %v2598_v22  ;;  %v2697_v35 = vsel %vm633_vm0, %v2661_v39, 0.0 }
 0x1b8   : > { %v2512_v42 = vpop.xlane.xlu1 %2511  ;;  %2698 = vadd.xlane.f32.xlu1 %v2697_v35 }
 0x1b9   : > { %v2599_v24 = vmul.f32 0.03125, %v2512_v42  ;;  %v2662_v4 = vmul.f32 %v5110_v52, %v5110_v52 }
 0x1ba   : > { %v2515_v14 = vpop.xlane.xlu0 %2514 }
 0x1bb   : > { %v5116_v63 = vsub.f32 %v4833_v56, %v2599_v24  ;;  %v2600_v15 = vmul.f32 0.03125, %v2515_v14  ;;  %v2700_v37 = vsel %vm633_vm0, %v2662_v4, 0.0 }
 0x1bc   : > { %2701 = vadd.xlane.f32.xlu0 %v2700_v37 }
 0x1bd   : > { %v5120_v62 = vsub.f32 %v4841_v61, %v2600_v15  ;;  %v2663_v6 = vmul.f32 %v5116_v63, %v5116_v63 }
 0x1bf   : > { %v2703_v60 = vsel %vm633_vm0, %v2663_v6, 0.0  ;;  %v2664_v11 = vmul.f32 %v5120_v62, %v5120_v62  ;;  %v6170_v6 = vld [vmem:[#allocation7_spill] sm:$0xff] }
 0x1c0   : > { %v2518_v26 = vpop.xlane.xlu1 %2517  ;;  %2704 = vadd.xlane.f32.xlu1 %v2703_v60 }
 0x1c1   : > { %v2601_v29 = vmul.f32 0.03125, %v2518_v26  ;;  %v2706_v56 = vsel %vm633_vm0, %v2664_v11, 0.0  ;;  %v4074_v26 = vld [vmem:[%s6129_s7 + $0x8] sm:$0xff]  }
 0x1c2   : > { %v2521_v54 = vpop.xlane.xlu0 %2520  ;;  %2707 = vadd.xlane.f32.xlu0 %v2706_v56 }
 0x1c3   : > { %v5129_v27 = vsub.f32 %v4857_v34, %v2601_v29  ;;  %v2602_v61 = vmul.f32 0.03125, %v2521_v54 }
 0x1c5   : > { %v5132_v23 = vsub.f32 %v4865_v58, %v2602_v61  ;;  %v2665_v43 = vmul.f32 %v5129_v27, %v5129_v27 }
 0x1c7   : > { %v2709_v2 = vsel %vm633_vm0, %v2665_v43, 0.0  ;;  %v2666_v45 = vmul.f32 %v5132_v23, %v5132_v23 }
 0x1c8   : > { %v2524_v48 = vpop.xlane.xlu1 %2523  ;;  %2710 = vadd.xlane.f32.xlu1 %v2709_v2  ;;  %v6171_v2 = vld [vmem:[#allocation8_spill] sm:$0xff] }
 0x1c9   : > { %v2603_v51 = vmul.f32 0.03125, %v2524_v48  ;;  %v2712_v28 = vsel %vm633_vm0, %v2666_v45, 0.0 }
 0x1ca   : > { %v2527_v49 = vpop.xlane.xlu0 %2526  ;;  %2713 = vadd.xlane.f32.xlu0 %v2712_v28 }
 0x1cb   : > { %v5141_v34 = vsub.f32 %v4881_v17, %v2603_v51  ;;  %v2604_v58 = vmul.f32 0.03125, %v2527_v49 }
 0x1cd   : > { %v5144_v9 = vsub.f32 %v4889_v47, %v2604_v58  ;;  %v2667_v57 = vmul.f32 %v5141_v34, %v5141_v34 }
 0x1cf   : > { %v2715_v1 = vsel %vm633_vm0, %v2667_v57, 0.0  ;;  %v2668_v8 = vmul.f32 %v5144_v9, %v5144_v9 }
 0x1d0   : > { %v2530_v19 = vpop.xlane.xlu1 %2529  ;;  %2716 = vadd.xlane.f32.xlu1 %v2715_v1 }
 0x1d1   : > { %v2605_v5 = vmul.f32 0.03125, %v2530_v19  ;;  %v2718_v20 = vsel %vm633_vm0, %v2668_v8, 0.0 }
 0x1d2   : > { %v2533_v33 = vpop.xlane.xlu0 %2532  ;;  %2719 = vadd.xlane.f32.xlu0 %v2718_v20 }
 0x1d3   : > { %v5153_v17 = vsub.f32 %v4905_v25, %v2605_v5  ;;  %v2606_v47 = vmul.f32 0.03125, %v2533_v33  ;;  %v4073_v25 = vld [vmem:[%s6129_s7] sm:$0xff]  }
 0x1d4   : > { %3937 = vmatprep.subr.bf16.mxu0 %v4073_v25 }
 0x1d5   : > { %v5156_v22 = vsub.f32 %v4913_v0, %v2606_v47  ;;  %v2669_v39 = vmul.f32 %v5153_v17, %v5153_v17  ;;  %3938 = vmatpush3.bf16.msra.mxu0 %v4073_v25  ;;  %v1252_v47 = vld [vmem:[%s6130_s8] sm:$0x7] }
 0x1d6   : > { %3939 = vmatprep.subr.bf16.mxu0 %v4074_v26 }
 0x1d7   : > { %v2721_v35 = vsel %vm633_vm0, %v2669_v39, 0.0  ;;  %v2670_v42 = vmul.f32 %v5156_v22, %v5156_v22 }
 0x1d8   : > { %v2536_v24 = vpop.xlane.xlu1 %2535  ;;  %2722 = vadd.xlane.f32.xlu1 %v2721_v35 }
 0x1d9   : > { %v2607_v4 = vmul.f32 0.03125, %v2536_v24  ;;  %v2724_v14 = vsel %vm633_vm0, %v2670_v42, 0.0  ;;  %3940 = vmatpush3.bf16.msra.mxu0 %v4074_v26  ;;  %v6172_v24 = vld [vmem:[#allocation6_spill] sm:$0xff] }
 0x1da   : > { %v2539_v15 = vpop.xlane.xlu0 %2538  ;;  %2725 = vadd.xlane.f32.xlu0 %v2724_v14 }
 0x1db   : > { %v5168_v0 = vsub.f32 %v4929_v44, %v2607_v4  ;;  %v2608_v37 = vmul.f32 0.03125, %v2539_v15  ;;  %v5210_v4 = vrot.slane %v1252_v47, %v6172_v24 }
 0x1dd   : > { %v5171_v60 = vsub.f32 %v6170_v6, %v2608_v37  ;;  %v2671_v11 = vmul.f32 %v5168_v0, %v5168_v0 }
 0x1df   : > { %v2727_v29 = vsel %vm633_vm0, %v2671_v11, 0.0  ;;  %v2672_v56 = vmul.f32 %v5171_v60, %v5171_v60 }
 0x1e0   : > { %v2542_v44 = vpop.xlane.xlu1 %2541  ;;  %2728 = vadd.xlane.f32.xlu1 %v2727_v29 }
 0x1e1   : > { %v2609_v54 = vmul.f32 0.03125, %v2542_v44  ;;  %v2730_v61 = vsel %vm633_vm0, %v2672_v56, 0.0 }
 0x1e2   : > { %v2545_v43 = vpop.xlane.xlu0 %2544  ;;  %2731 = vadd.xlane.f32.xlu0 %v2730_v61 }
 0x1e3   : > { %v5183_v45 = vsub.f32 %v6171_v2, %v2609_v54  ;;  %v2610_v48 = vmul.f32 0.03125, %v2545_v43 }
 0x1e5   : > { %v5186_v51 = vsub.f32 %v4961_v38, %v2610_v48  ;;  %v2673_v28 = vmul.f32 %v5183_v45, %v5183_v45 }
 0x1e7   : > { %v2733_v49 = vsel %vm633_vm0, %v2673_v28, 0.0  ;;  %v2674_v58 = vmul.f32 %v5186_v51, %v5186_v51 }
 0x1e8   : > { %v2548_v57 = vpop.xlane.xlu1 %2547  ;;  %2734 = vadd.xlane.f32.xlu1 %v2733_v49 }
 0x1e9   : > { %v2611_v1 = vmul.f32 0.03125, %v2548_v57  ;;  %v2736_v8 = vsel %vm633_vm0, %v2674_v58, 0.0 }
 0x1ea   : > { %v2551_v19 = vpop.xlane.xlu0 %2550  ;;  %2737 = vadd.xlane.f32.xlu0 %v2736_v8 }
 0x1eb   : > { %v5195_v5 = vsub.f32 %v4971_v7, %v2611_v1  ;;  %v2612_v38 = vmul.f32 0.03125, %v2551_v19 }
 0x1ed   : > { %v5198_v20 = vsub.f32 %v4977_v16, %v2612_v38  ;;  %v2675_v33 = vmul.f32 %v5195_v5, %v5195_v5 }
 0x1ef   : > { %v2739_v39 = vsel %vm633_vm0, %v2675_v33, 0.0  ;;  %v2676_v35 = vmul.f32 %v5198_v20, %v5198_v20 }
 0x1f0   : > { %v2554_v42 = vpop.xlane.xlu1 %2553  ;;  %2740 = vadd.xlane.f32.xlu1 %v2739_v39 }
 0x1f1   : > { %v2742_v7 = vsel %vm633_vm0, %v2676_v35, 0.0  ;;  %v2613_v16 = vmul.f32 0.03125, %v2554_v42 }
 0x1f2   : > { %v2557_v14 = vpop.xlane.xlu0 %2556  ;;  %2743 = vadd.xlane.f32.xlu0 %v2742_v7 }
 0x1f3   : > { %v2614_v25 = vmul.f32 0.03125, %v2557_v14  ;;  %v5216_v11 = vsub.f32 %v4987_v32, %v2613_v16 }
 0x1f4   : > { %v3859_v15 = vpop.f32.mrb[48].mxu0 }
 0x1f5   : > { %v5213_v37 = vadd.f32 %v3859_v15, %v5210_v4  ;;  %v1371_v6 = vpop.f32.mrb[49].mxu0  ;;  %v5223_v44 = vsub.f32 %v4992_v40, %v2614_v25  ;;  %v2677_v32 = vmul.f32 %v5216_v11, %v5216_v11 }
 0x1f6   : > { %v3860_v26 = vpop.f32.mrb[50].mxu0  ;;  %v5226_v61 = vadd.f32 %v1371_v6, %v5210_v4 }
 0x1f7   : > { %v5219_v29 = vadd.f32 %v3860_v26, %v5210_v4  ;;  %1502 = vadd.xlane.f32.xlu1 %v5213_v37  ;;  %v1374_v56 = vpop.f32.mrb[51].mxu0  ;;  %v2678_v40 = vmul.f32 %v5223_v44, %v5223_v44  ;;  %v2745_v57 = vsel %vm633_vm0, %v2677_v32, 0.0 }
 0x1f8   : > { %v2560_v54 = vpop.xlane.xlu1 %2559  ;;  %v5232_v48 = vadd.f32 %v1374_v56, %v5210_v4 }
 0x1f9   : > { %v2615_v43 = vmul.f32 0.03125, %v2560_v54  ;;  %1504 = vadd.xlane.f32.xlu0 %v5219_v29 }
 0x1fa   : > { %v2563_v2 = vpop.xlane.xlu0 %2562 }
 0x1fb   : > { %v5235_v28 = vsub.f32 %v5003_v46, %v2615_v43  ;;  %v2616_v49 = vmul.f32 0.03125, %v2563_v2  ;;  %1498 = vadd.xlane.f32.xlu1 %v5226_v61  ;;  %v2748_v46 = vsel %vm633_vm0, %v2678_v40, 0.0 }
 0x1fd   : > { %v5241_v58 = vsub.f32 %v5008_v53, %v2616_v49  ;;  %1500 = vadd.xlane.f32.xlu0 %v5232_v48  ;;  %v2679_v1 = vmul.f32 %v5235_v28, %v5235_v28 }
 0x1ff   : > { %2746 = vadd.xlane.f32.xlu1 %v2745_v57  ;;  %v2680_v19 = vmul.f32 %v5241_v58, %v5241_v58  ;;  %v2751_v53 = vsel %vm633_vm0, %v2679_v1, 0.0 }
 0x200   : > { %v2566_v8 = vpop.xlane.xlu1 %2565 }
 0x201   : > { %2749 = vadd.xlane.f32.xlu0 %v2748_v46  ;;  %v2617_v38 = vmul.f32 0.03125, %v2566_v8  ;;  %v2754_v35 = vsel %vm633_vm0, %v2680_v19, 0.0 }
 0x202   : > { %v2569_v33 = vpop.xlane.xlu0 %2568 }
 0x203   : > { %2752 = vadd.xlane.f32.xlu1 %v2751_v53  ;;  %v2618_v47 = vmul.f32 0.03125, %v2569_v33  ;;  %v5256_v16 = vsub.f32 %v5019_v3, %v2617_v38 }
 0x204   : > { %v3863_v39 = vpop.f32.mrb[52].mxu0 }
 0x205   : > { %v5253_v42 = vadd.f32 %v3863_v39, %v5210_v4  ;;  %v1387_v7 = vpop.f32.mrb[53].mxu0  ;;  %2755 = vadd.xlane.f32.xlu0 %v2754_v35  ;;  %6173 = vst [vmem:[#allocation7_spill] sm:$0xff] %v5256_v16  ;;  %v5263_v6 = vsub.f32 %v5024_v50, %v2618_v47  ;;  %v2681_v56 = vmul.f32 %v5256_v16, %v5256_v16 }
 0x206   : > { %v3864_v14 = vpop.f32.mrb[54].mxu0  ;;  %v5266_v26 = vadd.f32 %v1387_v7, %v5210_v4 }
 0x207   : > { %v5259_v25 = vadd.f32 %v3864_v14, %v5210_v4  ;;  %v1390_v15 = vpop.f32.mrb[55].mxu0  ;;  %1510 = vadd.xlane.f32.xlu1 %v5253_v42  ;;  %6174 = vst [vmem:[#allocation8_spill] sm:$0xff] %v5263_v6  ;;  %v2682_v54 = vmul.f32 %v5263_v6, %v5263_v6  ;;  %v2757_v50 = vsel %vm633_vm0, %v2681_v56, 0.0 }
 0x208   : > { %v5272_v3 = vadd.f32 %v1390_v15, %v5210_v4  ;;  %v5311_v14 = vpop.xlane.xlu1 %2571 }
 0x209   : > { %1512 = vadd.xlane.f32.xlu0 %v5259_v25  ;;  %v2760_v43 = vsel %vm633_vm0, %v2682_v54, 0.0 }
 0x20a   : > { %v5314_v15 = vpop.xlane.xlu0 %2574 }
 0x20b   : > { %1506 = vadd.xlane.f32.xlu1 %v5266_v26 }
 0x20d   : > { %1508 = vadd.xlane.f32.xlu0 %v5272_v3 }
 0x20f   : > { %2758 = vadd.xlane.f32.xlu1 %v2757_v50 }
 0x210   : > { %v5316_v56 = vpop.xlane.xlu1 %2577 }
 0x211   : > { %2761 = vadd.xlane.f32.xlu0 %v2760_v43 }
 0x212   : > { %v5318_v54 = vpop.xlane.xlu0 %2580 }
 0x214   : > { %v3867_v2 = vpop.f32.mrb[56].mxu0 }
 0x215   : > { %v5281_v32 = vadd.f32 %v3867_v2, %v5210_v4  ;;  %v1403_v49 = vpop.f32.mrb[57].mxu0 }
 0x216   : > { %v3868_v40 = vpop.f32.mrb[58].mxu0  ;;  %v5288_v8 = vadd.f32 %v1403_v49, %v5210_v4 }
 0x217   : > { %v5284_v57 = vadd.f32 %v3868_v40, %v5210_v4  ;;  %v1406_v1 = vpop.f32.mrb[59].mxu0  ;;  %1518 = vadd.xlane.f32.xlu1 %v5281_v32 }
 0x218   : > { %v5292_v46 = vadd.f32 %v1406_v1, %v5210_v4  ;;  %v5320_v43 = vpop.xlane.xlu1 %2583 }
 0x219   : > { %1520 = vadd.xlane.f32.xlu0 %v5284_v57 }
 0x21a   : > { %6175 = vst [vmem:[#allocation11_spill] sm:$0xff] %v5292_v46  ;;  %v5325_v1 = vpop.xlane.xlu0 %2586 }
 0x21b   : > { %1514 = vadd.xlane.f32.xlu1 %v5288_v8 }
 0x21d   : > { %1516 = vadd.xlane.f32.xlu0 %v5292_v46 }
 0x222   : > { %v5337_v24 = vpop.xlane.xlu0 %2592 }
 0x223   : > { %6184 = vst [vmem:[#allocation20_spill] sm:$0xff] %v5337_v24 }
 0x224   : > { %v3871_v19 = vpop.f32.mrb[60].mxu0 }
 0x225   : > { %v5297_v38 = vadd.f32 %v3871_v19, %v5210_v4  ;;  %v1419_v33 = vpop.f32.mrb[61].mxu0 }
 0x226   : > { %v3872_v53 = vpop.f32.mrb[62].mxu0  ;;  %v5304_v35 = vadd.f32 %v1419_v33, %v5210_v4 }
 0x227   : > { %6176 = vst [vmem:[#allocation12_spill] sm:$0xff] %v5297_v38  ;;  %v5300_v47 = vadd.f32 %v3872_v53, %v5210_v4  ;;  %v1422_v39 = vpop.f32.mrb[63].mxu0  ;;  %1526 = vadd.xlane.f32.xlu1 %v5297_v38  ;;  %v5331_v53 = vpop.xlane.xlu1 %2589 }
 0x228   : > { %6178 = vst [vmem:[#allocation14_spill] sm:$0xff] %v5304_v35  ;;  %v5308_v7 = vadd.f32 %v1422_v39, %v5210_v4  ;;  %6182 = vst [vmem:[#allocation18_spill] sm:$0xff] %v5331_v53  ;;  %v6187_v53 = vld [vmem:[#allocation5_spill] sm:$0xff] }
 0x229   : > { %6177 = vst [vmem:[#allocation13_spill] sm:$0xff] %v5300_v47  ;;  %1528 = vadd.xlane.f32.xlu0 %v5300_v47 }
 0x22a   : > { %6179 = vst [vmem:[#allocation15_spill] sm:$0xff] %v5308_v7 }
 0x22b   : > { %1522 = vadd.xlane.f32.xlu1 %v5304_v35 }
 0x22d   : > { %1524 = vadd.xlane.f32.xlu0 %v5308_v7 }
 0x234   : > { %v3875_v50 = vpop.f32.mrb[64].mxu0 }
 0x235   : > { %v5323_v2 = vadd.f32 %v3875_v50, %v5210_v4  ;;  %v1435_v49 = vpop.f32.mrb[65].mxu0 }
 0x236   : > { %v3876_v40 = vpop.f32.mrb[66].mxu0  ;;  %v5334_v39 = vadd.f32 %v1435_v49, %v5210_v4 }
 0x237   : > { %6180 = vst [vmem:[#allocation16_spill] sm:$0xff] %v5323_v2  ;;  %v5328_v19 = vadd.f32 %v3876_v40, %v5210_v4  ;;  %v1438_v33 = vpop.f32.mrb[67].mxu0  ;;  %1534 = vadd.xlane.f32.xlu1 %v5323_v2 }
 0x238   : > { %6183 = vst [vmem:[#allocation19_spill] sm:$0xff] %v5334_v39  ;;  %v5340_v50 = vadd.f32 %v1438_v33, %v5210_v4 }
 0x239   : > { %6181 = vst [vmem:[#allocation17_spill] sm:$0xff] %v5328_v19  ;;  %1536 = vadd.xlane.f32.xlu0 %v5328_v19 }
 0x23a   : > { %6185 = vst [vmem:[#allocation21_spill] sm:$0xff] %v5340_v50 }
 0x23b   : > { %1530 = vadd.xlane.f32.xlu1 %v5334_v39  ;;  %v5348_v39 = vsub.s32 1, %v6187_v53 }
 0x23d   : > { %v2693_v7 = vpop.xlane.xlu1 %2692  ;;  %1532 = vadd.xlane.f32.xlu0 %v5340_v50  ;;  %6188 = vst [vmem:[#allocation23_spill] sm:$0xff] %v5348_v39 }
 0x23e   : > { %v2787_v40 = vmul.f32 0.03125, %v2693_v7 }
 0x23f   : > { %v2696_v59 = vpop.xlane.xlu0 %2695 }
 0x240   : > { %v2819_v2 = vadd.f32 1e-05, %v2787_v40  ;;  %v2788_v35 = vmul.f32 0.03125, %v2696_v59  ;;  %v4339_v40 = vld [vmem:[%s6131_s9] sm:$0xf] }
 0x242   : > { %4083 = vrsqrt.f32 %v2819_v2  ;;  %v2820_v13 = vadd.f32 1e-05, %v2788_v35 }
 0x244   : > { %4085 = vrsqrt.f32 %v2820_v13  ;;  %v3879_v49 = vpop.f32.mrb[68].mxu0  ;;  %v6158_v13 = vsub.s32 2, %v6187_v53 }
 0x245   : > { %v5345_v19 = vadd.f32 %v3879_v49, %v5210_v4  ;;  %v2699_v47 = vpop.xlane.xlu1 %2698  ;;  %v1451_v24 = vpop.f32.mrb[69].mxu0 }
 0x246   : > { %v2789_v33 = vmul.f32 0.03125, %v2699_v47  ;;  %v3880_v38 = vpop.f32.mrb[70].mxu0  ;;  %v5356_v35 = vadd.f32 %v1451_v24, %v5210_v4 }
 0x247   : > { %6186 = vst [vmem:[#allocation22_spill] sm:$0xff] %v5345_v19  ;;  %v5351_v50 = vadd.f32 %v3880_v38, %v5210_v4  ;;  %v1454_v7 = vpop.f32.mrb[71].mxu0  ;;  %1542 = vadd.xlane.f32.xlu1 %v5345_v19  ;;  %v5363_v38 = vrot.slane %v4339_v40, %v5348_v39  ;;  %v5371_v19 = vrot.slane %v4339_v40, %v6158_v13 }
 0x248   : > { %v2821_v59 = vadd.f32 1e-05, %v2789_v33  ;;  %6190 = vst [vmem:[#allocation25_spill] sm:$0xff] %v5356_v35  ;;  %v5366_v49 = vadd.f32 %v1454_v7, %v5210_v4 }
 0x249   : > { %6189 = vst [vmem:[#allocation24_spill] sm:$0xff] %v5351_v50  ;;  %v2702_v2 = vpop.xlane.xlu0 %2701  ;;  %1544 = vadd.xlane.f32.xlu0 %v5351_v50 }
 0x24a   : > { %4087 = vrsqrt.f32 %v2821_v59  ;;  %v2790_v47 = vmul.f32 0.03125, %v2702_v2  ;;  %6191 = vst [vmem:[#allocation26_spill] sm:$0xff] %v5366_v49 }
 0x24b   : > { %1538 = vadd.xlane.f32.xlu1 %v5356_v35 }
 0x24c   : > { %v4084_v33 = vpop.eup %4083  ;;  %v2822_v24 = vadd.f32 1e-05, %v2790_v47 }
 0x24d   : > { %v2883_v59 = vmul.f32 %v4084_v33, %v5093_v55  ;;  %v2705_v2 = vpop.xlane.xlu1 %2704  ;;  %1540 = vadd.xlane.f32.xlu0 %v5366_v49 }
 0x24e   : > { %v4086_v50 = vpop.eup %4085  ;;  %4089 = vrsqrt.f32 %v2822_v24  ;;  %v2791_v39 = vmul.f32 0.03125, %v2705_v2 }
 0x24f   : > { %v2884_v6 = vmul.f32 %v4086_v50, %v5096_v18  ;;  %v2708_v7 = vpop.xlane.xlu0 %2707  ;;  %v2919_v46 = vmul.f32 %v5363_v38, %v2883_v59 }
 0x250   : > { %v2823_v35 = vadd.f32 1e-05, %v2791_v39  ;;  %v2792_v16 = vmul.f32 0.03125, %v2708_v7 }
 0x251   : > { %v2920_v47 = vmul.f32 %v5363_v38, %v2884_v6  ;;  %v2955_v40 = vadd.f32 %v5371_v19, %v2919_v46 }
 0x252   : > { %4091 = vrsqrt.f32 %v2823_v35  ;;  %v2824_v13 = vadd.f32 1e-05, %v2792_v16 }
 0x253   : > { %v2956_v55 = vadd.f32 %v5371_v19, %v2920_v47  ;;  %v2987_v39 = vmax.f32 %v2955_v40, 0.0 }
 0x254   : > { %v4088_v33 = vpop.eup %4087  ;;  %4093 = vrsqrt.f32 %v2824_v13  ;;  %v3883_v53 = vpop.f32.mrb[72].mxu0 }
 0x255   : > { %v2885_v24 = vmul.f32 %v4088_v33, %v5105_v12  ;;  %v5382_v18 = vadd.f32 %v3883_v53, %v5210_v4  ;;  %v2711_v50 = vpop.xlane.xlu1 %2710  ;;  %v1467_v59 = vpop.f32.mrb[73].mxu0  ;;  %v2988_v2 = vmax.f32 %v2956_v55, 0.0 }
 0x256   : > { %v2793_v7 = vmul.f32 0.03125, %v2711_v50  ;;  %v3884_v6 = vpop.f32.mrb[74].mxu0  ;;  %v5391_v40 = vadd.f32 %v1467_v59, %v5210_v4 }
 0x257   : > { %v2921_v46 = vmul.f32 %v5363_v38, %v2885_v24  ;;  %v5386_v16 = vadd.f32 %v3884_v6, %v5210_v4  ;;  %v2714_v35 = vpop.xlane.xlu0 %2713  ;;  %v1470_v47 = vpop.f32.mrb[75].mxu0  ;;  %1550 = vadd.xlane.f32.xlu1 %v5382_v18  ;;  %v3019_v13 = vpack.c.bf16 %v2988_v2, %v2987_v39 }
 0x258   : > { %v4090_v12 = vpop.eup %4089  ;;  %v2825_v33 = vadd.f32 1e-05, %v2793_v7  ;;  %v2794_v53 = vmul.f32 0.03125, %v2714_v35  ;;  %v5398_v39 = vadd.f32 %v1470_v47, %v5210_v4 }
 0x259   : > { %6192 = vst [vmem:[#allocation27_spill] sm:$0xff] %v5386_v16  ;;  %v2886_v49 = vmul.f32 %v4090_v12, %v5110_v52  ;;  %3941 = vmatprep.mubr.msk.bf16.mxu0 %vm633_vm0, %v3019_v13  ;;  %1552 = vadd.xlane.f32.xlu0 %v5386_v16  ;;  %v2957_v24 = vadd.f32 %v5371_v19, %v2921_v46 }
 0x25a   : > { %4095 = vrsqrt.f32 %v2825_v33  ;;  %v2826_v55 = vadd.f32 1e-05, %v2794_v53  ;;  %v2619_v33 = vmul.f32 0.03125, %v5311_v14 }
 0x25b   : > { %v2922_v50 = vmul.f32 %v5363_v38, %v2886_v49  ;;  %1546 = vadd.xlane.f32.xlu1 %v5391_v40  ;;  %v2989_v13 = vmax.f32 %v2957_v24, 0.0 }
 0x25c   : > { %v4092_v2 = vpop.eup %4091  ;;  %4097 = vrsqrt.f32 %v2826_v55 }
 0x25d   : > { %v2958_v52 = vadd.f32 %v5371_v19, %v2922_v50  ;;  %v2887_v59 = vmul.f32 %v4092_v2, %v5116_v63  ;;  %v2717_v7 = vpop.xlane.xlu1 %2716  ;;  %1548 = vadd.xlane.f32.xlu0 %v5398_v39  ;;  %v2620_v2 = vmul.f32 0.03125, %v5314_v15 }
 0x25e   : > { %v4094_v6 = vpop.eup %4093  ;;  %v2795_v35 = vmul.f32 0.03125, %v2717_v7 }
 0x25f   : > { %v2990_v46 = vmax.f32 %v2958_v52, 0.0  ;;  %v2888_v49 = vmul.f32 %v4094_v6, %v5120_v62  ;;  %v2720_v12 = vpop.xlane.xlu0 %2719  ;;  %v2923_v47 = vmul.f32 %v5363_v38, %v2887_v59  ;;  %v5413_v52 = vsub.f32 %v5035_v30, %v2619_v33 }
 0x260   : > { %v2827_v53 = vadd.f32 1e-05, %v2795_v35  ;;  %v2796_v55 = vmul.f32 0.03125, %v2720_v12  ;;  %v2621_v12 = vmul.f32 0.03125, %v5316_v56 }
 0x261   : > { %v3020_v16 = vpack.c.bf16 %v2990_v46, %v2989_v13  ;;  %v2924_v50 = vmul.f32 %v5363_v38, %v2888_v49  ;;  %v2959_v63 = vadd.f32 %v5371_v19, %v2923_v47  ;;  %v2683_v56 = vmul.f32 %v5413_v52, %v5413_v52 }
 0x262   : > { %4099 = vrsqrt.f32 %v2827_v53  ;;  %v2828_v7 = vadd.f32 1e-05, %v2796_v55 }
 0x263   : > { %3942 = vmatmul.mubr.msk.bf16.vlgmr.msra.gmra.mrb[80].mxu0 %vm633_vm0, %v3020_v16  ;;  %v2960_v62 = vadd.f32 %v5371_v19, %v2924_v50  ;;  %v2991_v15 = vmax.f32 %v2959_v63, 0.0  ;;  %v5420_v16 = vsub.f32 %v5040_v10, %v2620_v2 }
 0x264   : > { %v4096_v24 = vpop.eup %4095  ;;  %4101 = vrsqrt.f32 %v2828_v7  ;;  %v3887_v14 = vpop.f32.mrb[76].mxu0  ;;  %v2622_v7 = vmul.f32 0.03125, %v5318_v54  ;;  %v2623_v54 = vmul.f32 0.03125, %v5320_v43 }
 0x265   : > { %v2889_v59 = vmul.f32 %v4096_v24, %v5129_v27  ;;  %v5417_v6 = vadd.f32 %v3887_v14, %v5210_v4  ;;  %v2723_v35 = vpop.xlane.xlu1 %2722  ;;  %v1483_v13 = vpop.f32.mrb[77].mxu0  ;;  %v2992_v46 = vmax.f32 %v2960_v62, 0.0  ;;  %v5440_v14 = vsub.f32 %v5051_v41, %v2621_v12 }
 0x266   : > { %v4098_v49 = vpop.eup %4097  ;;  %v2797_v47 = vmul.f32 0.03125, %v2723_v35  ;;  %v3888_v30 = vpop.f32.mrb[78].mxu0  ;;  %v5433_v62 = vadd.f32 %v1483_v13, %v5210_v4  ;;  %v2624_v41 = vmul.f32 0.03125, %v5325_v1 }
 0x267   : > { %v2890_v33 = vmul.f32 %v4098_v49, %v5132_v23  ;;  %v5425_v53 = vadd.f32 %v3888_v30, %v5210_v4  ;;  %v2726_v27 = vpop.xlane.xlu0 %2725  ;;  %v1486_v55 = vpop.f32.mrb[79].mxu0  ;;  %1558 = vadd.xlane.f32.xlu1 %v5417_v6  ;;  %v3021_v50 = vpack.c.bf16 %v2992_v46, %v2991_v15  ;;  %v2925_v63 = vmul.f32 %v5363_v38, %v2889_v59 }
 0x268   : > { %v2829_v10 = vadd.f32 1e-05, %v2797_v47  ;;  %v2798_v2 = vmul.f32 0.03125, %v2726_v27  ;;  %v5444_v35 = vadd.f32 %v1486_v55, %v5210_v4  ;;  %v2684_v15 = vmul.f32 %v5420_v16, %v5420_v16 }
 0x269   : > { %3945 = vmatprep.mubr.msk.bf16.mxu0 %vm633_vm0, %v3021_v50  ;;  %1560 = vadd.xlane.f32.xlu0 %v5425_v53  ;;  %v2926_v23 = vmul.f32 %v5363_v38, %v2890_v33  ;;  %v2961_v24 = vadd.f32 %v5371_v19, %v2925_v63  ;;  %v5451_v49 = vsub.f32 %v5056_v31, %v2622_v7  ;;  %v2763_v55 = vsel %vm633_vm0, %v2683_v56, 0.0 }
 0x26a   : > { %4103 = vrsqrt.f32 %v2829_v10  ;;  %v2830_v59 = vadd.f32 1e-05, %v2798_v2  ;;  %v5457_v33 = vsub.f32 %v5067_v21, %v2623_v54  ;;  %v2685_v31 = vmul.f32 %v5440_v14, %v5440_v14 }
 0x26b   : > { %1554 = vadd.xlane.f32.xlu1 %v5433_v62  ;;  %v2962_v13 = vadd.f32 %v5371_v19, %v2926_v23  ;;  %v2993_v4 = vmax.f32 %v2961_v24, 0.0  ;;  %v2766_v63 = vsel %vm633_vm0, %v2684_v15, 0.0  ;;  %v5466_v10 = vsub.f32 %v5072_v36, %v2624_v41 }
 0x26c   : > { %v4100_v46 = vpop.eup %4099  ;;  %4105 = vrsqrt.f32 %v2830_v59  ;;  %v2686_v56 = vmul.f32 %v5451_v49, %v5451_v49  ;;  %v2769_v54 = vsel %vm633_vm0, %v2685_v31, 0.0  ;;  %v2687_v36 = vmul.f32 %v5457_v33, %v5457_v33 }
 0x26d   : > { %v2891_v43 = vmul.f32 %v4100_v46, %v5141_v34  ;;  %v2729_v12 = vpop.xlane.xlu1 %2728  ;;  %1556 = vadd.xlane.f32.xlu0 %v5444_v35  ;;  %v2994_v47 = vmax.f32 %v2962_v13, 0.0  ;;  %v4075_v13 = vld [vmem:[%s6128_s6] sm:$0xff]   ;;  %v2688_v41 = vmul.f32 %v5466_v10, %v5466_v10 }
 0x26e   : > { %v4102_v30 = vpop.eup %4101  ;;  %v2799_v27 = vmul.f32 0.03125, %v2729_v12  ;;  %v2772_v46 = vsel %vm633_vm0, %v2686_v56, 0.0  ;;  %3889 = vmatprep.subr.bf16.mxu1 %v4075_v13 }
 0x26f   : > { %v2892_v1 = vmul.f32 %v4102_v30, %v5144_v9  ;;  %v2732_v50 = vpop.xlane.xlu0 %2731  ;;  %2764 = vadd.xlane.f32.xlu1 %v2763_v55  ;;  %v3022_v34 = vpack.c.bf16 %v2994_v47, %v2993_v4  ;;  %v2927_v7 = vmul.f32 %v5363_v38, %v2891_v43  ;;  %v2775_v55 = vsel %vm633_vm0, %v2687_v36, 0.0  ;;  %3890 = vmatpush3.bf16.msra.mxu1 %v4075_v13 }
 0x270   : > { %v2831_v21 = vadd.f32 1e-05, %v2799_v27  ;;  %v2800_v2 = vmul.f32 0.03125, %v2732_v50 }
 0x271   : > { %3946 = vmatmul.mubr.msk.bf16.gmra.mrb[84].mxu0 %vm633_vm0, %v3022_v34  ;;  %2767 = vadd.xlane.f32.xlu0 %v2766_v63  ;;  %v2928_v9 = vmul.f32 %v5363_v38, %v2892_v1  ;;  %v2963_v23 = vadd.f32 %v5371_v19, %v2927_v7 }
 0x272   : > { %4107 = vrsqrt.f32 %v2831_v21  ;;  %v2832_v24 = vadd.f32 1e-05, %v2800_v2 }
 0x273   : > { %2770 = vadd.xlane.f32.xlu1 %v2769_v54  ;;  %v2964_v59 = vadd.f32 %v5371_v19, %v2928_v9  ;;  %v2995_v4 = vmax.f32 %v2963_v23, 0.0 }
 0x274   : > { %v4104_v15 = vpop.eup %4103  ;;  %4109 = vrsqrt.f32 %v2832_v24 }
 0x275   : > { %v2893_v43 = vmul.f32 %v4104_v15, %v5153_v17  ;;  %v2735_v12 = vpop.xlane.xlu1 %2734  ;;  %2773 = vadd.xlane.f32.xlu0 %v2772_v46  ;;  %v2996_v47 = vmax.f32 %v2964_v59, 0.0  ;;  %v2778_v17 = vsel %vm633_vm0, %v2688_v41, 0.0 }
 0x276   : > { %v4106_v30 = vpop.eup %4105  ;;  %v2801_v27 = vmul.f32 0.03125, %v2735_v12 }
 0x277   : > { %v2894_v31 = vmul.f32 %v4106_v30, %v5156_v22  ;;  %v2738_v1 = vpop.xlane.xlu0 %2737  ;;  %2776 = vadd.xlane.f32.xlu1 %v2775_v55  ;;  %v3023_v50 = vpack.c.bf16 %v2996_v47, %v2995_v4  ;;  %v2929_v34 = vmul.f32 %v5363_v38, %v2893_v43 }
 0x278   : > { %v2833_v63 = vadd.f32 1e-05, %v2801_v27  ;;  %v2802_v7 = vmul.f32 0.03125, %v2738_v1 }
 0x279   : > { %3949 = vmatprep.mubr.msk.bf16.mxu0 %vm633_vm0, %v3023_v50  ;;  %2779 = vadd.xlane.f32.xlu0 %v2778_v17  ;;  %v2930_v21 = vmul.f32 %v5363_v38, %v2894_v31  ;;  %v2965_v2 = vadd.f32 %v5371_v19, %v2929_v34 }
 0x27a   : > { %4111 = vrsqrt.f32 %v2833_v63  ;;  %v2834_v56 = vadd.f32 1e-05, %v2802_v7 }
 0x27b   : > { %v2966_v22 = vadd.f32 %v5371_v19, %v2930_v21  ;;  %v2997_v54 = vmax.f32 %v2965_v2, 0.0 }
 0x27c   : > { %v4108_v9 = vpop.eup %4107  ;;  %4113 = vrsqrt.f32 %v2834_v56 }
 0x27d   : > { %v2895_v23 = vmul.f32 %v4108_v9, %v5168_v0  ;;  %v2741_v24 = vpop.xlane.xlu1 %2740  ;;  %v2998_v36 = vmax.f32 %v2966_v22, 0.0 }
 0x27e   : > { %v4110_v59 = vpop.eup %4109  ;;  %v2803_v13 = vmul.f32 0.03125, %v2741_v24 }
 0x27f   : > { %v2896_v15 = vmul.f32 %v4110_v59, %v5171_v60  ;;  %v2744_v46 = vpop.xlane.xlu0 %2743  ;;  %v3024_v41 = vpack.c.bf16 %v2998_v36, %v2997_v54  ;;  %v2931_v43 = vmul.f32 %v5363_v38, %v2895_v23 }
 0x280   : > { %v2835_v12 = vadd.f32 1e-05, %v2803_v13  ;;  %v2804_v4 = vmul.f32 0.03125, %v2744_v46 }
 0x281   : > { %3950 = vmatmul.mubr.msk.bf16.gmra.mrb[88].mxu0 %vm633_vm0, %v3024_v41  ;;  %v2932_v47 = vmul.f32 %v5363_v38, %v2896_v15  ;;  %v2967_v30 = vadd.f32 %v5371_v19, %v2931_v43 }
 0x282   : > { %4115 = vrsqrt.f32 %v2835_v12  ;;  %v2836_v0 = vadd.f32 1e-05, %v2804_v4 }
 0x283   : > { %v2968_v27 = vadd.f32 %v5371_v19, %v2932_v47  ;;  %v2999_v50 = vmax.f32 %v2967_v30, 0.0 }
 0x284   : > { %v4112_v55 = vpop.eup %4111  ;;  %4117 = vrsqrt.f32 %v2836_v0  ;;  %v1503_v31 = vpop.xlane.xlu1 %1502 }
 0x285   : > { %v2897_v60 = vmul.f32 %v4112_v55, %v5183_v45  ;;  %v1565_v1 = vmul.f32 0.0078125, %v1503_v31  ;;  %v3000_v34 = vmax.f32 %v2968_v27, 0.0 }
 0x286   : > { %v4114_v63 = vpop.eup %4113  ;;  %v1505_v7 = vpop.xlane.xlu0 %1504 }
 0x287   : > { %v2898_v17 = vmul.f32 %v4114_v63, %v5186_v51  ;;  %v5502_v21 = vsub.f32 %v5213_v37, %v1565_v1  ;;  %v1566_v2 = vmul.f32 0.0078125, %v1505_v7  ;;  %v3025_v56 = vpack.c.bf16 %v3000_v34, %v2999_v50 }
 0x288   : > { %v1499_v22 = vpop.xlane.xlu1 %1498  ;;  %v2933_v9 = vmul.f32 %v5363_v38, %v2897_v60 }
 0x289   : > { %v5506_v23 = vsub.f32 %v5219_v29, %v1566_v2  ;;  %v1563_v24 = vmul.f32 0.0078125, %v1499_v22  ;;  %3953 = vmatprep.mubr.msk.bf16.mxu0 %vm633_vm0, %v3025_v56  ;;  %v1629_v45 = vmul.f32 %v5502_v21, %v5502_v21  ;;  %v2934_v54 = vmul.f32 %v5363_v38, %v2898_v17  ;;  %v4076_v17 = vld [vmem:[%s6128_s6 + $0x8] sm:$0xff]  }
 0x28a   : > { %v1501_v51 = vpop.xlane.xlu0 %1500  ;;  %v2969_v37 = vadd.f32 %v5371_v19, %v2933_v9  ;;  %3891 = vmatprep.subr.bf16.mxu1 %v4076_v17 }
 0x28b   : > { %v5514_v36 = vsub.f32 %v5226_v61, %v1563_v24  ;;  %v1564_v59 = vmul.f32 0.0078125, %v1501_v51  ;;  %1663 = vadd.xlane.f32.xlu1 %v1629_v45  ;;  %v1630_v29 = vmul.f32 %v5506_v23, %v5506_v23  ;;  %v2970_v13 = vadd.f32 %v5371_v19, %v2934_v54  ;;  %3892 = vmatpush3.bf16.msra.mxu1 %v4076_v17 }
 0x28c   : > { %v4116_v15 = vpop.eup %4115  ;;  %v2747_v46 = vpop.xlane.xlu1 %2746  ;;  %v3001_v30 = vmax.f32 %v2969_v37, 0.0 }
 0x28d   : > { %v2899_v41 = vmul.f32 %v4116_v15, %v5195_v5  ;;  %v5521_v43 = vsub.f32 %v5232_v48, %v1564_v59  ;;  %v2805_v12 = vmul.f32 0.03125, %v2747_v46  ;;  %1665 = vadd.xlane.f32.xlu0 %v1630_v29  ;;  %v1627_v61 = vmul.f32 %v5514_v36, %v5514_v36  ;;  %v4077_v59 = vld [vmem:[%s6128_s6 + $0x10] sm:$0xff]  }
 0x28e   : > { %v4118_v4 = vpop.eup %4117  ;;  %v2750_v47 = vpop.xlane.xlu0 %2749  ;;  %v3002_v0 = vmax.f32 %v2970_v13, 0.0  ;;  %3893 = vmatprep.subr.bf16.mxu1 %v4077_v59 }
 0x28f   : > { %v2900_v27 = vmul.f32 %v4118_v4, %v5198_v20  ;;  %v2837_v55 = vadd.f32 1e-05, %v2805_v12  ;;  %v2806_v31 = vmul.f32 0.03125, %v2750_v47  ;;  %1659 = vadd.xlane.f32.xlu1 %v1627_v61  ;;  %v1628_v5 = vmul.f32 %v5521_v43, %v5521_v43  ;;  %3894 = vmatpush3.bf16.msra.mxu1 %v4077_v59 }
 0x290   : > { %v2753_v60 = vpop.xlane.xlu1 %2752  ;;  %v3026_v48 = vpack.c.bf16 %v3002_v0, %v3001_v30  ;;  %v2935_v1 = vmul.f32 %v5363_v38, %v2899_v41 }
 0x291   : > { %4119 = vrsqrt.f32 %v2837_v55  ;;  %v2838_v50 = vadd.f32 1e-05, %v2806_v31  ;;  %v2807_v34 = vmul.f32 0.03125, %v2753_v60  ;;  %1661 = vadd.xlane.f32.xlu0 %v1628_v5  ;;  %v2936_v63 = vmul.f32 %v5363_v38, %v2900_v27 }
 0x292   : > { %3954 = vmatmul.mubr.msk.bf16.gmra.mrb[92].mxu0 %vm633_vm0, %v3026_v48  ;;  %v2756_v7 = vpop.xlane.xlu0 %2755  ;;  %v2971_v20 = vadd.f32 %v5371_v19, %v2935_v1 }
 0x293   : > { %4121 = vrsqrt.f32 %v2838_v50  ;;  %v2839_v2 = vadd.f32 1e-05, %v2807_v34  ;;  %v2808_v56 = vmul.f32 0.03125, %v2756_v7  ;;  %v2972_v22 = vadd.f32 %v5371_v19, %v2936_v63 }
 0x294   : > { %v1511_v9 = vpop.xlane.xlu1 %1510  ;;  %v3003_v24 = vmax.f32 %v2971_v20, 0.0 }
 0x295   : > { %4123 = vrsqrt.f32 %v2839_v2  ;;  %v2840_v45 = vadd.f32 1e-05, %v2808_v56  ;;  %v1569_v54 = vmul.f32 0.0078125, %v1511_v9  ;;  %v3004_v51 = vmax.f32 %v2972_v22, 0.0 }
 0x296   : > { %v1513_v37 = vpop.xlane.xlu0 %1512 }
 0x297   : > { %4125 = vrsqrt.f32 %v2840_v45  ;;  %v5540_v29 = vsub.f32 %v5253_v42, %v1569_v54  ;;  %v1570_v13 = vmul.f32 0.0078125, %v1513_v37  ;;  %v3027_v15 = vpack.c.bf16 %v3004_v51, %v3003_v24  ;;  %v4078_v51 = vld [vmem:[%s6128_s6 + $0x18] sm:$0xff]  }
 0x298   : > { %v1507_v46 = vpop.xlane.xlu1 %1506  ;;  %3895 = vmatprep.subr.bf16.mxu1 %v4078_v51 }
 0x299   : > { %v5543_v41 = vsub.f32 %v5259_v25, %v1570_v13  ;;  %v1567_v12 = vmul.f32 0.0078125, %v1507_v46  ;;  %3957 = vmatprep.mubr.msk.bf16.mxu0 %vm633_vm0, %v3027_v15  ;;  %v1633_v61 = vmul.f32 %v5540_v29, %v5540_v29  ;;  %3896 = vmatpush3.bf16.msra.mxu1 %v4078_v51 }
 0x29a   : > { %v1509_v4 = vpop.xlane.xlu0 %1508 }
 0x29b   : > { %v4120_v47 = vpop.eup %4119  ;;  %v5549_v30 = vsub.f32 %v5266_v26, %v1567_v12  ;;  %v1568_v42 = vmul.f32 0.0078125, %v1509_v4  ;;  %1671 = vadd.xlane.f32.xlu1 %v1633_v61  ;;  %v1634_v0 = vmul.f32 %v5543_v41, %v5543_v41 }
 0x29c   : > { %v2901_v25 = vmul.f32 %v4120_v47, %v5216_v11  ;;  %v2759_v27 = vpop.xlane.xlu1 %2758  ;;  %v4079_v47 = vld [vmem:[%s6128_s6 + $0x20] sm:$0xff]  }
 0x29d   : > { %v4122_v55 = vpop.eup %4121  ;;  %v5555_v31 = vsub.f32 %v5272_v3, %v1568_v42  ;;  %v2809_v5 = vmul.f32 0.03125, %v2759_v27  ;;  %1673 = vadd.xlane.f32.xlu0 %v1634_v0  ;;  %v1631_v60 = vmul.f32 %v5549_v30, %v5549_v30  ;;  %3897 = vmatprep.subr.bf16.mxu1 %v4079_v47 }
 0x29e   : > { %v2902_v26 = vmul.f32 %v4122_v55, %v5223_v44  ;;  %v2762_v48 = vpop.xlane.xlu0 %2761  ;;  %v2937_v1 = vmul.f32 %v5363_v38, %v2901_v25  ;;  %3898 = vmatpush3.bf16.msra.mxu1 %v4079_v47  ;;  %v6199_v47 = vld [vmem:[#allocation13_spill] sm:$0xff] }
 0x29f   : > { %v4124_v50 = vpop.eup %4123  ;;  %v2841_v34 = vadd.f32 1e-05, %v2809_v5  ;;  %v2810_v63 = vmul.f32 0.03125, %v2762_v48  ;;  %1667 = vadd.xlane.f32.xlu1 %v1631_v60  ;;  %v1632_v11 = vmul.f32 %v5555_v31, %v5555_v31  ;;  %v6193_v48 = vld [vmem:[#allocation7_spill] sm:$0xff] }
 0x2a0   : > { %v2903_v3 = vmul.f32 %v4124_v50, %v5235_v28  ;;  %v2938_v7 = vmul.f32 %v5363_v38, %v2902_v26  ;;  %v2973_v20 = vadd.f32 %v5371_v19, %v2937_v1  ;;  %v4080_v1 = vld [vmem:[%s6128_s6 + $0x28] sm:$0xff]  }
 0x2a1   : > { %v4126_v17 = vpop.eup %4125  ;;  %4127 = vrsqrt.f32 %v2841_v34  ;;  %v2842_v2 = vadd.f32 1e-05, %v2810_v63  ;;  %1669 = vadd.xlane.f32.xlu0 %v1632_v11  ;;  %v6194_v34 = vld [vmem:[#allocation11_spill] sm:$0xff]  ;;  %v6195_v11 = vld [vmem:[#allocation8_spill] sm:$0xff]  ;;  %3899 = vmatprep.subr.bf16.mxu1 %v4080_v1 }
 0x2a2   : > { %v2904_v44 = vmul.f32 %v4126_v17, %v5241_v58  ;;  %v2974_v56 = vadd.f32 %v5371_v19, %v2938_v7  ;;  %v2939_v22 = vmul.f32 %v5363_v38, %v2903_v3  ;;  %v3005_v24 = vmax.f32 %v2973_v20, 0.0  ;;  %3900 = vmatpush3.bf16.msra.mxu1 %v4080_v1 }
 0x2a3   : > { %4129 = vrsqrt.f32 %v2842_v2 }
 0x2a4   : > { %v1519_v9 = vpop.xlane.xlu1 %1518  ;;  %v3006_v45 = vmax.f32 %v2974_v56, 0.0  ;;  %v2940_v28 = vmul.f32 %v5363_v38, %v2904_v44  ;;  %v2975_v54 = vadd.f32 %v5371_v19, %v2939_v22  ;;  %v4081_v44 = vld [vmem:[%s6128_s6 + $0x30] sm:$0xff]   ;;  %v4082_v22 = vld [vmem:[%s6128_s6 + $0x38] sm:$0xff]  }
 0x2a5   : > { %v1573_v37 = vmul.f32 0.0078125, %v1519_v9  ;;  %3901 = vmatprep.subr.bf16.mxu1 %v4081_v44 }
 0x2a6   : > { %v1521_v59 = vpop.xlane.xlu0 %1520  ;;  %v3028_v13 = vpack.c.bf16 %v3006_v45, %v3005_v24  ;;  %v2976_v58 = vadd.f32 %v5371_v19, %v2940_v28  ;;  %v3007_v61 = vmax.f32 %v2975_v54, 0.0  ;;  %3902 = vmatpush3.bf16.msra.mxu1 %v4081_v44  ;;  %v6196_v54 = vld [vmem:[#allocation18_spill] sm:$0xff] }
 0x2a7   : > { %v5576_v15 = vsub.f32 %v5281_v32, %v1573_v37  ;;  %v1574_v46 = vmul.f32 0.0078125, %v1521_v59  ;;  %3903 = vmatprep.subr.bf16.mxu1 %v4082_v22  ;;  %v2625_v51 = vmul.f32 0.03125, %v6196_v54 }
 0x2a8   : > { %3958 = vmatmul.mubr.msk.bf16.gmra.mrb[96].mxu0 %vm633_vm0, %v3028_v13  ;;  %v1515_v12 = vpop.xlane.xlu1 %1514  ;;  %v3008_v4 = vmax.f32 %v2976_v58, 0.0  ;;  %v6197_v13 = vld [vmem:[#allocation12_spill] sm:$0xff] }
 0x2a9   : > { %v5583_v42 = vsub.f32 %v5284_v57, %v1574_v46  ;;  %v1571_v0 = vmul.f32 0.0078125, %v1515_v12  ;;  %v1637_v25 = vmul.f32 %v5576_v15, %v5576_v15  ;;  %v6198_v12 = vld [vmem:[#allocation20_spill] sm:$0xff] }
 0x2aa   : > { %v1517_v32 = vpop.xlane.xlu0 %1516  ;;  %v3029_v27 = vpack.c.bf16 %v3008_v4, %v3007_v61  ;;  %3904 = vmatpush3.bf16.msra.mxu1 %v4082_v22  ;;  %v2626_v61 = vmul.f32 0.03125, %v6198_v12  ;;  %v6206_v12 = vld [vmem:[#allocation21_spill] sm:$0xff] }
 0x2ab   : > { %v4128_v55 = vpop.eup %4127  ;;  %v5588_v5 = vsub.f32 %v5288_v8, %v1571_v0  ;;  %v1572_v60 = vmul.f32 0.0078125, %v1517_v32  ;;  %1679 = vadd.xlane.f32.xlu1 %v1637_v25  ;;  %v1638_v26 = vmul.f32 %v5583_v42, %v5583_v42 }
 0x2ac   : > { %v2905_v57 = vmul.f32 %v4128_v55, %v6193_v48  ;;  %3961 = vmatprep.mubr.msk.bf16.mxu0 %vm633_vm0, %v3029_v27  ;;  %v6200_v27 = vld [vmem:[#allocation9_spill] sm:$0xff] }
 0x2ad   : > { %v4130_v50 = vpop.eup %4129  ;;  %v5598_v63 = vsub.f32 %v6194_v34, %v1572_v60  ;;  %1681 = vadd.xlane.f32.xlu0 %v1638_v26  ;;  %v1635_v8 = vmul.f32 %v5588_v5, %v5588_v5  ;;  %v5627_v55 = vsub.f32 %v6200_v27, %v2625_v51  ;;  %v6201_v26 = vld [vmem:[#allocation14_spill] sm:$0xff]  ;;  %v6204_v51 = vld [vmem:[#allocation19_spill] sm:$0xff] }
 0x2ae   : > { %v2906_v3 = vmul.f32 %v4130_v50, %v6195_v11  ;;  %v2941_v7 = vmul.f32 %v5363_v38, %v2905_v57  ;;  %v6202_v50 = vld [vmem:[#allocation10_spill] sm:$0xff] }
 0x2af   : > { %1675 = vadd.xlane.f32.xlu1 %v1635_v8  ;;  %v1636_v20 = vmul.f32 %v5598_v63, %v5598_v63  ;;  %v5635_v34 = vsub.f32 %v6202_v50, %v2626_v61  ;;  %v6203_v8 = vld [vmem:[#allocation15_spill] sm:$0xff] }
 0x2b0   : > { %v2942_v17 = vmul.f32 %v5363_v38, %v2906_v3  ;;  %v2977_v2 = vadd.f32 %v5371_v19, %v2941_v7  ;;  %v2689_v7 = vmul.f32 %v5627_v55, %v5627_v55 }
 0x2b1   : > { %1677 = vadd.xlane.f32.xlu0 %v1636_v20 }
 0x2b2   : > { %v2978_v56 = vadd.f32 %v5371_v19, %v2942_v17  ;;  %v3009_v24 = vmax.f32 %v2977_v2, 0.0  ;;  %v2690_v17 = vmul.f32 %v5635_v34, %v5635_v34  ;;  %v2781_v2 = vsel %vm633_vm0, %v2689_v7, 0.0 }
 0x2b4   : > { %v1527_v9 = vpop.xlane.xlu1 %1526  ;;  %v3010_v45 = vmax.f32 %v2978_v56, 0.0  ;;  %v2784_v56 = vsel %vm633_vm0, %v2690_v17, 0.0 }
 0x2b5   : > { %v1577_v28 = vmul.f32 0.0078125, %v1527_v9 }
 0x2b6   : > { %v1529_v37 = vpop.xlane.xlu0 %1528  ;;  %v3030_v59 = vpack.c.bf16 %v3010_v45, %v3009_v24 }
 0x2b7   : > { %v5617_v58 = vsub.f32 %v6197_v13, %v1577_v28  ;;  %v1578_v46 = vmul.f32 0.0078125, %v1529_v37  ;;  %v6205_v13 = vld [vmem:[#allocation16_spill] sm:$0xff] }
 0x2b8   : > { %3962 = vmatmul.mubr.msk.bf16.gmra.mrb[100].mxu0 %vm633_vm0, %v3030_v59  ;;  %v1523_v4 = vpop.xlane.xlu1 %1522 }
 0x2b9   : > { %v5622_v0 = vsub.f32 %v6199_v47, %v1578_v46  ;;  %v1575_v25 = vmul.f32 0.0078125, %v1523_v4  ;;  %v1641_v32 = vmul.f32 %v5617_v58, %v5617_v58  ;;  %v6207_v47 = vld [vmem:[#allocation17_spill] sm:$0xff] }
 0x2ba   : > { %v1525_v60 = vpop.xlane.xlu0 %1524 }
 0x2bb   : > { %v5630_v48 = vsub.f32 %v6201_v26, %v1575_v25  ;;  %v1576_v57 = vmul.f32 0.0078125, %v1525_v60  ;;  %1687 = vadd.xlane.f32.xlu1 %v1641_v32  ;;  %v1642_v1 = vmul.f32 %v5622_v0, %v5622_v0 }
 0x2bd   : > { %v5638_v11 = vsub.f32 %v6203_v8, %v1576_v57  ;;  %1689 = vadd.xlane.f32.xlu0 %v1642_v1  ;;  %v1639_v3 = vmul.f32 %v5630_v48, %v5630_v48 }
 0x2bf   : > { %1683 = vadd.xlane.f32.xlu1 %v1639_v3  ;;  %v1640_v20 = vmul.f32 %v5638_v11, %v5638_v11 }
 0x2c1   : > { %1685 = vadd.xlane.f32.xlu0 %v1640_v20  ;;  %v6208_v20 = vld [vmem:[#allocation25_spill] sm:$0xff] }
 0x2c3   : > { %2782 = vadd.xlane.f32.xlu1 %v2781_v2 }
 0x2c4   : > { %v1535_v44 = vpop.xlane.xlu1 %1534 }
 0x2c5   : > { %2785 = vadd.xlane.f32.xlu0 %v2784_v56  ;;  %v1581_v24 = vmul.f32 0.0078125, %v1535_v44  ;;  %v6209_v44 = vld [vmem:[#allocation22_spill] sm:$0xff] }
 0x2c6   : > { %v1537_v22 = vpop.xlane.xlu0 %1536 }
 0x2c7   : > { %v1582_v54 = vmul.f32 0.0078125, %v1537_v22  ;;  %v5654_v46 = vsub.f32 %v6205_v13, %v1581_v24  ;;  %v6210_v22 = vld [vmem:[#allocation26_spill] sm:$0xff] }
 0x2c8   : > { %v1531_v9 = vpop.xlane.xlu1 %1530 }
 0x2c9   : > { %v1579_v45 = vmul.f32 0.0078125, %v1531_v9  ;;  %v5662_v25 = vsub.f32 %v6207_v47, %v1582_v54  ;;  %v1645_v27 = vmul.f32 %v5654_v46, %v5654_v46 }
 0x2ca   : > { %v1533_v28 = vpop.xlane.xlu0 %1532 }
 0x2cb   : > { %v5651_v37 = vsub.f32 %v6204_v51, %v1579_v45  ;;  %v1580_v59 = vmul.f32 0.0078125, %v1533_v28  ;;  %v1646_v60 = vmul.f32 %v5662_v25, %v5662_v25  ;;  %v6211_v45 = vld [vmem:[#allocation24_spill] sm:$0xff] }
 0x2cd   : > { %v5657_v61 = vsub.f32 %v6206_v12, %v1580_v59  ;;  %v1643_v4 = vmul.f32 %v5651_v37, %v5651_v37 }
 0x2cf   : > { %1691 = vadd.xlane.f32.xlu1 %v1643_v4  ;;  %v1644_v32 = vmul.f32 %v5657_v61, %v5657_v61 }
 0x2d1   : > { %1693 = vadd.xlane.f32.xlu0 %v1644_v32 }
 0x2d3   : > { %1695 = vadd.xlane.f32.xlu1 %v1645_v27 }
 0x2d4   : > { %v1543_v26 = vpop.xlane.xlu1 %1542 }
 0x2d5   : > { %1697 = vadd.xlane.f32.xlu0 %v1646_v60  ;;  %v1585_v50 = vmul.f32 0.0078125, %v1543_v26 }
 0x2d6   : > { %v1545_v57 = vpop.xlane.xlu0 %1544 }
 0x2d7   : > { %v1586_v7 = vmul.f32 0.0078125, %v1545_v57  ;;  %v5674_v56 = vsub.f32 %v6209_v44, %v1585_v50 }
 0x2d8   : > { %v1539_v1 = vpop.xlane.xlu1 %1538 }
 0x2d9   : > { %v1583_v8 = vmul.f32 0.0078125, %v1539_v1  ;;  %v5682_v28 = vsub.f32 %v6211_v45, %v1586_v7  ;;  %v1649_v51 = vmul.f32 %v5674_v56, %v5674_v56 }
 0x2da   : > { %v1541_v3 = vpop.xlane.xlu0 %1540 }
 0x2db   : > { %v5671_v17 = vsub.f32 %v6208_v20, %v1583_v8  ;;  %v1584_v2 = vmul.f32 0.0078125, %v1541_v3  ;;  %v1650_v59 = vmul.f32 %v5682_v28, %v5682_v28  ;;  %v6212_v3 = vld [vmem:[#allocation27_spill] sm:$0xff] }
 0x2dd   : > { %v5677_v9 = vsub.f32 %v6210_v22, %v1584_v2  ;;  %v1647_v24 = vmul.f32 %v5671_v17, %v5671_v17 }
 0x2df   : > { %1699 = vadd.xlane.f32.xlu1 %v1647_v24  ;;  %v1648_v54 = vmul.f32 %v5677_v9, %v5677_v9 }
 0x2e1   : > { %1701 = vadd.xlane.f32.xlu0 %v1648_v54 }
 0x2e3   : > { %1703 = vadd.xlane.f32.xlu1 %v1649_v51 }
 0x2e4   : > { %v1551_v13 = vpop.xlane.xlu1 %1550 }
 0x2e5   : > { %1705 = vadd.xlane.f32.xlu0 %v1650_v59  ;;  %v1589_v47 = vmul.f32 0.0078125, %v1551_v13 }
 0x2e6   : > { %v1553_v12 = vpop.xlane.xlu0 %1552 }
 0x2e7   : > { %v1590_v60 = vmul.f32 0.0078125, %v1553_v12  ;;  %v5694_v1 = vsub.f32 %v5382_v18, %v1589_v47 }
 0x2e8   : > { %v1547_v4 = vpop.xlane.xlu1 %1546 }
 0x2e9   : > { %v1587_v32 = vmul.f32 0.0078125, %v1547_v4  ;;  %v5702_v7 = vsub.f32 %v6212_v3, %v1590_v60 }
 0x2ea   : > { %v1549_v27 = vpop.xlane.xlu0 %1548 }
 0x2eb   : > { %v5691_v26 = vsub.f32 %v5391_v40, %v1587_v32  ;;  %v1588_v57 = vmul.f32 0.0078125, %v1549_v27  ;;  %v1653_v40 = vmul.f32 %v5694_v1, %v5694_v1  ;;  %v1654_v18 = vmul.f32 %v5702_v7, %v5702_v7 }
 0x2ed   : > { %v5697_v50 = vsub.f32 %v5398_v39, %v1588_v57  ;;  %v1651_v8 = vmul.f32 %v5691_v26, %v5691_v26 }
 0x2ef   : > { %1707 = vadd.xlane.f32.xlu1 %v1651_v8  ;;  %v1652_v20 = vmul.f32 %v5697_v50, %v5697_v50 }
 0x2f1   : > { %1709 = vadd.xlane.f32.xlu0 %v1652_v20 }
 0x2f3   : > { %1711 = vadd.xlane.f32.xlu1 %v1653_v40 }
 0x2f4   : > { %v1559_v39 = vpop.xlane.xlu1 %1558 }
 0x2f5   : > { %1713 = vadd.xlane.f32.xlu0 %v1654_v18  ;;  %v1593_v22 = vmul.f32 0.0078125, %v1559_v39 }
 0x2f6   : > { %v1561_v2 = vpop.xlane.xlu0 %1560 }
 0x2f7   : > { %v1594_v54 = vmul.f32 0.0078125, %v1561_v2  ;;  %v5714_v12 = vsub.f32 %v5417_v6, %v1593_v22 }
 0x2f8   : > { %v1555_v44 = vpop.xlane.xlu1 %1554 }
 0x2f9   : > { %v1591_v24 = vmul.f32 0.0078125, %v1555_v44  ;;  %v5722_v60 = vsub.f32 %v5425_v53, %v1594_v54 }
 0x2fa   : > { %v1557_v45 = vpop.xlane.xlu0 %1556 }
 0x2fb   : > { %v5711_v51 = vsub.f32 %v5433_v62, %v1591_v24  ;;  %v1592_v59 = vmul.f32 0.0078125, %v1557_v45  ;;  %v1658_v53 = vmul.f32 %v5722_v60, %v5722_v60 }
 0x2fc   : > { %v2765_v13 = vpop.xlane.xlu1 %2764 }
 0x2fd   : > { %v5717_v4 = vsub.f32 %v5444_v35, %v1592_v59  ;;  %v2811_v47 = vmul.f32 0.03125, %v2765_v13  ;;  %v1655_v32 = vmul.f32 %v5711_v51, %v5711_v51  ;;  %v1657_v35 = vmul.f32 %v5714_v12, %v5714_v12 }
 0x2fe   : > { %v2768_v27 = vpop.xlane.xlu0 %2767 }
 0x2ff   : > { %v2843_v57 = vadd.f32 1e-05, %v2811_v47  ;;  %v2812_v8 = vmul.f32 0.03125, %v2768_v27  ;;  %1715 = vadd.xlane.f32.xlu1 %v1655_v32  ;;  %v1656_v62 = vmul.f32 %v5717_v4, %v5717_v4 }
 0x300   : > { %v2771_v3 = vpop.xlane.xlu1 %2770 }
 0x301   : > { %4131 = vrsqrt.f32 %v2843_v57  ;;  %v2844_v6 = vadd.f32 1e-05, %v2812_v8  ;;  %v2813_v20 = vmul.f32 0.03125, %v2771_v3  ;;  %1717 = vadd.xlane.f32.xlu0 %v1656_v62 }
 0x302   : > { %v2774_v40 = vpop.xlane.xlu0 %2773 }
 0x303   : > { %4133 = vrsqrt.f32 %v2844_v6  ;;  %v2845_v18 = vadd.f32 1e-05, %v2813_v20  ;;  %v2814_v39 = vmul.f32 0.03125, %v2774_v40  ;;  %1719 = vadd.xlane.f32.xlu1 %v1657_v35 }
 0x304   : > { %v2777_v2 = vpop.xlane.xlu1 %2776 }
 0x305   : > { %4135 = vrsqrt.f32 %v2845_v18  ;;  %v2846_v44 = vadd.f32 1e-05, %v2814_v39  ;;  %v2815_v22 = vmul.f32 0.03125, %v2777_v2  ;;  %1721 = vadd.xlane.f32.xlu0 %v1658_v53 }
 0x306   : > { %v2780_v24 = vpop.xlane.xlu0 %2779 }
 0x307   : > { %4137 = vrsqrt.f32 %v2846_v44  ;;  %v2847_v45 = vadd.f32 1e-05, %v2815_v22  ;;  %v2816_v54 = vmul.f32 0.03125, %v2780_v24 }
 0x309   : > { %4139 = vrsqrt.f32 %v2847_v45  ;;  %v2848_v59 = vadd.f32 1e-05, %v2816_v54 }
 0x30b   : > { %v4132_v13 = vpop.eup %4131  ;;  %4141 = vrsqrt.f32 %v2848_v59 }
 0x30c   : > { %v2907_v47 = vmul.f32 %v4132_v13, %v5413_v52 }
 0x30d   : > { %v4134_v32 = vpop.eup %4133 }
 0x30e   : > { %v2908_v27 = vmul.f32 %v4134_v32, %v5420_v16  ;;  %v2943_v57 = vmul.f32 %v5363_v38, %v2907_v47 }
 0x30f   : > { %v4136_v8 = vpop.eup %4135 }
 0x310   : > { %v2909_v62 = vmul.f32 %v4136_v8, %v5440_v14  ;;  %v2944_v3 = vmul.f32 %v5363_v38, %v2908_v27  ;;  %v2979_v6 = vadd.f32 %v5371_v19, %v2943_v57 }
 0x311   : > { %v4138_v20 = vpop.eup %4137 }
 0x312   : > { %v2910_v35 = vmul.f32 %v4138_v20, %v5451_v49  ;;  %v2980_v40 = vadd.f32 %v5371_v19, %v2944_v3  ;;  %v2945_v18 = vmul.f32 %v5363_v38, %v2909_v62  ;;  %v3011_v39 = vmax.f32 %v2979_v6, 0.0 }
 0x313   : > { %v4140_v52 = vpop.eup %4139 }
 0x314   : > { %v2911_v16 = vmul.f32 %v4140_v52, %v5457_v33  ;;  %v3012_v53 = vmax.f32 %v2980_v40, 0.0  ;;  %v2946_v2 = vmul.f32 %v5363_v38, %v2910_v35  ;;  %v2981_v14 = vadd.f32 %v5371_v19, %v2945_v18 }
 0x315   : > { %v4142_v44 = vpop.eup %4141 }
 0x316   : > { %v2912_v22 = vmul.f32 %v4142_v44, %v5466_v10  ;;  %v3031_v24 = vpack.c.bf16 %v3012_v53, %v3011_v39  ;;  %v2982_v45 = vadd.f32 %v5371_v19, %v2946_v2  ;;  %v2947_v49 = vmul.f32 %v5363_v38, %v2911_v16 }
 0x317   : > { %v3013_v59 = vmax.f32 %v2981_v14, 0.0 }
 0x318   : > { %3965 = vmatprep.mubr.msk.bf16.mxu0 %vm633_vm0, %v3031_v24  ;;  %v1664_v54 = vpop.xlane.xlu1 %1663  ;;  %v3014_v13 = vmax.f32 %v2982_v45, 0.0  ;;  %v2948_v33 = vmul.f32 %v5363_v38, %v2912_v22  ;;  %v2983_v32 = vadd.f32 %v5371_v19, %v2947_v49  ;;  %v4340_v22 = vld [vmem:[%s6130_s8] sm:$0x7]  ;;  %v6213_v24 = vld [vmem:[#allocation23_spill] sm:$0xff] }
 0x319   : > { %v1725_v47 = vmul.f32 0.0078125, %v1664_v54  ;;  %v5755_v45 = vrot.slane %v4340_v22, %v6213_v24 }
 0x31a   : > { %v1666_v27 = vpop.xlane.xlu0 %1665  ;;  %v3032_v57 = vpack.c.bf16 %v3014_v13, %v3013_v59  ;;  %v2984_v8 = vadd.f32 %v5371_v19, %v2948_v33  ;;  %v3015_v6 = vmax.f32 %v2983_v32, 0.0 }
 0x31b   : > { %v1757_v10 = vadd.f32 1e-05, %v1725_v47  ;;  %v1726_v62 = vmul.f32 0.0078125, %v1666_v27  ;;  %v6214_v27 = vld [vmem:[#allocation5_spill] sm:$0xff] }
 0x31c   : > { %3966 = vmatmul.mubr.msk.bf16.gmra.mrb[104].mxu0 %vm633_vm0, %v3032_v57  ;;  %v1660_v3 = vpop.xlane.xlu1 %1659  ;;  %v3016_v20 = vmax.f32 %v2984_v8, 0.0  ;;  %v6215_v57 = vsub.s32 2, %v6214_v27 }
 0x31d   : > { %4143 = vrsqrt.f32 %v1757_v10  ;;  %v1758_v35 = vadd.f32 1e-05, %v1726_v62  ;;  %v1723_v40 = vmul.f32 0.0078125, %v1660_v3 }
 0x31e   : > { %v1662_v18 = vpop.xlane.xlu0 %1661  ;;  %v3033_v52 = vpack.c.bf16 %v3016_v20, %v3015_v6  ;;  %v5761_v8 = vrot.slane %v4340_v22, %v6215_v57 }
 0x31f   : > { %4145 = vrsqrt.f32 %v1758_v35  ;;  %v1755_v39 = vadd.f32 1e-05, %v1723_v40  ;;  %v1724_v16 = vmul.f32 0.0078125, %v1662_v18 }
 0x320   : > { %3969 = vmatprep.mubr.msk.bf16.mxu0 %vm633_vm0, %v3033_v52 }
 0x321   : > { %4147 = vrsqrt.f32 %v1755_v39  ;;  %v1756_v53 = vadd.f32 1e-05, %v1724_v16 }
 0x323   : > { %4149 = vrsqrt.f32 %v1756_v53 }
 0x327   : > { %v4144_v2 = vpop.eup %4143 }
 0x328   : > { %v1672_v14 = vpop.xlane.xlu1 %1671  ;;  %v1821_v49 = vmul.f32 %v4144_v2, %v5502_v21 }
 0x329   : > { %v4146_v44 = vpop.eup %4145  ;;  %v1729_v54 = vmul.f32 0.0078125, %v1672_v14 }
 0x32a   : > { %v1822_v59 = vmul.f32 %v4146_v44, %v5506_v23  ;;  %v1674_v13 = vpop.xlane.xlu0 %1673  ;;  %v1857_v20 = vmul.f32 %v5755_v45, %v1821_v49 }
 0x32b   : > { %v4148_v33 = vpop.eup %4147  ;;  %v1761_v47 = vadd.f32 1e-05, %v1729_v54  ;;  %v1730_v32 = vmul.f32 0.0078125, %v1674_v13 }
 0x32c   : > { %v1858_v10 = vmul.f32 %v5755_v45, %v1822_v59  ;;  %v1668_v62 = vpop.xlane.xlu1 %1667  ;;  %v1819_v3 = vmul.f32 %v4148_v33, %v5514_v36  ;;  %v1893_v14 = vadd.f32 %v5761_v8, %v1857_v20 }
 0x32d   : > { %v4150_v6 = vpop.eup %4149  ;;  %4151 = vrsqrt.f32 %v1761_v47  ;;  %v1762_v21 = vadd.f32 1e-05, %v1730_v32  ;;  %v1727_v35 = vmul.f32 0.0078125, %v1668_v62 }
 0x32e   : > { %v1670_v23 = vpop.xlane.xlu0 %1669  ;;  %v1820_v40 = vmul.f32 %v4150_v6, %v5521_v43  ;;  %v1855_v18 = vmul.f32 %v5755_v45, %v1819_v3  ;;  %v1894_v16 = vadd.f32 %v5761_v8, %v1858_v10  ;;  %v1925_v54 = vmax.f32 %v1893_v14, 0.0 }
 0x32f   : > { %4153 = vrsqrt.f32 %v1762_v21  ;;  %v1759_v52 = vadd.f32 1e-05, %v1727_v35  ;;  %v1728_v39 = vmul.f32 0.0078125, %v1670_v23 }
 0x330   : > { %v1856_v53 = vmul.f32 %v5755_v45, %v1820_v40  ;;  %v1891_v36 = vadd.f32 %v5761_v8, %v1855_v18  ;;  %v1926_v22 = vmax.f32 %v1894_v16, 0.0 }
 0x331   : > { %4155 = vrsqrt.f32 %v1759_v52  ;;  %v1760_v2 = vadd.f32 1e-05, %v1728_v39 }
 0x332   : > { %v1892_v44 = vadd.f32 %v5761_v8, %v1856_v53  ;;  %v1923_v43 = vmax.f32 %v1891_v36, 0.0  ;;  %v1957_v32 = vpack.c.bf16 %v1926_v22, %v1925_v54 }
 0x333   : > { %4157 = vrsqrt.f32 %v1760_v2 }
 0x334   : > { %v1924_v49 = vmax.f32 %v1892_v44, 0.0 }
 0x336   : > { %v5773_v59 = vpop.f32.mrb[80].mxu0  ;;  %v1956_v13 = vpack.c.bf16 %v1924_v49, %v1923_v43 }
 0x337   : > { %v4152_v33 = vpop.eup %4151  ;;  %v5775_v47 = vpop.f32.mrb[81].mxu0 }
 0x338   : > { %3905 = vmatprep.mubr.bf16.mxu1 %v1956_v13  ;;  %v5777_v27 = vpop.f32.mrb[82].mxu0  ;;  %v1680_v57 = vpop.xlane.xlu1 %1679  ;;  %v1825_v6 = vmul.f32 %v4152_v33, %v5540_v29 }
 0x339   : > { %v4154_v10 = vpop.eup %4153  ;;  %v1733_v62 = vmul.f32 0.0078125, %v1680_v57  ;;  %3906 = vmatmul.mubr.bf16.vlgmr.msra.gmra.mrb[80].mxu1 %v1957_v32  ;;  %v5779_v3 = vpop.f32.mrb[83].mxu0 }
 0x33a   : > { %v1682_v20 = vpop.xlane.xlu0 %1681  ;;  %v1826_v21 = vmul.f32 %v4154_v10, %v5543_v41  ;;  %v1861_v2 = vmul.f32 %v5755_v45, %v1825_v6 }
 0x33b   : > { %v4156_v35 = vpop.eup %4155  ;;  %v1765_v23 = vadd.f32 1e-05, %v1733_v62  ;;  %v1734_v40 = vmul.f32 0.0078125, %v1682_v20 }
 0x33c   : > { %v1676_v18 = vpop.xlane.xlu1 %1675  ;;  %v1823_v52 = vmul.f32 %v4156_v35, %v5549_v30  ;;  %v1862_v39 = vmul.f32 %v5755_v45, %v1826_v21  ;;  %v1897_v13 = vadd.f32 %v5761_v8, %v1861_v2 }
 0x33d   : > { %v4158_v16 = vpop.eup %4157  ;;  %v1766_v53 = vadd.f32 1e-05, %v1734_v40  ;;  %v1731_v36 = vmul.f32 0.0078125, %v1676_v18  ;;  %4159 = vrsqrt.f32 %v1765_v23 }
 0x33e   : > { %v1678_v14 = vpop.xlane.xlu0 %1677  ;;  %v1824_v29 = vmul.f32 %v4158_v16, %v5555_v31  ;;  %v1859_v44 = vmul.f32 %v5755_v45, %v1823_v52  ;;  %v1898_v43 = vadd.f32 %v5761_v8, %v1862_v39  ;;  %v1929_v6 = vmax.f32 %v1897_v13, 0.0 }
 0x33f   : > { %v1763_v41 = vadd.f32 1e-05, %v1731_v36  ;;  %v1732_v22 = vmul.f32 0.0078125, %v1678_v14  ;;  %4161 = vrsqrt.f32 %v1766_v53 }
 0x340   : > { %v1860_v30 = vmul.f32 %v5755_v45, %v1824_v29  ;;  %v1895_v49 = vadd.f32 %v5761_v8, %v1859_v44  ;;  %v1930_v32 = vmax.f32 %v1898_v43, 0.0 }
 0x341   : > { %4163 = vrsqrt.f32 %v1763_v41  ;;  %v1764_v54 = vadd.f32 1e-05, %v1732_v22 }
 0x342   : > { %v1896_v33 = vadd.f32 %v5761_v8, %v1860_v30  ;;  %v1927_v57 = vmax.f32 %v1895_v49, 0.0  ;;  %v1959_v23 = vpack.c.bf16 %v1930_v32, %v1929_v6 }
 0x343   : > { %4165 = vrsqrt.f32 %v1764_v54 }
 0x344   : > { %v5793_v31 = vpop.f32.mrb[84].mxu0  ;;  %v1928_v10 = vmax.f32 %v1896_v33, 0.0 }
 0x345   : > { %v5795_v62 = vpop.f32.mrb[85].mxu0 }
 0x346   : > { %v5797_v20 = vpop.f32.mrb[86].mxu0  ;;  %v1958_v21 = vpack.c.bf16 %v1928_v10, %v1927_v57 }
 0x347   : > { %v5799_v35 = vpop.f32.mrb[87].mxu0  ;;  %v4160_v40 = vpop.eup %4159 }
 0x348   : > { %3909 = vmatprep.mubr.bf16.mxu1 %v1958_v21  ;;  %v1688_v18 = vpop.xlane.xlu1 %1687  ;;  %v1829_v39 = vmul.f32 %v4160_v40, %v5576_v15 }
 0x349   : > { %v1737_v52 = vmul.f32 0.0078125, %v1688_v18  ;;  %3910 = vmatmul.mubr.bf16.gmra.mrb[84].mxu1 %v1959_v23  ;;  %v4162_v16 = vpop.eup %4161 }
 0x34a   : > { %v1690_v53 = vpop.xlane.xlu0 %1689  ;;  %v1830_v14 = vmul.f32 %v4162_v16, %v5583_v42  ;;  %v1865_v49 = vmul.f32 %v5755_v45, %v1829_v39 }
 0x34b   : > { %v4164_v36 = vpop.eup %4163  ;;  %v1738_v2 = vmul.f32 0.0078125, %v1690_v53  ;;  %v1769_v29 = vadd.f32 1e-05, %v1737_v52 }
 0x34c   : > { %v1684_v44 = vpop.xlane.xlu1 %1683  ;;  %v1827_v41 = vmul.f32 %v4164_v36, %v5588_v5  ;;  %v1866_v54 = vmul.f32 %v5755_v45, %v1830_v14  ;;  %v1901_v40 = vadd.f32 %v5761_v8, %v1865_v49 }
 0x34d   : > { %v4166_v22 = vpop.eup %4165  ;;  %v1770_v43 = vadd.f32 1e-05, %v1738_v2  ;;  %v1735_v30 = vmul.f32 0.0078125, %v1684_v44  ;;  %4167 = vrsqrt.f32 %v1769_v29 }
 0x34e   : > { %v1686_v13 = vpop.xlane.xlu0 %1685  ;;  %v1828_v15 = vmul.f32 %v4166_v22, %v5598_v63  ;;  %v1863_v33 = vmul.f32 %v5755_v45, %v1827_v41  ;;  %v1902_v42 = vadd.f32 %v5761_v8, %v1866_v54  ;;  %v1933_v44 = vmax.f32 %v1901_v40, 0.0 }
 0x34f   : > { %v1767_v32 = vadd.f32 1e-05, %v1735_v30  ;;  %v1736_v57 = vmul.f32 0.0078125, %v1686_v13  ;;  %4169 = vrsqrt.f32 %v1770_v43 }
 0x350   : > { %v2783_v10 = vpop.xlane.xlu1 %2782  ;;  %v1864_v5 = vmul.f32 %v5755_v45, %v1828_v15  ;;  %v1899_v6 = vadd.f32 %v5761_v8, %v1863_v33  ;;  %v1934_v16 = vmax.f32 %v1902_v42, 0.0 }
 0x351   : > { %v1768_v21 = vadd.f32 1e-05, %v1736_v57  ;;  %v2817_v23 = vmul.f32 0.03125, %v2783_v10  ;;  %4171 = vrsqrt.f32 %v1767_v32 }
 0x352   : > { %v2786_v18 = vpop.xlane.xlu0 %2785  ;;  %v1900_v63 = vadd.f32 %v5761_v8, %v1864_v5  ;;  %v1931_v36 = vmax.f32 %v1899_v6, 0.0  ;;  %v1961_v30 = vpack.c.bf16 %v1934_v16, %v1933_v44 }
 0x353   : > { %4173 = vrsqrt.f32 %v1768_v21  ;;  %v2849_v52 = vadd.f32 1e-05, %v2817_v23  ;;  %v2818_v39 = vmul.f32 0.03125, %v2786_v18 }
 0x354   : > { %v5813_v53 = vpop.f32.mrb[88].mxu0  ;;  %v1932_v2 = vmax.f32 %v1900_v63, 0.0 }
 0x355   : > { %4175 = vrsqrt.f32 %v2849_v52  ;;  %v2850_v14 = vadd.f32 1e-05, %v2818_v39  ;;  %v5815_v29 = vpop.f32.mrb[89].mxu0 }
 0x356   : > { %v5817_v41 = vpop.f32.mrb[90].mxu0  ;;  %v1960_v22 = vpack.c.bf16 %v1932_v2, %v1931_v36 }
 0x357   : > { %4177 = vrsqrt.f32 %v2850_v14  ;;  %v5819_v43 = vpop.f32.mrb[91].mxu0  ;;  %v4168_v49 = vpop.eup %4167 }
 0x358   : > { %3913 = vmatprep.mubr.bf16.mxu1 %v1960_v22  ;;  %v1833_v13 = vmul.f32 %v4168_v49, %v5617_v58 }
 0x359   : > { %3914 = vmatmul.mubr.bf16.gmra.mrb[88].mxu1 %v1961_v30  ;;  %v4170_v54 = vpop.eup %4169 }
 0x35a   : > { %v1834_v32 = vmul.f32 %v4170_v54, %v5622_v0  ;;  %v1869_v5 = vmul.f32 %v5755_v45, %v1833_v13 }
 0x35b   : > { %v4172_v15 = vpop.eup %4171 }
 0x35c   : > { %v1692_v33 = vpop.xlane.xlu1 %1691  ;;  %v1831_v10 = vmul.f32 %v4172_v15, %v5630_v48  ;;  %v1870_v23 = vmul.f32 %v5755_v45, %v1834_v32  ;;  %v1905_v16 = vadd.f32 %v5761_v8, %v1869_v5 }
 0x35d   : > { %v4174_v57 = vpop.eup %4173  ;;  %v1739_v42 = vmul.f32 0.0078125, %v1692_v33 }
 0x35e   : > { %v1694_v6 = vpop.xlane.xlu0 %1693  ;;  %v1832_v21 = vmul.f32 %v4174_v57, %v5638_v11  ;;  %v1867_v58 = vmul.f32 %v5755_v45, %v1831_v10  ;;  %v1906_v48 = vadd.f32 %v5761_v8, %v1870_v23 }
 0x35f   : > { %v4176_v40 = vpop.eup %4175  ;;  %v1771_v18 = vadd.f32 1e-05, %v1739_v42  ;;  %v1740_v63 = vmul.f32 0.0078125, %v1694_v6  ;;  %v1937_v42 = vmax.f32 %v1905_v16, 0.0 }
 0x360   : > { %v2913_v52 = vmul.f32 %v4176_v40, %v5627_v55  ;;  %v1696_v39 = vpop.xlane.xlu1 %1695  ;;  %v1868_v0 = vmul.f32 %v5755_v45, %v1832_v21  ;;  %v1903_v14 = vadd.f32 %v5761_v8, %v1867_v58  ;;  %v1938_v54 = vmax.f32 %v1906_v48, 0.0 }
 0x361   : > { %v4178_v36 = vpop.eup %4177  ;;  %4179 = vrsqrt.f32 %v1771_v18  ;;  %v1772_v2 = vadd.f32 1e-05, %v1740_v63  ;;  %v1741_v11 = vmul.f32 0.0078125, %v1696_v39 }
 0x362   : > { %v2914_v44 = vmul.f32 %v4178_v36, %v5635_v34  ;;  %v1698_v22 = vpop.xlane.xlu0 %1697  ;;  %v1904_v30 = vadd.f32 %v5761_v8, %v1868_v0  ;;  %v1935_v13 = vmax.f32 %v1903_v14, 0.0  ;;  %v2949_v33 = vmul.f32 %v5363_v38, %v2913_v52 }
 0x363   : > { %4181 = vrsqrt.f32 %v1772_v2  ;;  %v1773_v55 = vadd.f32 1e-05, %v1741_v11  ;;  %v1742_v49 = vmul.f32 0.0078125, %v1698_v22  ;;  %v1963_v23 = vpack.c.bf16 %v1938_v54, %v1937_v42 }
 0x364   : > { %v1936_v15 = vmax.f32 %v1904_v30, 0.0  ;;  %v2950_v10 = vmul.f32 %v5363_v38, %v2914_v44  ;;  %v2985_v6 = vadd.f32 %v5371_v19, %v2949_v33 }
 0x365   : > { %4183 = vrsqrt.f32 %v1773_v55  ;;  %v1774_v32 = vadd.f32 1e-05, %v1742_v49  ;;  %v5836_v57 = vpop.f32.mrb[92].mxu0 }
 0x366   : > { %v5839_v5 = vpop.f32.mrb[93].mxu0  ;;  %v1962_v34 = vpack.c.bf16 %v1936_v15, %v1935_v13  ;;  %v2986_v40 = vadd.f32 %v5371_v19, %v2950_v10  ;;  %v3017_v63 = vmax.f32 %v2985_v6, 0.0 }
 0x367   : > { %4185 = vrsqrt.f32 %v1774_v32  ;;  %v5842_v21 = vpop.f32.mrb[94].mxu0 }
 0x368   : > { %v5845_v18 = vpop.f32.mrb[95].mxu0  ;;  %3917 = vmatprep.mubr.bf16.mxu1 %v1962_v34  ;;  %v3018_v58 = vmax.f32 %v2986_v40, 0.0 }
 0x369   : > { %3918 = vmatmul.mubr.bf16.gmra.mrb[92].mxu1 %v1963_v23 }
 0x36a   : > { %v3034_v39 = vpack.c.bf16 %v3018_v58, %v3017_v63 }
 0x36b   : > { %v4180_v52 = vpop.eup %4179 }
 0x36c   : > { %v1700_v38 = vpop.xlane.xlu1 %1699  ;;  %v1835_v0 = vmul.f32 %v4180_v52, %v5651_v37  ;;  %3970 = vmatmul.mubr.msk.bf16.gmra.mrb[108].mxu0 %vm633_vm0, %v3034_v39 }
 0x36d   : > { %v4182_v16 = vpop.eup %4181  ;;  %v1743_v48 = vmul.f32 0.0078125, %v1700_v38 }
 0x36e   : > { %v1702_v36 = vpop.xlane.xlu0 %1701  ;;  %v1836_v2 = vmul.f32 %v4182_v16, %v5657_v61  ;;  %v1871_v19 = vmul.f32 %v5755_v45, %v1835_v0 }
 0x36f   : > { %v4184_v11 = vpop.eup %4183  ;;  %v1775_v14 = vadd.f32 1e-05, %v1743_v48  ;;  %v1744_v44 = vmul.f32 0.0078125, %v1702_v36 }
 0x370   : > { %v1704_v22 = vpop.xlane.xlu1 %1703  ;;  %v1872_v30 = vmul.f32 %v5755_v45, %v1836_v2  ;;  %v1907_v55 = vadd.f32 %v5761_v8, %v1871_v19  ;;  %v1837_v49 = vmul.f32 %v4184_v11, %v5654_v46 }
 0x371   : > { %v4186_v37 = vpop.eup %4185  ;;  %4187 = vrsqrt.f32 %v1775_v14  ;;  %v1776_v54 = vadd.f32 1e-05, %v1744_v44  ;;  %v1745_v13 = vmul.f32 0.0078125, %v1704_v22 }
 0x372   : > { %v1706_v15 = vpop.xlane.xlu0 %1705  ;;  %v1908_v33 = vadd.f32 %v5761_v8, %v1872_v30  ;;  %v1838_v61 = vmul.f32 %v4186_v37, %v5662_v25  ;;  %v1873_v32 = vmul.f32 %v5755_v45, %v1837_v49  ;;  %v1939_v34 = vmax.f32 %v1907_v55, 0.0 }
 0x373   : > { %4189 = vrsqrt.f32 %v1776_v54  ;;  %v1777_v42 = vadd.f32 1e-05, %v1745_v13  ;;  %v1746_v10 = vmul.f32 0.0078125, %v1706_v15 }
 0x374   : > { %v1940_v6 = vmax.f32 %v1908_v33, 0.0  ;;  %v1874_v23 = vmul.f32 %v5755_v45, %v1838_v61  ;;  %v1909_v46 = vadd.f32 %v5761_v8, %v1873_v32 }
 0x375   : > { %4191 = vrsqrt.f32 %v1777_v42  ;;  %v1778_v40 = vadd.f32 1e-05, %v1746_v10 }
 0x376   : > { %v1964_v63 = vpack.c.bf16 %v1940_v6, %v1939_v34  ;;  %v1910_v58 = vadd.f32 %v5761_v8, %v1874_v23  ;;  %v1941_v52 = vmax.f32 %v1909_v46, 0.0 }
 0x377   : > { %4193 = vrsqrt.f32 %v1778_v40 }
 0x378   : > { %3921 = vmatprep.mubr.bf16.mxu1 %v1964_v63  ;;  %v1942_v25 = vmax.f32 %v1910_v58, 0.0 }
 0x37a   : > { %v1965_v39 = vpack.c.bf16 %v1942_v25, %v1941_v52 }
 0x37b   : > { %v4188_v38 = vpop.eup %4187  ;;  %v5860_v0 = vpop.f32.mrb[96].mxu0 }
 0x37c   : > { %3922 = vmatmul.mubr.bf16.gmra.mrb[96].mxu1 %v1965_v39  ;;  %v5862_v16 = vpop.f32.mrb[97].mxu0  ;;  %v1708_v48 = vpop.xlane.xlu1 %1707  ;;  %v1839_v36 = vmul.f32 %v4188_v38, %v5671_v17 }
 0x37d   : > { %v4190_v2 = vpop.eup %4189  ;;  %v1747_v19 = vmul.f32 0.0078125, %v1708_v48  ;;  %v5865_v11 = vpop.f32.mrb[98].mxu0 }
 0x37e   : > { %v1710_v14 = vpop.xlane.xlu0 %1709  ;;  %v5867_v44 = vpop.f32.mrb[99].mxu0  ;;  %v1840_v22 = vmul.f32 %v4190_v2, %v5677_v9  ;;  %v1875_v30 = vmul.f32 %v5755_v45, %v1839_v36 }
 0x37f   : > { %v4192_v55 = vpop.eup %4191  ;;  %v1779_v49 = vadd.f32 1e-05, %v1747_v19  ;;  %v1748_v37 = vmul.f32 0.0078125, %v1710_v14 }
 0x380   : > { %v1712_v54 = vpop.xlane.xlu1 %1711  ;;  %v1876_v13 = vmul.f32 %v5755_v45, %v1840_v22  ;;  %v1911_v15 = vadd.f32 %v5761_v8, %v1875_v30  ;;  %v1841_v10 = vmul.f32 %v4192_v55, %v5674_v56 }
 0x381   : > { %v4194_v17 = vpop.eup %4193  ;;  %v1780_v33 = vadd.f32 1e-05, %v1748_v37  ;;  %v1749_v61 = vmul.f32 0.0078125, %v1712_v54  ;;  %4195 = vrsqrt.f32 %v1779_v49 }
 0x382   : > { %v1714_v32 = vpop.xlane.xlu0 %1713  ;;  %v1912_v42 = vadd.f32 %v5761_v8, %v1876_v13  ;;  %v1842_v6 = vmul.f32 %v4194_v17, %v5682_v28  ;;  %v1943_v23 = vmax.f32 %v1911_v15, 0.0  ;;  %v1877_v40 = vmul.f32 %v5755_v45, %v1841_v10 }
 0x383   : > { %v1781_v9 = vadd.f32 1e-05, %v1749_v61  ;;  %v1750_v34 = vmul.f32 0.0078125, %v1714_v32  ;;  %4197 = vrsqrt.f32 %v1780_v33 }
 0x384   : > { %v1944_v46 = vmax.f32 %v1912_v42, 0.0  ;;  %v1878_v58 = vmul.f32 %v5755_v45, %v1842_v6  ;;  %v1913_v25 = vadd.f32 %v5761_v8, %v1877_v40 }
 0x385   : > { %v1782_v63 = vadd.f32 1e-05, %v1750_v34  ;;  %4199 = vrsqrt.f32 %v1781_v9 }
 0x386   : > { %v1966_v52 = vpack.c.bf16 %v1944_v46, %v1943_v23  ;;  %v1914_v39 = vadd.f32 %v5761_v8, %v1878_v58  ;;  %v1945_v56 = vmax.f32 %v1913_v25, 0.0 }
 0x387   : > { %4201 = vrsqrt.f32 %v1782_v63 }
 0x388   : > { %3925 = vmatprep.mubr.bf16.mxu1 %v1966_v52  ;;  %v1946_v38 = vmax.f32 %v1914_v39, 0.0 }
 0x38a   : > { %v1967_v28 = vpack.c.bf16 %v1946_v38, %v1945_v56 }
 0x38b   : > { %v5880_v48 = vpop.f32.mrb[100].mxu0  ;;  %v4196_v36 = vpop.eup %4195 }
 0x38c   : > { %v5882_v2 = vpop.f32.mrb[101].mxu0  ;;  %v1716_v19 = vpop.xlane.xlu1 %1715  ;;  %3926 = vmatmul.mubr.bf16.gmra.mrb[100].mxu1 %v1967_v28  ;;  %v1843_v37 = vmul.f32 %v4196_v36, %v5691_v26 }
 0x38d   : > { %v1751_v14 = vmul.f32 0.0078125, %v1716_v19  ;;  %v5884_v22 = vpop.f32.mrb[102].mxu0  ;;  %v4198_v30 = vpop.eup %4197 }
 0x38e   : > { %v1718_v55 = vpop.xlane.xlu0 %1717  ;;  %v5886_v49 = vpop.f32.mrb[103].mxu0  ;;  %v1844_v33 = vmul.f32 %v4198_v30, %v5697_v50  ;;  %v1879_v9 = vmul.f32 %v5755_v45, %v1843_v37 }
 0x38f   : > { %v1752_v54 = vmul.f32 0.0078125, %v1718_v55  ;;  %v4200_v13 = vpop.eup %4199  ;;  %v1783_v15 = vadd.f32 1e-05, %v1751_v14 }
 0x390   : > { %v1720_v17 = vpop.xlane.xlu1 %1719  ;;  %v1880_v34 = vmul.f32 %v5755_v45, %v1844_v33  ;;  %v1845_v6 = vmul.f32 %v4200_v13, %v5694_v1  ;;  %v1915_v40 = vadd.f32 %v5761_v8, %v1879_v9 }
 0x391   : > { %v4202_v61 = vpop.eup %4201  ;;  %v1753_v32 = vmul.f32 0.0078125, %v1720_v17  ;;  %v1784_v42 = vadd.f32 1e-05, %v1752_v54  ;;  %4203 = vrsqrt.f32 %v1783_v15 }
 0x392   : > { %v1722_v10 = vpop.xlane.xlu0 %1721  ;;  %v1846_v26 = vmul.f32 %v4202_v61, %v5702_v7  ;;  %v1916_v63 = vadd.f32 %v5761_v8, %v1880_v34  ;;  %v1881_v50 = vmul.f32 %v5755_v45, %v1845_v6  ;;  %v1947_v25 = vmax.f32 %v1915_v40, 0.0 }
 0x393   : > { %v1785_v23 = vadd.f32 1e-05, %v1753_v32  ;;  %v1754_v46 = vmul.f32 0.0078125, %v1722_v10  ;;  %4205 = vrsqrt.f32 %v1784_v42 }
 0x394   : > { %v1882_v52 = vmul.f32 %v5755_v45, %v1846_v26  ;;  %v1948_v39 = vmax.f32 %v1916_v63, 0.0  ;;  %v1917_v56 = vadd.f32 %v5761_v8, %v1881_v50 }
 0x395   : > { %v1786_v58 = vadd.f32 1e-05, %v1754_v46  ;;  %4207 = vrsqrt.f32 %v1785_v23 }
 0x396   : > { %v1918_v1 = vadd.f32 %v5761_v8, %v1882_v52  ;;  %v1968_v38 = vpack.c.bf16 %v1948_v39, %v1947_v25  ;;  %v1949_v7 = vmax.f32 %v1917_v56, 0.0 }
 0x397   : > { %4209 = vrsqrt.f32 %v1786_v58 }
 0x398   : > { %v1950_v28 = vmax.f32 %v1918_v1, 0.0  ;;  %3929 = vmatprep.mubr.bf16.mxu1 %v1968_v38 }
 0x39a   : > { %v1969_v36 = vpack.c.bf16 %v1950_v28, %v1949_v7 }
 0x39b   : > { %v4204_v19 = vpop.eup %4203 }
 0x39c   : > { %3930 = vmatmul.mubr.bf16.gmra.mrb[104].mxu1 %v1969_v36  ;;  %v1847_v14 = vmul.f32 %v4204_v19, %v5711_v51 }
 0x39d   : > { %v4206_v30 = vpop.eup %4205 }
 0x39e   : > { %v1848_v55 = vmul.f32 %v4206_v30, %v5717_v4  ;;  %v1883_v37 = vmul.f32 %v5755_v45, %v1847_v14 }
 0x39f   : > { %v4208_v54 = vpop.eup %4207 }
 0x3a0   : > { %v1884_v15 = vmul.f32 %v5755_v45, %v1848_v55  ;;  %v1919_v17 = vadd.f32 %v5761_v8, %v1883_v37  ;;  %v1849_v33 = vmul.f32 %v4208_v54, %v5714_v12  ;;  %v1955_v12 = vld [vmem:[%s6132_s10] sm:$0x3] }
 0x3a1   : > { %v4210_v13 = vpop.eup %4209 }
 0x3a2   : > { %v1850_v61 = vmul.f32 %v4210_v13, %v5722_v60  ;;  %v1920_v32 = vadd.f32 %v5761_v8, %v1884_v15  ;;  %v1885_v42 = vmul.f32 %v5755_v45, %v1849_v33  ;;  %v1951_v10 = vmax.f32 %v1919_v17, 0.0  ;;  %v6216_v13 = vld [vmem:[#allocation6_spill] sm:$0xff] }
 0x3a3   : > { %v5916_v60 = vrot.slane %v1955_v12, %v6213_v24  ;;  %v5946_v15 = vrot.slane %v1955_v12, %v6216_v13 }
 0x3a4   : > { %v1886_v51 = vmul.f32 %v5755_v45, %v1850_v61  ;;  %v1952_v4 = vmax.f32 %v1920_v32, 0.0  ;;  %v1921_v9 = vadd.f32 %v5761_v8, %v1885_v42 }
 0x3a5   : > { %v3146_v45 = vadd.f32 %v5773_v59, %v5916_v60  ;;  %v3138_v40 = vadd.f32 %v5775_v47, %v5916_v60  ;;  %v3149_v63 = vadd.f32 %v5777_v27, %v5916_v60  ;;  %v3141_v58 = vadd.f32 %v5779_v3, %v5916_v60 }
 0x3a6   : > { %v1922_v34 = vadd.f32 %v5761_v8, %v1886_v51  ;;  %v1970_v6 = vpack.c.bf16 %v1952_v4, %v1951_v10  ;;  %v1953_v23 = vmax.f32 %v1921_v9, 0.0  ;;  %v3162_v47 = vadd.f32 %v5793_v31, %v5916_v60 }
 0x3a7   : > { %v3739_v8 = vmul.f32 -1.442695, %v3146_v45  ;;  %v3737_v50 = vmul.f32 -1.442695, %v3138_v40  ;;  %v3740_v25 = vmul.f32 -1.442695, %v3149_v63  ;;  %v3154_v3 = vadd.f32 %v5795_v62, %v5916_v60 }
 0x3a8   : > { %v1954_v46 = vmax.f32 %v1922_v34, 0.0  ;;  %3933 = vmatprep.mubr.bf16.mxu1 %v1970_v6  ;;  %v3738_v59 = vmul.f32 -1.442695, %v3141_v58  ;;  %v3743_v1 = vmul.f32 -1.442695, %v3162_v47  ;;  %v3165_v7 = vadd.f32 %v5797_v20, %v5916_v60 }
 0x3a9   : > { %4211 = vpow2.f32 %v3739_v8  ;;  %v3741_v19 = vmul.f32 -1.442695, %v3154_v3  ;;  %v3157_v14 = vadd.f32 %v5799_v35, %v5916_v60  ;;  %v3178_v35 = vadd.f32 %v5813_v53, %v5916_v60 }
 0x3aa   : > { %v1971_v26 = vpack.c.bf16 %v1954_v46, %v1953_v23  ;;  %4213 = vpow2.f32 %v3737_v50  ;;  %v3744_v31 = vmul.f32 -1.442695, %v3165_v7  ;;  %v3170_v17 = vadd.f32 %v5815_v29, %v5916_v60 }
 0x3ab   : > { %4215 = vpow2.f32 %v3740_v25  ;;  %v3742_v62 = vmul.f32 -1.442695, %v3157_v14  ;;  %v3181_v42 = vadd.f32 %v5817_v41, %v5916_v60  ;;  %v3747_v4 = vmul.f32 -1.442695, %v3178_v35 }
 0x3ac   : > { %3934 = vmatmul.mubr.bf16.gmra.mrb[108].mxu1 %v1971_v26  ;;  %4217 = vpow2.f32 %v3738_v59  ;;  %v3745_v6 = vmul.f32 -1.442695, %v3170_v17  ;;  %v3173_v23 = vadd.f32 %v5819_v43, %v5916_v60 }
 0x3ad   : > { %4219 = vpow2.f32 %v3743_v1  ;;  %v3748_v63 = vmul.f32 -1.442695, %v3181_v42  ;;  %v3194_v1 = vadd.f32 %v5836_v57, %v5916_v60  ;;  %v3189_v57 = vadd.f32 %v5845_v18, %v5916_v60 }
 0x3ae   : > { %v3746_v47 = vmul.f32 -1.442695, %v3173_v23 }
 0x3b3   : > { %v4212_v27 = vpop.eup %4211 }
 0x3b4   : > { %v4214_v38 = vpop.eup %4213  ;;  %v3362_v28 = vadd.f32 1.0, %v4212_v27 }
 0x3b5   : > { %v4216_v36 = vpop.eup %4215  ;;  %v3360_v30 = vadd.f32 1.0, %v4214_v38  ;;  %v3186_v38 = vadd.f32 %v5839_v5, %v5916_v60 }
 0x3b6   : > { %v4218_v55 = vpop.eup %4217  ;;  %4221 = vrcp.f32 %v3362_v28  ;;  %v3363_v37 = vadd.f32 1.0, %v4216_v36  ;;  %v3751_v36 = vmul.f32 -1.442695, %v3194_v1 }
 0x3b7   : > { %4223 = vpow2.f32 %v3741_v19  ;;  %v3361_v54 = vadd.f32 1.0, %v4218_v55  ;;  %v4220_v20 = vpop.eup %4219  ;;  %v3749_v14 = vmul.f32 -1.442695, %v3186_v38 }
 0x3b8   : > { %4225 = vrcp.f32 %v3360_v30  ;;  %v3366_v32 = vadd.f32 1.0, %v4220_v20  ;;  %v3197_v30 = vadd.f32 %v5842_v21, %v5916_v60 }
 0x3b9   : > { %4227 = vpow2.f32 %v3744_v31 }
 0x3ba   : > { %4229 = vrcp.f32 %v3363_v37  ;;  %v3752_v42 = vmul.f32 -1.442695, %v3197_v30 }
 0x3bb   : > { %4231 = vpow2.f32 %v3742_v62 }
 0x3bc   : > { %4233 = vrcp.f32 %v3361_v54 }
 0x3bd   : > { %4235 = vrcp.f32 %v3366_v32 }
 0x3be   : > { %4237 = vpow2.f32 %v3747_v4 }
 0x3bf   : > { %4239 = vpow2.f32 %v3745_v6 }
 0x3c0   : > { %v4222_v33 = vpop.eup %4221 }
 0x3c1   : > { %v4224_v61 = vpop.eup %4223 }
 0x3c2   : > { %v4226_v10 = vpop.eup %4225  ;;  %v3364_v12 = vadd.f32 1.0, %v4224_v61 }
 0x3c3   : > { %v4228_v34 = vpop.eup %4227 }
 0x3c4   : > { %v4230_v26 = vpop.eup %4229  ;;  %v3367_v59 = vadd.f32 1.0, %v4228_v34  ;;  %4241 = vrcp.f32 %v3364_v12 }
 0x3c5   : > { %v4232_v8 = vpop.eup %4231  ;;  %4243 = vpow2.f32 %v3748_v63 }
 0x3c6   : > { %v4234_v25 = vpop.eup %4233  ;;  %v3365_v3 = vadd.f32 1.0, %v4232_v8  ;;  %4245 = vrcp.f32 %v3367_v59 }
 0x3c7   : > { %4247 = vpow2.f32 %v3746_v47  ;;  %v4236_v7 = vpop.eup %4235 }
 0x3c8   : > { %4249 = vrcp.f32 %v3365_v3  ;;  %v4238_v28 = vpop.eup %4237 }
 0x3c9   : > { %v4240_v19 = vpop.eup %4239  ;;  %v3370_v20 = vadd.f32 1.0, %v4238_v28  ;;  %4251 = vpow2.f32 %v3751_v36 }
 0x3ca   : > { %v3368_v17 = vadd.f32 1.0, %v4240_v19  ;;  %4253 = vpow2.f32 %v3749_v14 }
 0x3cb   : > { %4255 = vrcp.f32 %v3370_v20 }
 0x3cc   : > { %4257 = vrcp.f32 %v3368_v17  ;;  %v3226_v17 = vadd.f32 %v5880_v48, %v5916_v60 }
 0x3cd   : > { %4259 = vpow2.f32 %v3752_v42 }
 0x3ce   : > { %v4242_v31 = vpop.eup %4241 }
 0x3cf   : > { %v4244_v54 = vpop.eup %4243 }
 0x3d0   : > { %v4246_v13 = vpop.eup %4245  ;;  %v3371_v4 = vadd.f32 1.0, %v4244_v54 }
 0x3d1   : > { %v4248_v32 = vpop.eup %4247 }
 0x3d2   : > { %v3369_v6 = vadd.f32 1.0, %v4248_v32  ;;  %4261 = vrcp.f32 %v3371_v4 }
 0x3ef   : > { %v5926_v52 = vpop.f32.mrb[104].mxu0 }
 0x3f0   : > { %v5928_v24 = vpop.f32.mrb[105].mxu0 }
 0x3f1   : > { %v5930_v39 = vpop.f32.mrb[106].mxu0 }
 0x3f2   : > { %v5932_v56 = vpop.f32.mrb[107].mxu0 }
 0x40c   : > { %v3907_v51 = vpop.f32.mrb[80].mxu1 }
 0x40d   : > { %v2083_v9 = vadd.f32 %v3907_v51, %v5946_v15  ;;  %v2074_v53 = vpop.f32.mrb[81].mxu1 }
 0x40e   : > { %v2075_v29 = vadd.f32 %v2074_v53, %v5946_v15  ;;  %v3908_v46 = vpop.f32.mrb[82].mxu1  ;;  %v3750_v53 = vmul.f32 -1.442695, %v3189_v57 }
 0x40f   : > { %v3458_v45 = vmul.f32 %v4222_v33, %v2083_v9  ;;  %v2086_v40 = vadd.f32 %v3908_v46, %v5946_v15  ;;  %v2077_v41 = vpop.f32.mrb[83].mxu1  ;;  %v3210_v46 = vadd.f32 %v5860_v0, %v5916_v60 }
 0x410   : > { %v3456_v50 = vmul.f32 %v4226_v10, %v2075_v29  ;;  %v2078_v58 = vadd.f32 %v2077_v41, %v5946_v15  ;;  %v4250_v10 = vpop.eup %4249  ;;  %4263 = vpow2.f32 %v3750_v53 }
 0x411   : > { %3490 = vst [vmem:[%s5960_s29 + $0x10] sm:$0xff] %v3458_v45  ;;  %v3459_v43 = vmul.f32 %v4230_v26, %v2086_v40  ;;  %4265 = vrcp.f32 %v3369_v6  ;;  %v4252_v23 = vpop.eup %4251  ;;  %v3202_v26 = vadd.f32 %v5862_v16, %v5916_v60  ;;  %v3213_v40 = vadd.f32 %v5865_v11, %v5916_v60 }
 0x412   : > { %3488 = vst [vmem:[%s5960_s29] sm:$0xff] %v3456_v50  ;;  %v3457_v27 = vmul.f32 %v4234_v25, %v2078_v58  ;;  %v4254_v29 = vpop.eup %4253  ;;  %v3374_v45 = vadd.f32 1.0, %v4252_v23  ;;  %v3755_v59 = vmul.f32 -1.442695, %v3210_v46 }
 0x413   : > { %3491 = vst [vmem:[%s5960_s29 + $0x18] sm:$0xff] %v3459_v43  ;;  %v4256_v12 = vpop.eup %4255  ;;  %v3372_v63 = vadd.f32 1.0, %v4254_v29  ;;  %v3205_v43 = vadd.f32 %v5867_v44, %v5916_v60  ;;  %v3229_v29 = vadd.f32 %v5884_v22, %v5916_v60 }
 0x414   : > { %3489 = vst [vmem:[%s5960_s29 + $0x8] sm:$0xff] %v3457_v27  ;;  %v4258_v8 = vpop.eup %4257  ;;  %v3753_v27 = vmul.f32 -1.442695, %v3202_v26  ;;  %4267 = vrcp.f32 %v3374_v45 }
 0x415   : > { %v4260_v25 = vpop.eup %4259  ;;  %4269 = vrcp.f32 %v3372_v63  ;;  %v3754_v30 = vmul.f32 -1.442695, %v3205_v43  ;;  %v3760_v22 = vmul.f32 -1.442695, %v3229_v29 }
 0x416   : > { %v4262_v47 = vpop.eup %4261  ;;  %v3375_v19 = vadd.f32 1.0, %v4260_v25  ;;  %4271 = vpow2.f32 %v3755_v59  ;;  %v3245_v59 = vadd.f32 %v5930_v39, %v5916_v60 }
 0x417   : > { %4273 = vpow2.f32 %v3753_v27 }
 0x41a   : > { %v4264_v38 = vpop.eup %4263 }
 0x41b   : > { %v4266_v44 = vpop.eup %4265 }
 0x41c   : > { %v3911_v55 = vpop.f32.mrb[84].mxu1 }
 0x41d   : > { %v2099_v37 = vadd.f32 %v3911_v55, %v5946_v15  ;;  %v2090_v62 = vpop.f32.mrb[85].mxu1 }
 0x41e   : > { %v2091_v5 = vadd.f32 %v2090_v62, %v5946_v15  ;;  %v3912_v35 = vpop.f32.mrb[86].mxu1 }
 0x41f   : > { %v3462_v33 = vmul.f32 %v4236_v7, %v2099_v37  ;;  %v2102_v21 = vadd.f32 %v3912_v35, %v5946_v15  ;;  %v2093_v61 = vpop.f32.mrb[87].mxu1  ;;  %v3756_v7 = vmul.f32 -1.442695, %v3213_v40  ;;  %v4268_v37 = vpop.eup %4267 }
 0x420   : > { %v3460_v51 = vmul.f32 %v4242_v31, %v2091_v5  ;;  %v2094_v18 = vadd.f32 %v2093_v61, %v5946_v15  ;;  %v3373_v31 = vadd.f32 1.0, %v4264_v38  ;;  %v4270_v62 = vpop.eup %4269 }
 0x421   : > { %3494 = vst [vmem:[%s5960_s29 + $0x30] sm:$0xff] %v3462_v33  ;;  %v3463_v9 = vmul.f32 %v4246_v13, %v2102_v21  ;;  %4275 = vpow2.f32 %v3756_v7  ;;  %v4272_v54 = vpop.eup %4271  ;;  %v3764_v7 = vmul.f32 -1.442695, %v3245_v59 }
 0x422   : > { %3492 = vst [vmem:[%s5960_s29 + $0x20] sm:$0xff] %v3460_v51  ;;  %v3461_v34 = vmul.f32 %v4250_v10, %v2094_v18  ;;  %4277 = vrcp.f32 %v3375_v19  ;;  %v4274_v57 = vpop.eup %4273  ;;  %v3378_v32 = vadd.f32 1.0, %v4272_v54 }
 0x423   : > { %3495 = vst [vmem:[%s5960_s29 + $0x38] sm:$0xff] %v3463_v9  ;;  %4279 = vpow2.f32 %v3754_v30  ;;  %v3376_v4 = vadd.f32 1.0, %v4274_v57  ;;  %v3218_v9 = vadd.f32 %v5882_v2, %v5916_v60  ;;  %v3221_v2 = vadd.f32 %v5886_v49, %v5916_v60 }
 0x424   : > { %3493 = vst [vmem:[%s5960_s29 + $0x28] sm:$0xff] %v3461_v34  ;;  %4281 = vrcp.f32 %v3373_v31  ;;  %v3242_v49 = vadd.f32 %v5926_v52, %v5916_v60 }
 0x425   : > { %4283 = vrcp.f32 %v3378_v32  ;;  %v3757_v63 = vmul.f32 -1.442695, %v3218_v9 }
 0x426   : > { %4285 = vrcp.f32 %v3376_v4 }
 0x42b   : > { %v4276_v13 = vpop.eup %4275 }
 0x42c   : > { %v3915_v41 = vpop.f32.mrb[88].mxu1  ;;  %v4278_v61 = vpop.eup %4277  ;;  %v3379_v23 = vadd.f32 1.0, %v4276_v13 }
 0x42d   : > { %v2115_v50 = vadd.f32 %v3915_v41, %v5946_v15  ;;  %v2106_v58 = vpop.f32.mrb[89].mxu1  ;;  %v4280_v10 = vpop.eup %4279 }
 0x42e   : > { %v2107_v0 = vadd.f32 %v2106_v58, %v5946_v15  ;;  %v3916_v16 = vpop.f32.mrb[90].mxu1  ;;  %v4282_v6 = vpop.eup %4281  ;;  %v3377_v41 = vadd.f32 1.0, %v4280_v10  ;;  %4287 = vrcp.f32 %v3379_v23  ;;  %v3234_v58 = vadd.f32 %v5928_v24, %v5916_v60 }
 0x42f   : > { %v3466_v3 = vmul.f32 %v4256_v12, %v2115_v50  ;;  %v2118_v11 = vadd.f32 %v3916_v16, %v5946_v15  ;;  %v2109_v1 = vpop.f32.mrb[91].mxu1  ;;  %v3759_v12 = vmul.f32 -1.442695, %v3226_v17  ;;  %v3758_v50 = vmul.f32 -1.442695, %v3221_v2  ;;  %v4284_v25 = vpop.eup %4283 }
 0x430   : > { %v3464_v28 = vmul.f32 %v4258_v8, %v2107_v0  ;;  %v2110_v36 = vadd.f32 %v2109_v1, %v5946_v15  ;;  %v4286_v43 = vpop.eup %4285  ;;  %v3237_v0 = vadd.f32 %v5932_v56, %v5916_v60 }
 0x431   : > { %3498 = vst [vmem:[%s5960_s29 + $0x50] sm:$0xff] %v3466_v3  ;;  %v3467_v14 = vmul.f32 %v4262_v47, %v2118_v11  ;;  %4289 = vpow2.f32 %v3759_v12  ;;  %v3763_v47 = vmul.f32 -1.442695, %v3242_v49  ;;  %v3761_v11 = vmul.f32 -1.442695, %v3234_v58 }
 0x432   : > { %3496 = vst [vmem:[%s5960_s29 + $0x40] sm:$0xff] %v3464_v28  ;;  %v3465_v55 = vmul.f32 %v4266_v44, %v2110_v36  ;;  %4291 = vrcp.f32 %v3377_v41  ;;  %v3762_v39 = vmul.f32 -1.442695, %v3237_v0 }
 0x433   : > { %3499 = vst [vmem:[%s5960_s29 + $0x58] sm:$0xff] %v3467_v14  ;;  %4293 = vpow2.f32 %v3757_v63 }
 0x434   : > { %3497 = vst [vmem:[%s5960_s29 + $0x48] sm:$0xff] %v3465_v55  ;;  %4295 = vpow2.f32 %v3760_v22 }
 0x435   : > { %4297 = vpow2.f32 %v3758_v50 }
 0x436   : > { %4299 = vpow2.f32 %v3763_v47 }
 0x437   : > { %4301 = vpow2.f32 %v3761_v11 }
 0x438   : > { %v4288_v16 = vpop.eup %4287  ;;  %4303 = vpow2.f32 %v3764_v7 }
 0x439   : > { %4305 = vpow2.f32 %v3762_v39 }
 0x43b   : > { %v4290_v3 = vpop.eup %4289 }
 0x43c   : > { %v3919_v20 = vpop.f32.mrb[92].mxu1  ;;  %v4292_v52 = vpop.eup %4291 }
 0x43d   : > { %v2131_v5 = vadd.f32 %v3919_v20, %v5946_v15  ;;  %v2122_v35 = vpop.f32.mrb[93].mxu1  ;;  %v4294_v36 = vpop.eup %4293 }
 0x43e   : > { %v2123_v33 = vadd.f32 %v2122_v35, %v5946_v15  ;;  %v3920_v21 = vpop.f32.mrb[94].mxu1  ;;  %v4296_v14 = vpop.eup %4295  ;;  %v3380_v54 = vadd.f32 1.0, %v4294_v36 }
 0x43f   : > { %v3470_v42 = vmul.f32 %v4268_v37, %v2131_v5  ;;  %v2134_v51 = vadd.f32 %v3920_v21, %v5946_v15  ;;  %v2125_v18 = vpop.f32.mrb[95].mxu1  ;;  %v6006_v34 = vpop.f32.mrb[108].mxu0  ;;  %v3382_v37 = vadd.f32 1.0, %v4290_v3  ;;  %v3383_v57 = vadd.f32 1.0, %v4296_v14 }
 0x440   : > { %v3468_v53 = vmul.f32 %v4270_v62, %v2123_v33  ;;  %v2126_v48 = vadd.f32 %v2125_v18, %v5946_v15  ;;  %v6011_v26 = vpop.f32.mrb[109].mxu0  ;;  %v4298_v31 = vpop.eup %4297 }
 0x441   : > { %3502 = vst [vmem:[%s5960_s29 + $0x70] sm:$0xff] %v3470_v42  ;;  %v3471_v46 = vmul.f32 %v4278_v61, %v2134_v51  ;;  %v6016_v40 = vpop.f32.mrb[110].mxu0  ;;  %v3381_v5 = vadd.f32 1.0, %v4298_v31  ;;  %4307 = vrcp.f32 %v3382_v37  ;;  %v4300_v35 = vpop.eup %4299  ;;  %v3258_v61 = vadd.f32 %v6006_v34, %v5916_v60 }
 0x442   : > { %3500 = vst [vmem:[%s5960_s29 + $0x60] sm:$0xff] %v3468_v53  ;;  %v3469_v45 = vmul.f32 %v4282_v6, %v2126_v48  ;;  %v6019_v8 = vpop.f32.mrb[111].mxu0  ;;  %4309 = vrcp.f32 %v3380_v54  ;;  %v4302_v13 = vpop.eup %4301  ;;  %v3386_v21 = vadd.f32 1.0, %v4300_v35  ;;  %v3250_v51 = vadd.f32 %v6011_v26, %v5916_v60 }
 0x443   : > { %3503 = vst [vmem:[%s5960_s29 + $0x78] sm:$0xff] %v3471_v46  ;;  %4311 = vrcp.f32 %v3383_v57  ;;  %v4304_v17 = vpop.eup %4303  ;;  %v3384_v42 = vadd.f32 1.0, %v4302_v13  ;;  %v3261_v53 = vadd.f32 %v6016_v40, %v5916_v60  ;;  %v3253_v34 = vadd.f32 %v6019_v8, %v5916_v60 }
 0x444   : > { %3501 = vst [vmem:[%s5960_s29 + $0x68] sm:$0xff] %v3469_v45  ;;  %4313 = vrcp.f32 %v3381_v5  ;;  %v4306_v33 = vpop.eup %4305  ;;  %v3387_v9 = vadd.f32 1.0, %v4304_v17  ;;  %v3767_v45 = vmul.f32 -1.442695, %v3258_v61  ;;  %v3765_v22 = vmul.f32 -1.442695, %v3250_v51 }
 0x445   : > { %v3385_v29 = vadd.f32 1.0, %v4306_v33  ;;  %4315 = vrcp.f32 %v3386_v21  ;;  %v3768_v60 = vmul.f32 -1.442695, %v3261_v53  ;;  %v3766_v49 = vmul.f32 -1.442695, %v3253_v34 }
 0x446   : > { %4317 = vrcp.f32 %v3384_v42 }
 0x447   : > { %4319 = vrcp.f32 %v3387_v9 }
 0x448   : > { %4321 = vrcp.f32 %v3385_v29 }
 0x449   : > { %4323 = vpow2.f32 %v3767_v45 }
 0x44a   : > { %4325 = vpow2.f32 %v3765_v22 }
 0x44b   : > { %v4308_v4 = vpop.eup %4307  ;;  %4327 = vpow2.f32 %v3768_v60 }
 0x44c   : > { %v4310_v23 = vpop.eup %4309  ;;  %4329 = vpow2.f32 %v3766_v49 }
 0x44d   : > { %v4312_v2 = vpop.eup %4311 }
 0x44e   : > { %v4314_v63 = vpop.eup %4313 }
 0x44f   : > { %v3923_v27 = vpop.f32.mrb[96].mxu1  ;;  %v4316_v58 = vpop.eup %4315 }
 0x450   : > { %v2147_v1 = vadd.f32 %v3923_v27, %v5946_v15  ;;  %v2138_v38 = vpop.f32.mrb[97].mxu1 }
 0x451   : > { %v2139_v24 = vadd.f32 %v2138_v38, %v5946_v15  ;;  %v3924_v28 = vpop.f32.mrb[98].mxu1 }
 0x452   : > { %v3474_v44 = vmul.f32 %v4284_v25, %v2147_v1  ;;  %v2150_v56 = vadd.f32 %v3924_v28, %v5946_v15  ;;  %v2141_v19 = vpop.f32.mrb[99].mxu1  ;;  %v4318_v25 = vpop.eup %4317 }
 0x453   : > { %v3472_v30 = vmul.f32 %v4286_v43, %v2139_v24  ;;  %v2142_v55 = vadd.f32 %v2141_v19, %v5946_v15  ;;  %v4320_v59 = vpop.eup %4319 }
 0x454   : > { %3506 = vst [vmem:[%s5960_s29 + $0x90] sm:$0xff] %v3474_v44  ;;  %v3475_v62 = vmul.f32 %v4288_v16, %v2150_v56  ;;  %v4322_v0 = vpop.eup %4321 }
 0x455   : > { %3504 = vst [vmem:[%s5960_s29 + $0x80] sm:$0xff] %v3472_v30  ;;  %v3473_v20 = vmul.f32 %v4292_v52, %v2142_v55  ;;  %v4324_v27 = vpop.eup %4323 }
 0x456   : > { %3507 = vst [vmem:[%s5960_s29 + $0x98] sm:$0xff] %v3475_v62  ;;  %v4326_v1 = vpop.eup %4325  ;;  %v3390_v44 = vadd.f32 1.0, %v4324_v27 }
 0x457   : > { %3505 = vst [vmem:[%s5960_s29 + $0x88] sm:$0xff] %v3473_v20  ;;  %v4328_v24 = vpop.eup %4327  ;;  %v3388_v19 = vadd.f32 1.0, %v4326_v1 }
 0x458   : > { %v4330_v39 = vpop.eup %4329  ;;  %v3391_v30 = vadd.f32 1.0, %v4328_v24  ;;  %4331 = vrcp.f32 %v3390_v44 }
 0x459   : > { %v3389_v55 = vadd.f32 1.0, %v4330_v39  ;;  %4333 = vrcp.f32 %v3388_v19 }
 0x45a   : > { %4335 = vrcp.f32 %v3391_v30 }
 0x45b   : > { %4337 = vrcp.f32 %v3389_v55 }
 0x45f   : > { %v3927_v32 = vpop.f32.mrb[100].mxu1 }
 0x460   : > { %v2163_v18 = vadd.f32 %v3927_v32, %v5946_v15  ;;  %v2154_v10 = vpop.f32.mrb[101].mxu1 }
 0x461   : > { %v2155_v48 = vadd.f32 %v2154_v10, %v5946_v15  ;;  %v3928_v6 = vpop.f32.mrb[102].mxu1 }
 0x462   : > { %v3478_v46 = vmul.f32 %v4308_v4, %v2163_v18  ;;  %v2166_v26 = vadd.f32 %v3928_v6, %v5946_v15  ;;  %v2157_v12 = vpop.f32.mrb[103].mxu1  ;;  %v4332_v54 = vpop.eup %4331 }
 0x463   : > { %v3476_v40 = vmul.f32 %v4310_v23, %v2155_v48  ;;  %v2158_v41 = vadd.f32 %v2157_v12, %v5946_v15  ;;  %v4334_v5 = vpop.eup %4333 }
 0x464   : > { %3510 = vst [vmem:[%s5960_s29 + $0xb0] sm:$0xff] %v3478_v46  ;;  %v3479_v50 = vmul.f32 %v4312_v2, %v2166_v26  ;;  %v4336_v33 = vpop.eup %4335 }
 0x465   : > { %3508 = vst [vmem:[%s5960_s29 + $0xa0] sm:$0xff] %v3476_v40  ;;  %v3477_v8 = vmul.f32 %v4314_v63, %v2158_v41  ;;  %v4338_v32 = vpop.eup %4337 }
 0x466   : > { %3511 = vst [vmem:[%s5960_s29 + $0xb8] sm:$0xff] %v3479_v50 }
 0x467   : > { %3509 = vst [vmem:[%s5960_s29 + $0xa8] sm:$0xff] %v3477_v8 }
 0x46f   : > { %v3931_v43 = vpop.f32.mrb[104].mxu1 }
 0x470   : > { %v2179_v16 = vadd.f32 %v3931_v43, %v5946_v15  ;;  %v2170_v47 = vpop.f32.mrb[105].mxu1 }
 0x471   : > { %v2171_v3 = vadd.f32 %v2170_v47, %v5946_v15  ;;  %v3932_v11 = vpop.f32.mrb[106].mxu1 }
 0x472   : > { %v3482_v38 = vmul.f32 %v4316_v58, %v2179_v16  ;;  %v2182_v52 = vadd.f32 %v3932_v11, %v5946_v15  ;;  %v2173_v7 = vpop.f32.mrb[107].mxu1 }
 0x473   : > { %v3480_v28 = vmul.f32 %v4318_v25, %v2171_v3  ;;  %v2174_v36 = vadd.f32 %v2173_v7, %v5946_v15 }
 0x474   : > { %3514 = vst [vmem:[%s5960_s29 + $0xd0] sm:$0xff] %v3482_v38  ;;  %v3483_v56 = vmul.f32 %v4320_v59, %v2182_v52 }
 0x475   : > { %3512 = vst [vmem:[%s5960_s29 + $0xc0] sm:$0xff] %v3480_v28  ;;  %v3481_v14 = vmul.f32 %v4322_v0, %v2174_v36 }
 0x476   : > { %3515 = vst [vmem:[%s5960_s29 + $0xd8] sm:$0xff] %v3483_v56 }
 0x477   : > { %3513 = vst [vmem:[%s5960_s29 + $0xc8] sm:$0xff] %v3481_v14 }
 0x47f   : > { %v3935_v31 = vpop.f32.mrb[108].mxu1 }
 0x480   : > { %v2195_v37 = vadd.f32 %v3935_v31, %v5946_v15  ;;  %v2186_v62 = vpop.f32.mrb[109].mxu1 }
 0x481   : > { %v2187_v20 = vadd.f32 %v2186_v62, %v5946_v15  ;;  %v3936_v57 = vpop.f32.mrb[110].mxu1 }
 0x482   : > { %v3486_v35 = vmul.f32 %v4332_v54, %v2195_v37  ;;  %v2198_v13 = vadd.f32 %v3936_v57, %v5946_v15  ;;  %v2189_v17 = vpop.f32.mrb[111].mxu1 }
 0x483   : > { %v3484_v21 = vmul.f32 %v4334_v5, %v2187_v20  ;;  %v2190_v61 = vadd.f32 %v2189_v17, %v5946_v15 }
 0x484   : > { %3518 = vst [vmem:[%s5960_s29 + $0xf0] sm:$0xff] %v3486_v35  ;;  %v3487_v42 = vmul.f32 %v4336_v33, %v2198_v13 }
 0x485   : > { %3516 = vst [vmem:[%s5960_s29 + $0xe0] sm:$0xff] %v3484_v21  ;;  %v3485_v51 = vmul.f32 %v4338_v32, %v2190_v61 }
 0x486   : > { %3519 = vst [vmem:[%s5960_s29 + $0xf8] sm:$0xff] %v3487_v42 }
 0x487   : > { %3517 = vst [vmem:[%s5960_s29 + $0xe8] sm:$0xff] %v3485_v51 }
 0x488   : > { %4354 = shalt.err (!%p4351_p3)
}
 0x489   : > { %s4355_s16 = scalar_lea.hbm %s6072_s21, 4096  ;;  %s4359_s15 = scalar_lea.hbm %s6133_s11, 8192 }
 0x48a   : > { %p4356_p4 = scmp.ne.s32.totalorder %s6072_s21, %s4355_s16  ;;  %p4360_p9 = scmp.lt.u32.totalorder %s6072_s21, %s6133_s11 }
 0x48b   : > { %p4361_p10 = scmp.lt.u32.totalorder %s4359_s15, %s4355_s16  ;;  %p4363_p12 = scmp.lt.u32.totalorder %s4355_s16, %s6072_s21 }
 0x48c   : > { %p4357_p7 = pnand %p4356_p4, %p4507_p5 }
 0x48d   : > { %p4362_p11 = por %p4361_p10, %p4360_p9 }
 0x48e   : > { %p4358_p8 = pneg %p4357_p7 }
 0x48f   : > { %p4364_p13 = por %p4363_p12, %p4362_p11 }
 0x491   : > { %p4365_p0 = pnand %p4364_p13, %p4358_p8 }
 0x493   : > { %4368 = shalt.err (!%p4365_p0)
}
 0x494   : > { %s4407_s24 = smov 128   ;;  %s4408_s12 = smov 8  }
 0x495   : > { %3977 = dma.vmem_to_hbm [thread:$0]  (%p4507_p5), %s6074_s13, 4096, %s6072_s21, %s6081_s30, %s4407_s24, %s4407_s24, %s4408_s12  }
 0x496 PF: > { %p3983_p1 = scmp.ge.s32.totalorder %s4403_s20, 2  ;;  %s3549_s29 = sand.u32 1, %s4391_s17  }
 0x497   : > { %s3550_s16 = scalar_lea.sflag [#allocation3], %s3549_s29 }
 0x498   : > { %p3980_p2 = pnand %p3983_p1, %p4511_p6 }
 0x49a   : > { %4386 = dma.done.wait (!%p3980_p2), %s3550_s16, 4096  }
 0x49b   : > { %4388 = vsyncadd (!%p3980_p2), %s3550_s16, 4294963200  ;;  %p21_p3 = scmp.ge.s32.totalorder %s4494_s23, 4   ;;  %s6217_s17 = smov %s4395_s18 }
 0x49c   : > { %s6218_s18 = smov %s4399_s19  ;;  %s6219_s19 = smov %s4505_s26 }
 0x49d   : > { %s6220_s20 = smov %s4494_s23  ;;  %23 = sbr.rel (!%p21_p3) target bundleno = 3 (0x3), region = 105 }
 0x4a4   :  { %3555 = vsyncpa [#allocation3], 1 }
 0x4a5   :  { %3557 = vsyncpa [#allocation3 + $0x1], 1 }

</bundles_post_ra>
